<compile_context>
chip_gen: v7x
topology: tpu7x:2x2x1
jax: 0.10.0
libtpu: 0.0.40
codegen_flags: <defaults>
</compile_context>

<pallas_src>
import functools

import jax
import jax.numpy as jnp
from jax.experimental import pallas as pl
from jax.experimental.pallas import tpu as pltpu


def resblock_kernel(xp_ref, w1_ref, w2_ref, ws_ref, sh_ref, o_ref, y1p_ref,
                    *, H, W, Cin, Cout):
    """One batch element.

    xp_ref : (H+2, W+2, Cin)   zero-padded input image (NHWC, pad=1)
    w1_ref : (9, Cin,  Cout)   conv1 weights per tap, BN1 scale folded in
    w2_ref : (9, Cout, Cout)   conv2 weights per tap, BN2 scale folded in
    ws_ref : (Cin, Cout)       1x1 shortcut conv weights, shortcut-BN scale folded in
    sh_ref : (3, Cout)         packed BN shifts: [shift1, shift2, shift_shortcut]
    o_ref  : (H, W, Cout)      output image
    y1p_ref: (H+2, W+2, Cout)  VMEM scratch for the padded intermediate
    """
    taps = [(dy, dx) for dy in range(3) for dx in range(3)]

    def conv3x3(src_ref, w_ref, C):
        # 9-tap accumulation: each tap is a direct ref slice fed straight to the MXU.
        acc = None
        for t, (dy, dx) in enumerate(taps):
            tap = src_ref[dy:dy + H, dx:dx + W, :].reshape(H * W, C)
            d = jnp.dot(tap, w_ref[t], preferred_element_type=jnp.float32)
            acc = d if acc is None else acc + d
        return acc

    b1 = sh_ref[0:1, :]                                       # (1, Cout)
    b2 = sh_ref[1:2, :]
    bs = sh_ref[2:3, :]

    # ---- conv1 (3x3, stride 1, pad 1) + BN1 (scale pre-folded) + ReLU ----
    y1 = jnp.maximum(conv3x3(xp_ref, w1_ref, Cin) + b1, 0.0)  # (H*W, Cout)

    # ---- stage padded intermediate: zero only the 1-wide border, write interior ----
    y1p_ref[0:1, :, :] = jnp.zeros((1, W + 2, Cout), jnp.float32)
    y1p_ref[H + 1:H + 2, :, :] = jnp.zeros((1, W + 2, Cout), jnp.float32)
    y1p_ref[:, 0:1, :] = jnp.zeros((H + 2, 1, Cout), jnp.float32)
    y1p_ref[:, W + 1:W + 2, :] = jnp.zeros((H + 2, 1, Cout), jnp.float32)
    y1p_ref[1:H + 1, 1:W + 1, :] = y1.reshape(H, W, Cout)

    # ---- conv2 (3x3, stride 1, pad 1) + BN2 shift (taps slice the scratch ref) ----
    y2 = conv3x3(y1p_ref, w2_ref, Cout) + b2                  # (H*W, Cout)

    # ---- shortcut: 1x1 conv + BN shift ----
    xi = xp_ref[1:H + 1, 1:W + 1, :].reshape(H * W, Cin)
    sc = jnp.dot(xi, ws_ref[...], preferred_element_type=jnp.float32) + bs

    # ---- residual add + final ReLU ----
    o_ref[...] = jnp.maximum(y2 + sc, 0.0).reshape(H, W, Cout)


def resblock_pallas(x_nchw, w1, w2, ws, bn1, bn2, bns, eps=1e-5):
    """x_nchw: (N, Cin, H, W) f32; w1/w2 HWIO (3,3,Ci,Co); ws (1,1,Cin,Cout).
    bn* = (gamma, beta, running_mean, running_var), each (Cout,). Eval-mode BN."""
    x = jnp.transpose(x_nchw, (0, 2, 3, 1)).astype(jnp.float32)   # NCHW -> NHWC
    N, H, W, Cin = x.shape
    Cout = w1.shape[-1]
    xp = jnp.pad(x, ((0, 0), (1, 1), (1, 1), (0, 0)))             # pad=1 (glue)

    def fold(bn):
        gamma, beta, mean, var = bn
        scale = gamma / jnp.sqrt(var + eps)
        shift = beta - mean * scale
        return scale.astype(jnp.float32), shift.astype(jnp.float32)

    s1, b1 = fold(bn1)
    s2, b2 = fold(bn2)
    ss, bs = fold(bns)

    # Fold BN scales into the conv weight output-channel columns (one-time wrapper op).
    w1f = (w1.astype(jnp.float32).reshape(9, Cin, Cout) * s1[None, None, :])
    w2f = (w2.astype(jnp.float32).reshape(9, Cout, Cout) * s2[None, None, :])
    wsf = (ws.astype(jnp.float32).reshape(Cin, Cout) * ss[None, :])
    shifts = jnp.stack([b1, b2, bs], axis=0)                      # (3, Cout)

    kern = functools.partial(resblock_kernel, H=H, W=W, Cin=Cin, Cout=Cout)

    out = pl.pallas_call(
        kern,
        out_shape=jax.ShapeDtypeStruct((N, H, W, Cout), jnp.float32),
        grid=(N,),
        in_specs=[
            pl.BlockSpec((None, H + 2, W + 2, Cin), lambda n: (n, 0, 0, 0)),
            pl.BlockSpec((9, Cin, Cout), lambda n: (0, 0, 0)),
            pl.BlockSpec((9, Cout, Cout), lambda n: (0, 0, 0)),
            pl.BlockSpec((Cin, Cout), lambda n: (0, 0)),
            pl.BlockSpec((3, Cout), lambda n: (0, 0)),
        ],
        out_specs=pl.BlockSpec((None, H, W, Cout), lambda n: (n, 0, 0, 0)),
        scratch_shapes=[pltpu.VMEM((H + 2, W + 2, Cout), jnp.float32)],
        compiler_params=pltpu.CompilerParams(dimension_semantics=("parallel",)),
    )(xp, w1f, w2f, wsf, shifts)

    return jnp.transpose(out, (0, 3, 1, 2))                       # NHWC -> NCHW


def resblock_ref(x_nchw, w1, w2, ws, bn1, bn2, bns, eps=1e-5):
    """Pure-JAX reference (eval-mode BN), NCHW in / NCHW out."""
    x = jnp.transpose(x_nchw, (0, 2, 3, 1)).astype(jnp.float32)
    dn = ('NHWC', 'HWIO', 'NHWC')

    def bn_apply(y, bn):
        g, b, m, v = bn
        return (y - m) / jnp.sqrt(v + eps) * g + b

    conv3 = lambda a, w: jax.lax.conv_general_dilated(a, w, (1, 1), 'SAME',
                                                      dimension_numbers=dn)
    conv1 = lambda a, w: jax.lax.conv_general_dilated(a, w, (1, 1), 'VALID',
                                                      dimension_numbers=dn)
    identity = bn_apply(conv1(x, ws), bns)
    y = jax.nn.relu(bn_apply(conv3(x, w1), bn1))
    y = bn_apply(conv3(y, w2), bn2)
    y = jax.nn.relu(y + identity)
    return jnp.transpose(y, (0, 3, 1, 2))


if __name__ == "__main__":
    key = jax.random.PRNGKey(0)
    N, Cin, Cout, H, W = 2, 4, 8, 16, 16
    ks = jax.random.split(key, 7)

    x = jax.random.normal(ks[0], (N, Cin, H, W), jnp.float32)
    w1 = jax.random.normal(ks[1], (3, 3, Cin, Cout), jnp.float32) * 0.1   # conv1
    w2 = jax.random.normal(ks[2], (3, 3, Cout, Cout), jnp.float32) * 0.1  # conv2
    ws = jax.random.normal(ks[3], (1, 1, Cin, Cout), jnp.float32) * 0.1   # shortcut 1x1

    # BatchNorm2d eval-mode parameters: unit gamma/var, small non-zero beta / running mean
    # so the shift folding/packing path is exercised.
    def bn_params(c, k):
        kb, km = jax.random.split(k)
        return (jnp.ones((c,), jnp.float32),
                0.1 * jax.random.normal(kb, (c,), jnp.float32),
                0.1 * jax.random.normal(km, (c,), jnp.float32),
                jnp.ones((c,), jnp.float32))

    bn1, bn2, bns = bn_params(Cout, ks[4]), bn_params(Cout, ks[5]), bn_params(Cout, ks[6])

    out = resblock_pallas(x, w1, w2, ws, bn1, bn2, bns)
    out = jax.block_until_ready(out)

    ref = resblock_ref(x, w1, w2, ws, bn1, bn2, bns)
    assert out.shape == (N, Cout, H, W)
    assert jnp.allclose(out, ref, atol=2e-4, rtol=2e-4), \
        float(jnp.max(jnp.abs(out - ref)))
    print("KERNEL_OK")
</pallas_src>

<mosaic_0001>
module attributes {stable_mosaic.version = 11 : i64} {
  func.func @resblock_kernel(%arg0: i32, %arg1: memref<1x18x18x4xf32, #tpu.memory_space<vmem>>, %arg2: memref<9x4x8xf32, #tpu.memory_space<vmem>>, %arg3: memref<9x8x8xf32, #tpu.memory_space<vmem>>, %arg4: memref<4x8xf32, #tpu.memory_space<vmem>>, %arg5: memref<3x8xf32, #tpu.memory_space<vmem>>, %arg6: memref<1x16x16x8xf32, #tpu.memory_space<vmem>>, %arg7: memref<18x18x8xf32, #tpu.memory_space<vmem>>) attributes {dimension_semantics = [#tpu.dimension_semantics<parallel>], iteration_bounds = array<i64: 2>, scalar_prefetch = 0 : i64, scratch_operands = 1 : i64, tpu.core_type = #tpu.core_type<tc>, window_params = [{transform_indices = @transform_0, window_bounds = array<i64: 1, 18, 18, 4>}, {pipeline_mode = #tpu.pipeline_mode<synchronous>, transform_indices = @transform_1, window_bounds = array<i64: 9, 4, 8>}, {pipeline_mode = #tpu.pipeline_mode<synchronous>, transform_indices = @transform_2, window_bounds = array<i64: 9, 8, 8>}, {pipeline_mode = #tpu.pipeline_mode<synchronous>, transform_indices = @transform_3, window_bounds = array<i64: 4, 8>}, {pipeline_mode = #tpu.pipeline_mode<synchronous>, transform_indices = @transform_4, window_bounds = array<i64: 3, 8>}, {transform_indices = @transform_5, window_bounds = array<i64: 1, 16, 16, 8>}]} {
    %c0 = arith.constant 0 : index
    %c0_0 = arith.constant 0 : index
    %0 = vector.load %arg5[%c0, %c0_0] : memref<3x8xf32, #tpu.memory_space<vmem>>, vector<1x8xf32>
    %c1 = arith.constant 1 : index
    %c0_1 = arith.constant 0 : index
    %1 = vector.load %arg5[%c1, %c0_1] : memref<3x8xf32, #tpu.memory_space<vmem>>, vector<1x8xf32>
    %c2 = arith.constant 2 : index
    %c0_2 = arith.constant 0 : index
    %2 = vector.load %arg5[%c2, %c0_2] : memref<3x8xf32, #tpu.memory_space<vmem>>, vector<1x8xf32>
    %c0_3 = arith.constant 0 : index
    %c0_4 = arith.constant 0 : index
    %c0_5 = arith.constant 0 : index
    %c0_6 = arith.constant 0 : index
    %3 = vector.load %arg1[%c0_3, %c0_4, %c0_5, %c0_6] : memref<1x18x18x4xf32, #tpu.memory_space<vmem>>, vector<1x16x16x4xf32>
    %4 = vector.shape_cast %3 : vector<1x16x16x4xf32> to vector<16x16x4xf32>
    %5 = vector.shape_cast %4 : vector<16x16x4xf32> to vector<256x4xf32>
    %c0_7 = arith.constant 0 : index
    %c0_8 = arith.constant 0 : index
    %c0_9 = arith.constant 0 : index
    %6 = vector.load %arg2[%c0_7, %c0_8, %c0_9] : memref<9x4x8xf32, #tpu.memory_space<vmem>>, vector<1x4x8xf32>
    %7 = vector.shape_cast %6 : vector<1x4x8xf32> to vector<4x8xf32>
    %cst = arith.constant dense<0.000000e+00> : vector<256x8xf32>
    %8 = tpu.matmul %5, %7, %cst {dimension_numbers = #tpu.dot_dimension_numbers<[1], [0], [0], [1], [0, 0, 1, 1], [], []>} : vector<256x4xf32>, vector<4x8xf32>, vector<256x8xf32> -> vector<256x8xf32>
    %c0_10 = arith.constant 0 : index
    %c0_11 = arith.constant 0 : index
    %c1_12 = arith.constant 1 : index
    %c0_13 = arith.constant 0 : index
    %9 = vector.load %arg1[%c0_10, %c0_11, %c1_12, %c0_13] : memref<1x18x18x4xf32, #tpu.memory_space<vmem>>, vector<1x16x16x4xf32>
    %10 = vector.shape_cast %9 : vector<1x16x16x4xf32> to vector<16x16x4xf32>
    %11 = vector.shape_cast %10 : vector<16x16x4xf32> to vector<256x4xf32>
    %c1_14 = arith.constant 1 : index
    %c0_15 = arith.constant 0 : index
    %c0_16 = arith.constant 0 : index
    %12 = vector.load %arg2[%c1_14, %c0_15, %c0_16] : memref<9x4x8xf32, #tpu.memory_space<vmem>>, vector<1x4x8xf32>
    %13 = vector.shape_cast %12 : vector<1x4x8xf32> to vector<4x8xf32>
    %cst_17 = arith.constant dense<0.000000e+00> : vector<256x8xf32>
    %14 = tpu.matmul %11, %13, %cst_17 {dimension_numbers = #tpu.dot_dimension_numbers<[1], [0], [0], [1], [0, 0, 1, 1], [], []>} : vector<256x4xf32>, vector<4x8xf32>, vector<256x8xf32> -> vector<256x8xf32>
    %15 = arith.addf %8, %14 : vector<256x8xf32>
    %c0_18 = arith.constant 0 : index
    %c0_19 = arith.constant 0 : index
    %c2_20 = arith.constant 2 : index
    %c0_21 = arith.constant 0 : index
    %16 = vector.load %arg1[%c0_18, %c0_19, %c2_20, %c0_21] : memref<1x18x18x4xf32, #tpu.memory_space<vmem>>, vector<1x16x16x4xf32>
    %17 = vector.shape_cast %16 : vector<1x16x16x4xf32> to vector<16x16x4xf32>
    %18 = vector.shape_cast %17 : vector<16x16x4xf32> to vector<256x4xf32>
    %c2_22 = arith.constant 2 : index
    %c0_23 = arith.constant 0 : index
    %c0_24 = arith.constant 0 : index
    %19 = vector.load %arg2[%c2_22, %c0_23, %c0_24] : memref<9x4x8xf32, #tpu.memory_space<vmem>>, vector<1x4x8xf32>
    %20 = vector.shape_cast %19 : vector<1x4x8xf32> to vector<4x8xf32>
    %cst_25 = arith.constant dense<0.000000e+00> : vector<256x8xf32>
    %21 = tpu.matmul %18, %20, %cst_25 {dimension_numbers = #tpu.dot_dimension_numbers<[1], [0], [0], [1], [0, 0, 1, 1], [], []>} : vector<256x4xf32>, vector<4x8xf32>, vector<256x8xf32> -> vector<256x8xf32>
    %22 = arith.addf %15, %21 : vector<256x8xf32>
    %c0_26 = arith.constant 0 : index
    %c1_27 = arith.constant 1 : index
    %c0_28 = arith.constant 0 : index
    %c0_29 = arith.constant 0 : index
    %23 = vector.load %arg1[%c0_26, %c1_27, %c0_28, %c0_29] : memref<1x18x18x4xf32, #tpu.memory_space<vmem>>, vector<1x16x16x4xf32>
    %24 = vector.shape_cast %23 : vector<1x16x16x4xf32> to vector<16x16x4xf32>
    %25 = vector.shape_cast %24 : vector<16x16x4xf32> to vector<256x4xf32>
    %c3 = arith.constant 3 : index
    %c0_30 = arith.constant 0 : index
    %c0_31 = arith.constant 0 : index
    %26 = vector.load %arg2[%c3, %c0_30, %c0_31] : memref<9x4x8xf32, #tpu.memory_space<vmem>>, vector<1x4x8xf32>
    %27 = vector.shape_cast %26 : vector<1x4x8xf32> to vector<4x8xf32>
    %cst_32 = arith.constant dense<0.000000e+00> : vector<256x8xf32>
    %28 = tpu.matmul %25, %27, %cst_32 {dimension_numbers = #tpu.dot_dimension_numbers<[1], [0], [0], [1], [0, 0, 1, 1], [], []>} : vector<256x4xf32>, vector<4x8xf32>, vector<256x8xf32> -> vector<256x8xf32>
    %29 = arith.addf %22, %28 : vector<256x8xf32>
    %c0_33 = arith.constant 0 : index
    %c1_34 = arith.constant 1 : index
    %c1_35 = arith.constant 1 : index
    %c0_36 = arith.constant 0 : index
    %30 = vector.load %arg1[%c0_33, %c1_34, %c1_35, %c0_36] : memref<1x18x18x4xf32, #tpu.memory_space<vmem>>, vector<1x16x16x4xf32>
    %31 = vector.shape_cast %30 : vector<1x16x16x4xf32> to vector<16x16x4xf32>
    %32 = vector.shape_cast %31 : vector<16x16x4xf32> to vector<256x4xf32>
    %c4 = arith.constant 4 : index
    %c0_37 = arith.constant 0 : index
    %c0_38 = arith.constant 0 : index
    %33 = vector.load %arg2[%c4, %c0_37, %c0_38] : memref<9x4x8xf32, #tpu.memory_space<vmem>>, vector<1x4x8xf32>
    %34 = vector.shape_cast %33 : vector<1x4x8xf32> to vector<4x8xf32>
    %cst_39 = arith.constant dense<0.000000e+00> : vector<256x8xf32>
    %35 = tpu.matmul %32, %34, %cst_39 {dimension_numbers = #tpu.dot_dimension_numbers<[1], [0], [0], [1], [0, 0, 1, 1], [], []>} : vector<256x4xf32>, vector<4x8xf32>, vector<256x8xf32> -> vector<256x8xf32>
    %36 = arith.addf %29, %35 : vector<256x8xf32>
    %c0_40 = arith.constant 0 : index
    %c1_41 = arith.constant 1 : index
    %c2_42 = arith.constant 2 : index
    %c0_43 = arith.constant 0 : index
    %37 = vector.load %arg1[%c0_40, %c1_41, %c2_42, %c0_43] : memref<1x18x18x4xf32, #tpu.memory_space<vmem>>, vector<1x16x16x4xf32>
    %38 = vector.shape_cast %37 : vector<1x16x16x4xf32> to vector<16x16x4xf32>
    %39 = vector.shape_cast %38 : vector<16x16x4xf32> to vector<256x4xf32>
    %c5 = arith.constant 5 : index
    %c0_44 = arith.constant 0 : index
    %c0_45 = arith.constant 0 : index
    %40 = vector.load %arg2[%c5, %c0_44, %c0_45] : memref<9x4x8xf32, #tpu.memory_space<vmem>>, vector<1x4x8xf32>
    %41 = vector.shape_cast %40 : vector<1x4x8xf32> to vector<4x8xf32>
    %cst_46 = arith.constant dense<0.000000e+00> : vector<256x8xf32>
    %42 = tpu.matmul %39, %41, %cst_46 {dimension_numbers = #tpu.dot_dimension_numbers<[1], [0], [0], [1], [0, 0, 1, 1], [], []>} : vector<256x4xf32>, vector<4x8xf32>, vector<256x8xf32> -> vector<256x8xf32>
    %43 = arith.addf %36, %42 : vector<256x8xf32>
    %c0_47 = arith.constant 0 : index
    %c2_48 = arith.constant 2 : index
    %c0_49 = arith.constant 0 : index
    %c0_50 = arith.constant 0 : index
    %44 = vector.load %arg1[%c0_47, %c2_48, %c0_49, %c0_50] : memref<1x18x18x4xf32, #tpu.memory_space<vmem>>, vector<1x16x16x4xf32>
    %45 = vector.shape_cast %44 : vector<1x16x16x4xf32> to vector<16x16x4xf32>
    %46 = vector.shape_cast %45 : vector<16x16x4xf32> to vector<256x4xf32>
    %c6 = arith.constant 6 : index
    %c0_51 = arith.constant 0 : index
    %c0_52 = arith.constant 0 : index
    %47 = vector.load %arg2[%c6, %c0_51, %c0_52] : memref<9x4x8xf32, #tpu.memory_space<vmem>>, vector<1x4x8xf32>
    %48 = vector.shape_cast %47 : vector<1x4x8xf32> to vector<4x8xf32>
    %cst_53 = arith.constant dense<0.000000e+00> : vector<256x8xf32>
    %49 = tpu.matmul %46, %48, %cst_53 {dimension_numbers = #tpu.dot_dimension_numbers<[1], [0], [0], [1], [0, 0, 1, 1], [], []>} : vector<256x4xf32>, vector<4x8xf32>, vector<256x8xf32> -> vector<256x8xf32>
    %50 = arith.addf %43, %49 : vector<256x8xf32>
    %c0_54 = arith.constant 0 : index
    %c2_55 = arith.constant 2 : index
    %c1_56 = arith.constant 1 : index
    %c0_57 = arith.constant 0 : index
    %51 = vector.load %arg1[%c0_54, %c2_55, %c1_56, %c0_57] : memref<1x18x18x4xf32, #tpu.memory_space<vmem>>, vector<1x16x16x4xf32>
    %52 = vector.shape_cast %51 : vector<1x16x16x4xf32> to vector<16x16x4xf32>
    %53 = vector.shape_cast %52 : vector<16x16x4xf32> to vector<256x4xf32>
    %c7 = arith.constant 7 : index
    %c0_58 = arith.constant 0 : index
    %c0_59 = arith.constant 0 : index
    %54 = vector.load %arg2[%c7, %c0_58, %c0_59] : memref<9x4x8xf32, #tpu.memory_space<vmem>>, vector<1x4x8xf32>
    %55 = vector.shape_cast %54 : vector<1x4x8xf32> to vector<4x8xf32>
    %cst_60 = arith.constant dense<0.000000e+00> : vector<256x8xf32>
    %56 = tpu.matmul %53, %55, %cst_60 {dimension_numbers = #tpu.dot_dimension_numbers<[1], [0], [0], [1], [0, 0, 1, 1], [], []>} : vector<256x4xf32>, vector<4x8xf32>, vector<256x8xf32> -> vector<256x8xf32>
    %57 = arith.addf %50, %56 : vector<256x8xf32>
    %c0_61 = arith.constant 0 : index
    %c2_62 = arith.constant 2 : index
    %c2_63 = arith.constant 2 : index
    %c0_64 = arith.constant 0 : index
    %58 = vector.load %arg1[%c0_61, %c2_62, %c2_63, %c0_64] : memref<1x18x18x4xf32, #tpu.memory_space<vmem>>, vector<1x16x16x4xf32>
    %59 = vector.shape_cast %58 : vector<1x16x16x4xf32> to vector<16x16x4xf32>
    %60 = vector.shape_cast %59 : vector<16x16x4xf32> to vector<256x4xf32>
    %c8 = arith.constant 8 : index
    %c0_65 = arith.constant 0 : index
    %c0_66 = arith.constant 0 : index
    %61 = vector.load %arg2[%c8, %c0_65, %c0_66] : memref<9x4x8xf32, #tpu.memory_space<vmem>>, vector<1x4x8xf32>
    %62 = vector.shape_cast %61 : vector<1x4x8xf32> to vector<4x8xf32>
    %cst_67 = arith.constant dense<0.000000e+00> : vector<256x8xf32>
    %63 = tpu.matmul %60, %62, %cst_67 {dimension_numbers = #tpu.dot_dimension_numbers<[1], [0], [0], [1], [0, 0, 1, 1], [], []>} : vector<256x4xf32>, vector<4x8xf32>, vector<256x8xf32> -> vector<256x8xf32>
    %64 = arith.addf %57, %63 : vector<256x8xf32>
    %65 = vector.broadcast %0 : vector<1x8xf32> to vector<256x8xf32>
    %66 = arith.addf %64, %65 : vector<256x8xf32>
    %cst_68 = arith.constant 0.000000e+00 : f32
    %67 = vector.broadcast %cst_68 : f32 to vector<256x8xf32>
    %68 = arith.maximumf %66, %67 : vector<256x8xf32>
    %cst_69 = arith.constant 0.000000e+00 : f32
    %69 = vector.broadcast %cst_69 : f32 to vector<1x18x8xf32>
    %c0_70 = arith.constant 0 : index
    %c0_71 = arith.constant 0 : index
    %c0_72 = arith.constant 0 : index
    %70 = vector.load %arg7[%c0_70, %c0_71, %c0_72] : memref<18x18x8xf32, #tpu.memory_space<vmem>>, vector<1x18x8xf32>
    tpu.vector_store %arg7[%c0_70, %c0_71, %c0_72], %69 {strides = array<i32>} : memref<18x18x8xf32, #tpu.memory_space<vmem>>, vector<1x18x8xf32>,
    %cst_73 = arith.constant 0.000000e+00 : f32
    %71 = vector.broadcast %cst_73 : f32 to vector<1x18x8xf32>
    %c17 = arith.constant 17 : index
    %c0_74 = arith.constant 0 : index
    %c0_75 = arith.constant 0 : index
    %72 = vector.load %arg7[%c17, %c0_74, %c0_75] : memref<18x18x8xf32, #tpu.memory_space<vmem>>, vector<1x18x8xf32>
    tpu.vector_store %arg7[%c17, %c0_74, %c0_75], %71 {strides = array<i32>} : memref<18x18x8xf32, #tpu.memory_space<vmem>>, vector<1x18x8xf32>,
    %cst_76 = arith.constant 0.000000e+00 : f32
    %73 = vector.broadcast %cst_76 : f32 to vector<18x1x8xf32>
    %c0_77 = arith.constant 0 : index
    %c0_78 = arith.constant 0 : index
    %c0_79 = arith.constant 0 : index
    %74 = vector.load %arg7[%c0_77, %c0_78, %c0_79] : memref<18x18x8xf32, #tpu.memory_space<vmem>>, vector<18x1x8xf32>
    tpu.vector_store %arg7[%c0_77, %c0_78, %c0_79], %73 {strides = array<i32>} : memref<18x18x8xf32, #tpu.memory_space<vmem>>, vector<18x1x8xf32>,
    %cst_80 = arith.constant 0.000000e+00 : f32
    %75 = vector.broadcast %cst_80 : f32 to vector<18x1x8xf32>
    %c0_81 = arith.constant 0 : index
    %c17_82 = arith.constant 17 : index
    %c0_83 = arith.constant 0 : index
    %76 = vector.load %arg7[%c0_81, %c17_82, %c0_83] : memref<18x18x8xf32, #tpu.memory_space<vmem>>, vector<18x1x8xf32>
    tpu.vector_store %arg7[%c0_81, %c17_82, %c0_83], %75 {strides = array<i32>} : memref<18x18x8xf32, #tpu.memory_space<vmem>>, vector<18x1x8xf32>,
    %77 = vector.shape_cast %68 : vector<256x8xf32> to vector<16x16x8xf32>
    %c1_84 = arith.constant 1 : index
    %c1_85 = arith.constant 1 : index
    %c0_86 = arith.constant 0 : index
    %78 = vector.load %arg7[%c1_84, %c1_85, %c0_86] : memref<18x18x8xf32, #tpu.memory_space<vmem>>, vector<16x16x8xf32>
    tpu.vector_store %arg7[%c1_84, %c1_85, %c0_86], %77 {strides = array<i32>} : memref<18x18x8xf32, #tpu.memory_space<vmem>>, vector<16x16x8xf32>,
    %c0_87 = arith.constant 0 : index
    %c0_88 = arith.constant 0 : index
    %c0_89 = arith.constant 0 : index
    %79 = vector.load %arg7[%c0_87, %c0_88, %c0_89] : memref<18x18x8xf32, #tpu.memory_space<vmem>>, vector<16x16x8xf32>
    %80 = vector.shape_cast %79 : vector<16x16x8xf32> to vector<256x8xf32>
    %c0_90 = arith.constant 0 : index
    %c0_91 = arith.constant 0 : index
    %c0_92 = arith.constant 0 : index
    %81 = vector.load %arg3[%c0_90, %c0_91, %c0_92] : memref<9x8x8xf32, #tpu.memory_space<vmem>>, vector<1x8x8xf32>
    %82 = vector.shape_cast %81 : vector<1x8x8xf32> to vector<8x8xf32>
    %cst_93 = arith.constant dense<0.000000e+00> : vector<256x8xf32>
    %83 = tpu.matmul %80, %82, %cst_93 {dimension_numbers = #tpu.dot_dimension_numbers<[1], [0], [0], [1], [0, 0, 1, 1], [], []>} : vector<256x8xf32>, vector<8x8xf32>, vector<256x8xf32> -> vector<256x8xf32>
    %c0_94 = arith.constant 0 : index
    %c1_95 = arith.constant 1 : index
    %c0_96 = arith.constant 0 : index
    %84 = vector.load %arg7[%c0_94, %c1_95, %c0_96] : memref<18x18x8xf32, #tpu.memory_space<vmem>>, vector<16x16x8xf32>
    %85 = vector.shape_cast %84 : vector<16x16x8xf32> to vector<256x8xf32>
    %c1_97 = arith.constant 1 : index
    %c0_98 = arith.constant 0 : index
    %c0_99 = arith.constant 0 : index
    %86 = vector.load %arg3[%c1_97, %c0_98, %c0_99] : memref<9x8x8xf32, #tpu.memory_space<vmem>>, vector<1x8x8xf32>
    %87 = vector.shape_cast %86 : vector<1x8x8xf32> to vector<8x8xf32>
    %cst_100 = arith.constant dense<0.000000e+00> : vector<256x8xf32>
    %88 = tpu.matmul %85, %87, %cst_100 {dimension_numbers = #tpu.dot_dimension_numbers<[1], [0], [0], [1], [0, 0, 1, 1], [], []>} : vector<256x8xf32>, vector<8x8xf32>, vector<256x8xf32> -> vector<256x8xf32>
    %89 = arith.addf %83, %88 : vector<256x8xf32>
    %c0_101 = arith.constant 0 : index
    %c2_102 = arith.constant 2 : index
    %c0_103 = arith.constant 0 : index
    %90 = vector.load %arg7[%c0_101, %c2_102, %c0_103] : memref<18x18x8xf32, #tpu.memory_space<vmem>>, vector<16x16x8xf32>
    %91 = vector.shape_cast %90 : vector<16x16x8xf32> to vector<256x8xf32>
    %c2_104 = arith.constant 2 : index
    %c0_105 = arith.constant 0 : index
    %c0_106 = arith.constant 0 : index
    %92 = vector.load %arg3[%c2_104, %c0_105, %c0_106] : memref<9x8x8xf32, #tpu.memory_space<vmem>>, vector<1x8x8xf32>
    %93 = vector.shape_cast %92 : vector<1x8x8xf32> to vector<8x8xf32>
    %cst_107 = arith.constant dense<0.000000e+00> : vector<256x8xf32>
    %94 = tpu.matmul %91, %93, %cst_107 {dimension_numbers = #tpu.dot_dimension_numbers<[1], [0], [0], [1], [0, 0, 1, 1], [], []>} : vector<256x8xf32>, vector<8x8xf32>, vector<256x8xf32> -> vector<256x8xf32>
    %95 = arith.addf %89, %94 : vector<256x8xf32>
    %c1_108 = arith.constant 1 : index
    %c0_109 = arith.constant 0 : index
    %c0_110 = arith.constant 0 : index
    %96 = vector.load %arg7[%c1_108, %c0_109, %c0_110] : memref<18x18x8xf32, #tpu.memory_space<vmem>>, vector<16x16x8xf32>
    %97 = vector.shape_cast %96 : vector<16x16x8xf32> to vector<256x8xf32>
    %c3_111 = arith.constant 3 : index
    %c0_112 = arith.constant 0 : index
    %c0_113 = arith.constant 0 : index
    %98 = vector.load %arg3[%c3_111, %c0_112, %c0_113] : memref<9x8x8xf32, #tpu.memory_space<vmem>>, vector<1x8x8xf32>
    %99 = vector.shape_cast %98 : vector<1x8x8xf32> to vector<8x8xf32>
    %cst_114 = arith.constant dense<0.000000e+00> : vector<256x8xf32>
    %100 = tpu.matmul %97, %99, %cst_114 {dimension_numbers = #tpu.dot_dimension_numbers<[1], [0], [0], [1], [0, 0, 1, 1], [], []>} : vector<256x8xf32>, vector<8x8xf32>, vector<256x8xf32> -> vector<256x8xf32>
    %101 = arith.addf %95, %100 : vector<256x8xf32>
    %c1_115 = arith.constant 1 : index
    %c1_116 = arith.constant 1 : index
    %c0_117 = arith.constant 0 : index
    %102 = vector.load %arg7[%c1_115, %c1_116, %c0_117] : memref<18x18x8xf32, #tpu.memory_space<vmem>>, vector<16x16x8xf32>
    %103 = vector.shape_cast %102 : vector<16x16x8xf32> to vector<256x8xf32>
    %c4_118 = arith.constant 4 : index
    %c0_119 = arith.constant 0 : index
    %c0_120 = arith.constant 0 : index
    %104 = vector.load %arg3[%c4_118, %c0_119, %c0_120] : memref<9x8x8xf32, #tpu.memory_space<vmem>>, vector<1x8x8xf32>
    %105 = vector.shape_cast %104 : vector<1x8x8xf32> to vector<8x8xf32>
    %cst_121 = arith.constant dense<0.000000e+00> : vector<256x8xf32>
    %106 = tpu.matmul %103, %105, %cst_121 {dimension_numbers = #tpu.dot_dimension_numbers<[1], [0], [0], [1], [0, 0, 1, 1], [], []>} : vector<256x8xf32>, vector<8x8xf32>, vector<256x8xf32> -> vector<256x8xf32>
    %107 = arith.addf %101, %106 : vector<256x8xf32>
    %c1_122 = arith.constant 1 : index
    %c2_123 = arith.constant 2 : index
    %c0_124 = arith.constant 0 : index
    %108 = vector.load %arg7[%c1_122, %c2_123, %c0_124] : memref<18x18x8xf32, #tpu.memory_space<vmem>>, vector<16x16x8xf32>
    %109 = vector.shape_cast %108 : vector<16x16x8xf32> to vector<256x8xf32>
    %c5_125 = arith.constant 5 : index
    %c0_126 = arith.constant 0 : index
    %c0_127 = arith.constant 0 : index
    %110 = vector.load %arg3[%c5_125, %c0_126, %c0_127] : memref<9x8x8xf32, #tpu.memory_space<vmem>>, vector<1x8x8xf32>
    %111 = vector.shape_cast %110 : vector<1x8x8xf32> to vector<8x8xf32>
    %cst_128 = arith.constant dense<0.000000e+00> : vector<256x8xf32>
    %112 = tpu.matmul %109, %111, %cst_128 {dimension_numbers = #tpu.dot_dimension_numbers<[1], [0], [0], [1], [0, 0, 1, 1], [], []>} : vector<256x8xf32>, vector<8x8xf32>, vector<256x8xf32> -> vector<256x8xf32>
    %113 = arith.addf %107, %112 : vector<256x8xf32>
    %c2_129 = arith.constant 2 : index
    %c0_130 = arith.constant 0 : index
    %c0_131 = arith.constant 0 : index
    %114 = vector.load %arg7[%c2_129, %c0_130, %c0_131] : memref<18x18x8xf32, #tpu.memory_space<vmem>>, vector<16x16x8xf32>
    %115 = vector.shape_cast %114 : vector<16x16x8xf32> to vector<256x8xf32>
    %c6_132 = arith.constant 6 : index
    %c0_133 = arith.constant 0 : index
    %c0_134 = arith.constant 0 : index
    %116 = vector.load %arg3[%c6_132, %c0_133, %c0_134] : memref<9x8x8xf32, #tpu.memory_space<vmem>>, vector<1x8x8xf32>
    %117 = vector.shape_cast %116 : vector<1x8x8xf32> to vector<8x8xf32>
    %cst_135 = arith.constant dense<0.000000e+00> : vector<256x8xf32>
    %118 = tpu.matmul %115, %117, %cst_135 {dimension_numbers = #tpu.dot_dimension_numbers<[1], [0], [0], [1], [0, 0, 1, 1], [], []>} : vector<256x8xf32>, vector<8x8xf32>, vector<256x8xf32> -> vector<256x8xf32>
    %119 = arith.addf %113, %118 : vector<256x8xf32>
    %c2_136 = arith.constant 2 : index
    %c1_137 = arith.constant 1 : index
    %c0_138 = arith.constant 0 : index
    %120 = vector.load %arg7[%c2_136, %c1_137, %c0_138] : memref<18x18x8xf32, #tpu.memory_space<vmem>>, vector<16x16x8xf32>
    %121 = vector.shape_cast %120 : vector<16x16x8xf32> to vector<256x8xf32>
    %c7_139 = arith.constant 7 : index
    %c0_140 = arith.constant 0 : index
    %c0_141 = arith.constant 0 : index
    %122 = vector.load %arg3[%c7_139, %c0_140, %c0_141] : memref<9x8x8xf32, #tpu.memory_space<vmem>>, vector<1x8x8xf32>
    %123 = vector.shape_cast %122 : vector<1x8x8xf32> to vector<8x8xf32>
    %cst_142 = arith.constant dense<0.000000e+00> : vector<256x8xf32>
    %124 = tpu.matmul %121, %123, %cst_142 {dimension_numbers = #tpu.dot_dimension_numbers<[1], [0], [0], [1], [0, 0, 1, 1], [], []>} : vector<256x8xf32>, vector<8x8xf32>, vector<256x8xf32> -> vector<256x8xf32>
    %125 = arith.addf %119, %124 : vector<256x8xf32>
    %c2_143 = arith.constant 2 : index
    %c2_144 = arith.constant 2 : index
    %c0_145 = arith.constant 0 : index
    %126 = vector.load %arg7[%c2_143, %c2_144, %c0_145] : memref<18x18x8xf32, #tpu.memory_space<vmem>>, vector<16x16x8xf32>
    %127 = vector.shape_cast %126 : vector<16x16x8xf32> to vector<256x8xf32>
    %c8_146 = arith.constant 8 : index
    %c0_147 = arith.constant 0 : index
    %c0_148 = arith.constant 0 : index
    %128 = vector.load %arg3[%c8_146, %c0_147, %c0_148] : memref<9x8x8xf32, #tpu.memory_space<vmem>>, vector<1x8x8xf32>
    %129 = vector.shape_cast %128 : vector<1x8x8xf32> to vector<8x8xf32>
    %cst_149 = arith.constant dense<0.000000e+00> : vector<256x8xf32>
    %130 = tpu.matmul %127, %129, %cst_149 {dimension_numbers = #tpu.dot_dimension_numbers<[1], [0], [0], [1], [0, 0, 1, 1], [], []>} : vector<256x8xf32>, vector<8x8xf32>, vector<256x8xf32> -> vector<256x8xf32>
    %131 = arith.addf %125, %130 : vector<256x8xf32>
    %132 = vector.broadcast %1 : vector<1x8xf32> to vector<256x8xf32>
    %133 = arith.addf %131, %132 : vector<256x8xf32>
    %c0_150 = arith.constant 0 : index
    %c1_151 = arith.constant 1 : index
    %c1_152 = arith.constant 1 : index
    %c0_153 = arith.constant 0 : index
    %134 = vector.load %arg1[%c0_150, %c1_151, %c1_152, %c0_153] : memref<1x18x18x4xf32, #tpu.memory_space<vmem>>, vector<1x16x16x4xf32>
    %135 = vector.shape_cast %134 : vector<1x16x16x4xf32> to vector<16x16x4xf32>
    %136 = vector.shape_cast %135 : vector<16x16x4xf32> to vector<256x4xf32>
    %c0_154 = arith.constant 0 : index
    %c0_155 = arith.constant 0 : index
    %137 = vector.load %arg4[%c0_154, %c0_155] : memref<4x8xf32, #tpu.memory_space<vmem>>, vector<4x8xf32>
    %cst_156 = arith.constant dense<0.000000e+00> : vector<256x8xf32>
    %138 = tpu.matmul %136, %137, %cst_156 {dimension_numbers = #tpu.dot_dimension_numbers<[1], [0], [0], [1], [0, 0, 1, 1], [], []>} : vector<256x4xf32>, vector<4x8xf32>, vector<256x8xf32> -> vector<256x8xf32>
    %139 = vector.broadcast %2 : vector<1x8xf32> to vector<256x8xf32>
    %140 = arith.addf %138, %139 : vector<256x8xf32>
    %141 = arith.addf %133, %140 : vector<256x8xf32>
    %cst_157 = arith.constant 0.000000e+00 : f32
    %142 = vector.broadcast %cst_157 : f32 to vector<256x8xf32>
    %143 = arith.maximumf %141, %142 : vector<256x8xf32>
    %144 = vector.shape_cast %143 : vector<256x8xf32> to vector<16x16x8xf32>
    %c0_158 = arith.constant 0 : index
    %c0_159 = arith.constant 0 : index
    %c0_160 = arith.constant 0 : index
    %c0_161 = arith.constant 0 : index
    %145 = vector.load %arg6[%c0_158, %c0_159, %c0_160, %c0_161] : memref<1x16x16x8xf32, #tpu.memory_space<vmem>>, vector<1x16x16x8xf32>
    %146 = vector.shape_cast %145 : vector<1x16x16x8xf32> to vector<16x16x8xf32>
    %147 = vector.shape_cast %144 : vector<16x16x8xf32> to vector<1x16x16x8xf32>
    tpu.vector_store %arg6[%c0_158, %c0_159, %c0_160, %c0_161], %147 {strides = array<i32>} : memref<1x16x16x8xf32, #tpu.memory_space<vmem>>, vector<1x16x16x8xf32>,
    return
  }
  func.func @transform_0(%arg0: i32) -> (i32, i32, i32, i32) {
    %c0_i32 = arith.constant 0 : i32
    %c0_i32_0 = arith.constant 0 : i32
    %c0_i32_1 = arith.constant 0 : i32
    %c0_i32_2 = arith.constant 0 : i32
    return %arg0, %c0_i32, %c0_i32_0, %c0_i32_1 : i32, i32, i32, i32
  }
  func.func @transform_1(%arg0: i32) -> (i32, i32, i32) {
    %c0_i32 = arith.constant 0 : i32
    %c0_i32_0 = arith.constant 0 : i32
    %c0_i32_1 = arith.constant 0 : i32
    %c0_i32_2 = arith.constant 0 : i32
    return %c0_i32, %c0_i32_0, %c0_i32_1 : i32, i32, i32
  }
  func.func @transform_2(%arg0: i32) -> (i32, i32, i32) {
    %c0_i32 = arith.constant 0 : i32
    %c0_i32_0 = arith.constant 0 : i32
    %c0_i32_1 = arith.constant 0 : i32
    %c0_i32_2 = arith.constant 0 : i32
    return %c0_i32, %c0_i32_0, %c0_i32_1 : i32, i32, i32
  }
  func.func @transform_3(%arg0: i32) -> (i32, i32) {
    %c0_i32 = arith.constant 0 : i32
    %c0_i32_0 = arith.constant 0 : i32
    %c0_i32_1 = arith.constant 0 : i32
    return %c0_i32, %c0_i32_0 : i32, i32
  }
  func.func @transform_4(%arg0: i32) -> (i32, i32) {
    %c0_i32 = arith.constant 0 : i32
    %c0_i32_0 = arith.constant 0 : i32
    %c0_i32_1 = arith.constant 0 : i32
    return %c0_i32, %c0_i32_0 : i32, i32
  }
  func.func @transform_5(%arg0: i32) -> (i32, i32, i32, i32) {
    %c0_i32 = arith.constant 0 : i32
    %c0_i32_0 = arith.constant 0 : i32
    %c0_i32_1 = arith.constant 0 : i32
    %c0_i32_2 = arith.constant 0 : i32
    return %arg0, %c0_i32, %c0_i32_0, %c0_i32_1 : i32, i32, i32, i32
  }
}

</mosaic_0001>

<bundles_post_ra>
// kernel: tpu_custom_call.1
= control target key start
LH: loop header
LB: loop body
LE: loop exit
PB: predicated region body
PF: predicated region fallthrough
CT: control target
= control target key end

     0   :  { %s10899_s18 = smov 0   ;;  %s12972_s0 = inlined_call_operand.vmem [shape: f32[2,18,18,4], index: 0, kind: input, shape index: {}]   ;;  %s12973_s1 = inlined_call_operand.vmem [shape: f32[9,4,8], index: 1, kind: input, shape index: {}]   ;;  %s12974_s2 = inlined_call_operand.vmem [shape: f32[9,8,8], index: 2, kind: input, shape index: {}]   ;;  %s12975_s3 = inlined_call_operand.vmem [shape: f32[4,8], index: 3, kind: input, shape index: {}]   ;;  %s12976_s4 = inlined_call_operand.vmem [shape: f32[3,8], index: 4, kind: input, shape index: {}]   ;;  %s12977_s5 = inlined_call_operand.vmem [shape: f32[2,16,16,8], index: 5, kind: output, shape index: {}]  }
   0x1 LB: > { %s7791_s19 = sadd.s32 4294967295, %s10866_s18   ;;  %p7795_p0 = scmp.ge.s32.totalorder %s10866_s18, 1  ;;  %s10866_s18 = sphi %s10899_s18, %s15_s18  }
   0x2   : > { %p187_p1 = scmp.lt.s32.totalorder %s10866_s18, 3 }
   0x4   : > { %p188_p2 = pnand %p7795_p0, %p187_p1 }
   0x6   : > { %191 = sbr.rel (%p188_p2) target bundleno = 1609 (0x649), region = 40 }
   0xd   : > { %v7799_v0 = vld [vmem:[%s12973_s1 + $0x4] sm:$0xf]  ;;  %vm392_vm0 = vcmask 1043456   ;;  %p215_p3 = scmp.lt.s32.totalorder %s7791_s19, 1  ;;  %v260_v1 = vld [vmem:[%s12973_s1] sm:$0xf] }
   0xe   : > { %9290 = vmatprep.subr.msk.mxu0 %vm392_vm0, %v7799_v0  ;;  %vm295_vm1 = vcmask 31744   ;;  %v10933_v5 = vld [vmem:[%s12973_s1 + $0x8] sm:$0xf]  ;;  %v11095_v38 = vld [vmem:[%s12973_s1 + $0xc] sm:$0xf]  ;;  %vm3745_vm2 = vcmask 64512  }
   0xf   : > { %9291 = vmatpush3.msk.msra.mxu0 %vm392_vm0, %v7799_v0  ;;  %s13275_s19 = smov (!%p215_p3, %s7791_s19), 1  ;;  %vm3748_vm3 = vcmask 58368   ;;  %vm3754_vm4 = vcmask 57344  }
  0x10   : > { %9340 = vmatprep.subr.msk.mxu0 %vm392_vm0, %v260_v1  ;;  %s10850_s24 = smul.u32 432, %s13275_s19  ;;  %s8662_s22 = sshll.u32 %s13275_s19, 8 }
  0x11   : > { %s12849_s25 = scalar_lea.vmem %s12977_s5, %s8662_s22 }
  0x12   : > { %s10922_s27 = scalar_lea.vmem %s12972_s0, %s10850_s24 }
  0x13   : > { %v261_v2 = vld [vmem:[%s10922_s27 + $0x1] sm:$0xff]  ;;  %v262_v3 = vld [vmem:[%s10922_s27 + $0x9] sm:$0xff]  ;;  %v10927_v4 = vld [vmem:[%s10922_s27 + $0x19] sm:$0xff] }
  0x14   : > { %9292 = vmatprep.mubr.msk.f32.mxu0 %vm295_vm1, %v261_v2  ;;  %v10940_v6 = vld [vmem:[%s10922_s27 + $0x21] sm:$0xff]  ;;  %v10943_v7 = vld [vmem:[%s10922_s27 + $0x31] sm:$0xff]  ;;  %v10952_v8 = vld [vmem:[%s10922_s27 + $0x39] sm:$0xff] }
  0x15   : > { %9293 = vmatmul.mubr.msk.f32.vlgmr.msra.gmra.mrb[0].mxu0 %vm295_vm1, %v262_v3  ;;  %v10955_v9 = vld [vmem:[%s10922_s27 + $0x49] sm:$0xff]  ;;  %v10962_v10 = vld [vmem:[%s10922_s27 + $0x51] sm:$0xff]  ;;  %v10965_v11 = vld [vmem:[%s10922_s27 + $0x61] sm:$0xff] }
  0x16   : > { %9341 = vmatpush3.msk.msra.mxu0 %vm392_vm0, %v260_v1  ;;  %9295 = vmatprep.mubr.msk.f32.mxu0 %vm295_vm1, %v10927_v4  ;;  %v10972_v12 = vld [vmem:[%s10922_s27 + $0x69] sm:$0xff]  ;;  %v10975_v13 = vld [vmem:[%s10922_s27 + $0x79] sm:$0xff]  ;;  %v10982_v14 = vld [vmem:[%s10922_s27 + $0x81] sm:$0xff] }
  0x17   : > { %9390 = vmatprep.subr.msk.mxu0 %vm392_vm0, %v10933_v5  ;;  %v10985_v15 = vld [vmem:[%s10922_s27 + $0x91] sm:$0xff]  ;;  %v10992_v16 = vld [vmem:[%s10922_s27 + $0x99] sm:$0xff]  ;;  %v10995_v17 = vld [vmem:[%s10922_s27 + $0xa9] sm:$0xff] }
  0x18   : > { %v11002_v18 = vld [vmem:[%s10922_s27 + $0xb1] sm:$0xff]  ;;  %v11005_v19 = vld [vmem:[%s10922_s27 + $0xc1] sm:$0xff]  ;;  %v11012_v20 = vld [vmem:[%s10922_s27 + $0xc9] sm:$0xff] }
  0x19   : > { %9296 = vmatmul.mubr.msk.f32.gmra.mrb[2].mxu0 %vm295_vm1, %v10940_v6  ;;  %v11015_v21 = vld [vmem:[%s10922_s27 + $0xd9] sm:$0xff]  ;;  %v11022_v22 = vld [vmem:[%s10922_s27 + $0xe1] sm:$0xff]  ;;  %v11025_v23 = vld [vmem:[%s10922_s27 + $0xf1] sm:$0xff] }
  0x1a   : > { %9298 = vmatprep.mubr.msk.f32.mxu0 %vm295_vm1, %v10943_v7  ;;  %v11032_v24 = vld [vmem:[%s10922_s27 + $0xf9] sm:$0xff]  ;;  %v11035_v25 = vld [vmem:[%s10922_s27 + $0x109] sm:$0xff]  ;;  %v11042_v26 = vld [vmem:[%s10922_s27 + $0x111] sm:$0xff] }
  0x1b   : > { %v11045_v27 = vld [vmem:[%s10922_s27 + $0x121] sm:$0xff]  ;;  %v11052_v28 = vld [vmem:[%s10922_s27 + $0x129] sm:$0xff]  ;;  %v11055_v29 = vld [vmem:[%s10922_s27 + $0x139] sm:$0xff] }
  0x1c   : > { %13094 = vst [vmem:[#allocation3_spill] sm:$0xff] %v11045_v27  ;;  %13095 = vst [vmem:[#allocation4_spill] sm:$0xff] %v11052_v28  ;;  %v11062_v30 = vld [vmem:[%s10922_s27 + $0x141] sm:$0xff]  ;;  %v11065_v31 = vld [vmem:[%s10922_s27 + $0x151] sm:$0xff] }
  0x1d   : > { %9299 = vmatmul.mubr.msk.f32.gmra.mrb[4].mxu0 %vm295_vm1, %v10952_v8  ;;  %13096 = vst [vmem:[#allocation5_spill] sm:$0xff] %v11055_v29  ;;  %13097 = vst [vmem:[#allocation6_spill] sm:$0xff] %v11062_v30  ;;  %v11072_v32 = vld [vmem:[%s10922_s27 + $0x159] sm:$0xff]  ;;  %v11075_v33 = vld [vmem:[%s10922_s27 + $0x169] sm:$0xff] }
  0x1e   : > { %9301 = vmatprep.mubr.msk.f32.mxu0 %vm295_vm1, %v10955_v9  ;;  %13098 = vst [vmem:[#allocation7_spill] sm:$0xff] %v11065_v31  ;;  %13099 = vst [vmem:[#allocation8_spill] sm:$0xff] %v11072_v32  ;;  %v11082_v34 = vld [vmem:[%s10922_s27 + $0x171] sm:$0xff]  ;;  %v228_v35 = vld [vmem:[%s10922_s27] sm:$0xff] }
  0x1f   : > { %13100 = vst [vmem:[#allocation9_spill] sm:$0xff] %v11075_v33  ;;  %13101 = vst [vmem:[#allocation10_spill] sm:$0xff] %v11082_v34  ;;  %v229_v36 = vld [vmem:[%s10922_s27 + $0x8] sm:$0xff]  ;;  %v11090_v37 = vld [vmem:[%s10922_s27 + $0x18] sm:$0xff] }
  0x20   : > { %v11103_v39 = vld [vmem:[%s10922_s27 + $0x20] sm:$0xff]  ;;  %v11106_v40 = vld [vmem:[%s10922_s27 + $0x30] sm:$0xff]  ;;  %v11115_v41 = vld [vmem:[%s10922_s27 + $0x38] sm:$0xff] }
  0x21   : > { %9302 = vmatmul.mubr.msk.f32.gmra.mrb[6].mxu0 %vm295_vm1, %v10962_v10  ;;  %v11118_v42 = vld [vmem:[%s10922_s27 + $0x48] sm:$0xff]  ;;  %v11125_v43 = vld [vmem:[%s10922_s27 + $0x50] sm:$0xff]  ;;  %v11128_v44 = vld [vmem:[%s10922_s27 + $0x60] sm:$0xff] }
  0x22   : > { %9304 = vmatprep.mubr.msk.f32.mxu0 %vm295_vm1, %v10965_v11  ;;  %v11135_v45 = vld [vmem:[%s10922_s27 + $0x68] sm:$0xff]  ;;  %v11138_v46 = vld [vmem:[%s10922_s27 + $0x78] sm:$0xff]  ;;  %v11145_v47 = vld [vmem:[%s10922_s27 + $0x80] sm:$0xff] }
  0x23   : > { %v11148_v48 = vld [vmem:[%s10922_s27 + $0x90] sm:$0xff]  ;;  %v11155_v49 = vld [vmem:[%s10922_s27 + $0x98] sm:$0xff]  ;;  %v11158_v50 = vld [vmem:[%s10922_s27 + $0xa8] sm:$0xff] }
  0x24   : > { %v11165_v51 = vld [vmem:[%s10922_s27 + $0xb0] sm:$0xff]  ;;  %v11168_v52 = vld [vmem:[%s10922_s27 + $0xc0] sm:$0xff]  ;;  %v11175_v53 = vld [vmem:[%s10922_s27 + $0xc8] sm:$0xff] }
  0x25   : > { %9305 = vmatmul.mubr.msk.f32.gmra.mrb[8].mxu0 %vm295_vm1, %v10972_v12  ;;  %v11178_v54 = vld [vmem:[%s10922_s27 + $0xd8] sm:$0xff]  ;;  %v11185_v55 = vld [vmem:[%s10922_s27 + $0xe0] sm:$0xff]  ;;  %v11188_v56 = vld [vmem:[%s10922_s27 + $0xf0] sm:$0xff] }
  0x26   : > { %9307 = vmatprep.mubr.msk.f32.mxu0 %vm295_vm1, %v10975_v13  ;;  %v11195_v57 = vld [vmem:[%s10922_s27 + $0xf8] sm:$0xff]  ;;  %v11198_v58 = vld [vmem:[%s10922_s27 + $0x108] sm:$0xff]  ;;  %v11205_v59 = vld [vmem:[%s10922_s27 + $0x110] sm:$0xff] }
  0x27   : > { %v11208_v60 = vld [vmem:[%s10922_s27 + $0x120] sm:$0xff]  ;;  %v11215_v61 = vld [vmem:[%s10922_s27 + $0x128] sm:$0xff]  ;;  %v11218_v62 = vld [vmem:[%s10922_s27 + $0x138] sm:$0xff] }
  0x28   : > { %v11225_v63 = vld [vmem:[%s10922_s27 + $0x140] sm:$0xff]  ;;  %v11228_v0 = vld [vmem:[%s10922_s27 + $0x150] sm:$0xff]  ;;  %v11235_v1 = vld [vmem:[%s10922_s27 + $0x158] sm:$0xff] }
  0x29   : > { %9308 = vmatmul.mubr.msk.f32.gmra.mrb[10].mxu0 %vm295_vm1, %v10982_v14  ;;  %v11238_v2 = vld [vmem:[%s10922_s27 + $0x168] sm:$0xff]  ;;  %v11245_v3 = vld [vmem:[%s10922_s27 + $0x170] sm:$0xff] }
  0x2a   : > { %9310 = vmatprep.mubr.msk.f32.mxu0 %vm295_vm1, %v10985_v15 }
  0x2d   : > { %9311 = vmatmul.mubr.msk.f32.gmra.mrb[12].mxu0 %vm295_vm1, %v10992_v16 }
  0x2e   : > { %9313 = vmatprep.mubr.msk.f32.mxu0 %vm295_vm1, %v10995_v17 }
  0x31   : > { %9314 = vmatmul.mubr.msk.f32.gmra.mrb[14].mxu0 %vm295_vm1, %v11002_v18 }
  0x32   : > { %9316 = vmatprep.mubr.msk.f32.mxu0 %vm295_vm1, %v11005_v19 }
  0x35   : > { %9317 = vmatmul.mubr.msk.f32.gmra.mrb[16].mxu0 %vm295_vm1, %v11012_v20 }
  0x36   : > { %9319 = vmatprep.mubr.msk.f32.mxu0 %vm295_vm1, %v11015_v21 }
  0x39   : > { %9320 = vmatmul.mubr.msk.f32.gmra.mrb[18].mxu0 %vm295_vm1, %v11022_v22 }
  0x3a   : > { %9322 = vmatprep.mubr.msk.f32.mxu0 %vm295_vm1, %v11025_v23 }
  0x3d   : > { %9323 = vmatmul.mubr.msk.f32.gmra.mrb[20].mxu0 %vm295_vm1, %v11032_v24 }
  0x3e   : > { %9325 = vmatprep.mubr.msk.f32.mxu0 %vm295_vm1, %v11035_v25 }
  0x41   : > { %9326 = vmatmul.mubr.msk.f32.gmra.mrb[22].mxu0 %vm295_vm1, %v11042_v26 }
  0x42   : > { %9328 = vmatprep.mubr.msk.f32.mxu0 %vm295_vm1, %v11045_v27 }
  0x45   : > { %9329 = vmatmul.mubr.msk.f32.gmra.mrb[24].mxu0 %vm295_vm1, %v11052_v28 }
  0x46   : > { %9331 = vmatprep.mubr.msk.f32.mxu0 %vm295_vm1, %v11055_v29 }
  0x49   : > { %9332 = vmatmul.mubr.msk.f32.gmra.mrb[26].mxu0 %vm295_vm1, %v11062_v30 }
  0x4a   : > { %9334 = vmatprep.mubr.msk.f32.mxu0 %vm295_vm1, %v11065_v31 }
  0x4d   : > { %9335 = vmatmul.mubr.msk.f32.gmra.mrb[28].mxu0 %vm295_vm1, %v11072_v32  ;;  %v11291_v32 = vld [vmem:[%s10922_s27 + $0x62] sm:$0xff] }
  0x4e   : > { %9337 = vmatprep.mubr.msk.f32.mxu0 %vm295_vm1, %v11075_v33  ;;  %v11269_v33 = vld [vmem:[%s10922_s27 + $0x32] sm:$0xff]  ;;  %13108 = vst [vmem:[#allocation17_spill] sm:$0xff] %v11291_v32 }
  0x4f   : > { %13104 = vst [vmem:[#allocation13_spill] sm:$0xff] %v11269_v33 }
  0x51   : > { %9338 = vmatmul.mubr.msk.f32.gmra.mrb[30].mxu0 %vm295_vm1, %v11082_v34  ;;  %v11258_v34 = vld [vmem:[%s12973_s1 + $0x10] sm:$0xf] }
  0x52   : > { %9342 = vmatprep.mubr.msk.f32.mxu0 %vm295_vm1, %v228_v35  ;;  %v946_v35 = vld [vmem:[%s10922_s27 + $0xa] sm:$0xff] }
  0x55   : > { %9343 = vmatmul.mubr.msk.f32.vlgmr.msra.gmra.mrb[0].mxu0 %vm295_vm1, %v229_v36  ;;  %v11253_v36 = vld [vmem:[%s10922_s27 + $0x1a] sm:$0xff] }
  0x56   : > { %9391 = vmatpush3.msk.msra.mxu0 %vm392_vm0, %v10933_v5  ;;  %9345 = vmatprep.mubr.msk.f32.mxu0 %vm295_vm1, %v11090_v37  ;;  %v945_v5 = vld [vmem:[%s10922_s27 + $0x2] sm:$0xff]  ;;  %13102 = vst [vmem:[#allocation11_spill] sm:$0xff] %v11253_v36 }
  0x57   : > { %9440 = vmatprep.subr.msk.mxu0 %vm392_vm0, %v11095_v38 }
  0x59   : > { %9346 = vmatmul.mubr.msk.f32.gmra.mrb[2].mxu0 %vm295_vm1, %v11103_v39 }
  0x5a   : > { %9348 = vmatprep.mubr.msk.f32.mxu0 %vm295_vm1, %v11106_v40 }
  0x5d   : > { %9349 = vmatmul.mubr.msk.f32.gmra.mrb[4].mxu0 %vm295_vm1, %v11115_v41 }
  0x5e   : > { %9351 = vmatprep.mubr.msk.f32.mxu0 %vm295_vm1, %v11118_v42 }
  0x61   : > { %9352 = vmatmul.mubr.msk.f32.gmra.mrb[6].mxu0 %vm295_vm1, %v11125_v43 }
  0x62   : > { %9354 = vmatprep.mubr.msk.f32.mxu0 %vm295_vm1, %v11128_v44 }
  0x65   : > { %9355 = vmatmul.mubr.msk.f32.gmra.mrb[8].mxu0 %vm295_vm1, %v11135_v45 }
  0x66   : > { %9357 = vmatprep.mubr.msk.f32.mxu0 %vm295_vm1, %v11138_v46 }
  0x69   : > { %9358 = vmatmul.mubr.msk.f32.gmra.mrb[10].mxu0 %vm295_vm1, %v11145_v47 }
  0x6a   : > { %9360 = vmatprep.mubr.msk.f32.mxu0 %vm295_vm1, %v11148_v48 }
  0x6d   : > { %9361 = vmatmul.mubr.msk.f32.gmra.mrb[12].mxu0 %vm295_vm1, %v11155_v49 }
  0x6e   : > { %9363 = vmatprep.mubr.msk.f32.mxu0 %vm295_vm1, %v11158_v50 }
  0x71   : > { %9364 = vmatmul.mubr.msk.f32.gmra.mrb[14].mxu0 %vm295_vm1, %v11165_v51 }
  0x72   : > { %9366 = vmatprep.mubr.msk.f32.mxu0 %vm295_vm1, %v11168_v52 }
  0x75   : > { %9367 = vmatmul.mubr.msk.f32.gmra.mrb[16].mxu0 %vm295_vm1, %v11175_v53 }
  0x76   : > { %9369 = vmatprep.mubr.msk.f32.mxu0 %vm295_vm1, %v11178_v54 }
  0x79   : > { %9370 = vmatmul.mubr.msk.f32.gmra.mrb[18].mxu0 %vm295_vm1, %v11185_v55 }
  0x7a   : > { %9372 = vmatprep.mubr.msk.f32.mxu0 %vm295_vm1, %v11188_v56 }
  0x7d   : > { %9373 = vmatmul.mubr.msk.f32.gmra.mrb[20].mxu0 %vm295_vm1, %v11195_v57 }
  0x7e   : > { %9375 = vmatprep.mubr.msk.f32.mxu0 %vm295_vm1, %v11198_v58 }
  0x81   : > { %9376 = vmatmul.mubr.msk.f32.gmra.mrb[22].mxu0 %vm295_vm1, %v11205_v59 }
  0x82   : > { %9378 = vmatprep.mubr.msk.f32.mxu0 %vm295_vm1, %v11208_v60 }
  0x85   : > { %9379 = vmatmul.mubr.msk.f32.gmra.mrb[24].mxu0 %vm295_vm1, %v11215_v61 }
  0x86   : > { %9381 = vmatprep.mubr.msk.f32.mxu0 %vm295_vm1, %v11218_v62 }
  0x89   : > { %9382 = vmatmul.mubr.msk.f32.gmra.mrb[26].mxu0 %vm295_vm1, %v11225_v63 }
  0x8a   : > { %9384 = vmatprep.mubr.msk.f32.mxu0 %vm295_vm1, %v11228_v0 }
  0x8d   : > { %9385 = vmatmul.mubr.msk.f32.gmra.mrb[28].mxu0 %vm295_vm1, %v11235_v1 }
  0x8e   : > { %9387 = vmatprep.mubr.msk.f32.mxu0 %vm295_vm1, %v11238_v2 }
  0x91   : > { %9388 = vmatmul.mubr.msk.f32.gmra.mrb[30].mxu0 %vm295_vm1, %v11245_v3 }
  0x92   : > { %9392 = vmatprep.mubr.msk.f32.mxu0 %vm295_vm1, %v945_v5  ;;  %v11266_v5 = vld [vmem:[%s10922_s27 + $0x22] sm:$0xff] }
  0x93   : > { %13103 = vst [vmem:[#allocation12_spill] sm:$0xff] %v11266_v5 }
  0x95   : > { %9393 = vmatmul.mubr.msk.f32.vlgmr.msra.gmra.mrb[0].mxu0 %vm295_vm1, %v946_v35  ;;  %v11281_v35 = vld [vmem:[%s10922_s27 + $0x4a] sm:$0xff] }
  0x96   : > { %9441 = vmatpush3.msk.msra.mxu0 %vm392_vm0, %v11095_v38  ;;  %9395 = vmatprep.mubr.msk.f32.mxu0 %vm295_vm1, %v11253_v36  ;;  %v11278_v38 = vld [vmem:[%s10922_s27 + $0x3a] sm:$0xff]  ;;  %13106 = vst [vmem:[#allocation15_spill] sm:$0xff] %v11281_v35  ;;  %v11288_v36 = vld [vmem:[%s10922_s27 + $0x52] sm:$0xff] }
  0x97   : > { %9490 = vmatprep.subr.msk.mxu0 %vm392_vm0, %v11258_v34  ;;  %13105 = vst [vmem:[#allocation14_spill] sm:$0xff] %v11278_v38  ;;  %13107 = vst [vmem:[#allocation16_spill] sm:$0xff] %v11288_v36 }
  0x99   : > { %9396 = vmatmul.mubr.msk.f32.gmra.mrb[2].mxu0 %vm295_vm1, %v11266_v5  ;;  %v11301_v5 = vld [vmem:[%s10922_s27 + $0x7a] sm:$0xff] }
  0x9a   : > { %9398 = vmatprep.mubr.msk.f32.mxu0 %vm295_vm1, %v11269_v33  ;;  %v11298_v33 = vld [vmem:[%s10922_s27 + $0x6a] sm:$0xff]  ;;  %13110 = vst [vmem:[#allocation19_spill] sm:$0xff] %v11301_v5 }
  0x9b   : > { %13109 = vst [vmem:[#allocation18_spill] sm:$0xff] %v11298_v33 }
  0x9d   : > { %9399 = vmatmul.mubr.msk.f32.gmra.mrb[4].mxu0 %vm295_vm1, %v11278_v38  ;;  %v11311_v38 = vld [vmem:[%s10922_s27 + $0x92] sm:$0xff] }
  0x9e   : > { %9401 = vmatprep.mubr.msk.f32.mxu0 %vm295_vm1, %v11281_v35  ;;  %v11308_v35 = vld [vmem:[%s10922_s27 + $0x82] sm:$0xff]  ;;  %13112 = vst [vmem:[#allocation21_spill] sm:$0xff] %v11311_v38 }
  0x9f   : > { %13111 = vst [vmem:[#allocation20_spill] sm:$0xff] %v11308_v35 }
  0xa1   : > { %9402 = vmatmul.mubr.msk.f32.gmra.mrb[6].mxu0 %vm295_vm1, %v11288_v36  ;;  %v11321_v36 = vld [vmem:[%s10922_s27 + $0xaa] sm:$0xff] }
  0xa2   : > { %9404 = vmatprep.mubr.msk.f32.mxu0 %vm295_vm1, %v11291_v32  ;;  %v11318_v32 = vld [vmem:[%s10922_s27 + $0x9a] sm:$0xff]  ;;  %13114 = vst [vmem:[#allocation23_spill] sm:$0xff] %v11321_v36 }
  0xa3   : > { %13113 = vst [vmem:[#allocation22_spill] sm:$0xff] %v11318_v32 }
  0xa5   : > { %9405 = vmatmul.mubr.msk.f32.gmra.mrb[8].mxu0 %vm295_vm1, %v11298_v33  ;;  %v11331_v33 = vld [vmem:[%s10922_s27 + $0xc2] sm:$0xff] }
  0xa6   : > { %9407 = vmatprep.mubr.msk.f32.mxu0 %vm295_vm1, %v11301_v5  ;;  %v11328_v5 = vld [vmem:[%s10922_s27 + $0xb2] sm:$0xff]  ;;  %13116 = vst [vmem:[#allocation25_spill] sm:$0xff] %v11331_v33 }
  0xa7   : > { %13115 = vst [vmem:[#allocation24_spill] sm:$0xff] %v11328_v5 }
  0xa9   : > { %9408 = vmatmul.mubr.msk.f32.gmra.mrb[10].mxu0 %vm295_vm1, %v11308_v35  ;;  %v11341_v35 = vld [vmem:[%s10922_s27 + $0xda] sm:$0xff] }
  0xaa   : > { %9410 = vmatprep.mubr.msk.f32.mxu0 %vm295_vm1, %v11311_v38  ;;  %v11338_v38 = vld [vmem:[%s10922_s27 + $0xca] sm:$0xff]  ;;  %13118 = vst [vmem:[#allocation27_spill] sm:$0xff] %v11341_v35 }
  0xab   : > { %13117 = vst [vmem:[#allocation26_spill] sm:$0xff] %v11338_v38 }
  0xad   : > { %9411 = vmatmul.mubr.msk.f32.gmra.mrb[12].mxu0 %vm295_vm1, %v11318_v32  ;;  %v11351_v32 = vld [vmem:[%s10922_s27 + $0xf2] sm:$0xff] }
  0xae   : > { %9413 = vmatprep.mubr.msk.f32.mxu0 %vm295_vm1, %v11321_v36  ;;  %v11348_v36 = vld [vmem:[%s10922_s27 + $0xe2] sm:$0xff]  ;;  %13120 = vst [vmem:[#allocation29_spill] sm:$0xff] %v11351_v32 }
  0xaf   : > { %13119 = vst [vmem:[#allocation28_spill] sm:$0xff] %v11348_v36 }
  0xb1   : > { %9414 = vmatmul.mubr.msk.f32.gmra.mrb[14].mxu0 %vm295_vm1, %v11328_v5  ;;  %v11361_v5 = vld [vmem:[%s10922_s27 + $0x10a] sm:$0xff] }
  0xb2   : > { %9416 = vmatprep.mubr.msk.f32.mxu0 %vm295_vm1, %v11331_v33  ;;  %v11358_v33 = vld [vmem:[%s10922_s27 + $0xfa] sm:$0xff]  ;;  %13122 = vst [vmem:[#allocation31_spill] sm:$0xff] %v11361_v5 }
  0xb3   : > { %13121 = vst [vmem:[#allocation30_spill] sm:$0xff] %v11358_v33 }
  0xb5   : > { %9417 = vmatmul.mubr.msk.f32.gmra.mrb[16].mxu0 %vm295_vm1, %v11338_v38  ;;  %v11371_v38 = vld [vmem:[%s10922_s27 + $0x122] sm:$0xff] }
  0xb6   : > { %9419 = vmatprep.mubr.msk.f32.mxu0 %vm295_vm1, %v11341_v35  ;;  %v11368_v35 = vld [vmem:[%s10922_s27 + $0x112] sm:$0xff]  ;;  %13124 = vst [vmem:[#allocation33_spill] sm:$0xff] %v11371_v38 }
  0xb7   : > { %13123 = vst [vmem:[#allocation32_spill] sm:$0xff] %v11368_v35 }
  0xb9   : > { %9420 = vmatmul.mubr.msk.f32.gmra.mrb[18].mxu0 %vm295_vm1, %v11348_v36  ;;  %v11381_v36 = vld [vmem:[%s10922_s27 + $0x13a] sm:$0xff] }
  0xba   : > { %9422 = vmatprep.mubr.msk.f32.mxu0 %vm295_vm1, %v11351_v32  ;;  %v11378_v32 = vld [vmem:[%s10922_s27 + $0x12a] sm:$0xff]  ;;  %13125 = vst [vmem:[#allocation34_spill] sm:$0xff] %v11381_v36 }
  0xbd   : > { %9423 = vmatmul.mubr.msk.f32.gmra.mrb[20].mxu0 %vm295_vm1, %v11358_v33  ;;  %v11391_v33 = vld [vmem:[%s10922_s27 + $0x152] sm:$0xff] }
  0xbe   : > { %9425 = vmatprep.mubr.msk.f32.mxu0 %vm295_vm1, %v11361_v5  ;;  %v11388_v5 = vld [vmem:[%s10922_s27 + $0x142] sm:$0xff]  ;;  %13126 = vst [vmem:[#allocation35_spill] sm:$0xff] %v11391_v33 }
  0xc1   : > { %9426 = vmatmul.mubr.msk.f32.gmra.mrb[22].mxu0 %vm295_vm1, %v11368_v35  ;;  %v11401_v35 = vld [vmem:[%s10922_s27 + $0x16a] sm:$0xff] }
  0xc2   : > { %9428 = vmatprep.mubr.msk.f32.mxu0 %vm295_vm1, %v11371_v38  ;;  %v11398_v38 = vld [vmem:[%s10922_s27 + $0x15a] sm:$0xff]  ;;  %13127 = vst [vmem:[#allocation36_spill] sm:$0xff] %v11401_v35 }
  0xc5   : > { %9429 = vmatmul.mubr.msk.f32.gmra.mrb[24].mxu0 %vm295_vm1, %v11378_v32 }
  0xc6   : > { %9431 = vmatprep.mubr.msk.f32.mxu0 %vm295_vm1, %v11381_v36  ;;  %v11408_v36 = vld [vmem:[%s10922_s27 + $0x172] sm:$0xff] }
  0xc9   : > { %9432 = vmatmul.mubr.msk.f32.gmra.mrb[26].mxu0 %vm295_vm1, %v11388_v5 }
  0xca   : > { %9434 = vmatprep.mubr.msk.f32.mxu0 %vm295_vm1, %v11391_v33  ;;  %v8064_v33 = vld [vmem:[%s12973_s1 + $0x14] sm:$0xf] }
  0xcd   : > { %9435 = vmatmul.mubr.msk.f32.gmra.mrb[28].mxu0 %vm295_vm1, %v11398_v38 }
  0xce   : > { %9437 = vmatprep.mubr.msk.f32.mxu0 %vm295_vm1, %v11401_v35 }
  0xd1   : > { %9438 = vmatmul.mubr.msk.f32.gmra.mrb[30].mxu0 %vm295_vm1, %v11408_v36 }
  0xd2   : > { %9442 = vmatprep.mubr.msk.f32.mxu0 %vm295_vm1, %v11090_v37  ;;  %v11484_v37 = vld [vmem:[%s10922_s27 + $0x188] sm:$0xff] }
  0xd5   : > { %9443 = vmatmul.mubr.msk.f32.vlgmr.msra.gmra.mrb[0].mxu0 %vm295_vm1, %v11103_v39  ;;  %v8130_v39 = vld [vmem:[%s12973_s1 + $0x18] sm:$0xf] }
  0xd6   : > { %9491 = vmatpush3.msk.msra.mxu0 %vm392_vm0, %v11258_v34  ;;  %9445 = vmatprep.mubr.msk.f32.mxu0 %vm295_vm1, %v11106_v40  ;;  %v11477_v34 = vld [vmem:[%s10922_s27 + $0x180] sm:$0xff] }
  0xd7   : > { %9540 = vmatprep.subr.msk.mxu0 %vm392_vm0, %v8064_v33 }
  0xd9   : > { %9446 = vmatmul.mubr.msk.f32.gmra.mrb[2].mxu0 %vm295_vm1, %v11115_v41 }
  0xda   : > { %9448 = vmatprep.mubr.msk.f32.mxu0 %vm295_vm1, %v11118_v42 }
  0xdd   : > { %9449 = vmatmul.mubr.msk.f32.gmra.mrb[4].mxu0 %vm295_vm1, %v11125_v43 }
  0xde   : > { %9451 = vmatprep.mubr.msk.f32.mxu0 %vm295_vm1, %v11128_v44 }
  0xe1   : > { %9452 = vmatmul.mubr.msk.f32.gmra.mrb[6].mxu0 %vm295_vm1, %v11135_v45 }
  0xe2   : > { %9454 = vmatprep.mubr.msk.f32.mxu0 %vm295_vm1, %v11138_v46 }
  0xe5   : > { %9455 = vmatmul.mubr.msk.f32.gmra.mrb[8].mxu0 %vm295_vm1, %v11145_v47 }
  0xe6   : > { %9457 = vmatprep.mubr.msk.f32.mxu0 %vm295_vm1, %v11148_v48 }
  0xe9   : > { %9458 = vmatmul.mubr.msk.f32.gmra.mrb[10].mxu0 %vm295_vm1, %v11155_v49 }
  0xea   : > { %9460 = vmatprep.mubr.msk.f32.mxu0 %vm295_vm1, %v11158_v50 }
  0xed   : > { %9461 = vmatmul.mubr.msk.f32.gmra.mrb[12].mxu0 %vm295_vm1, %v11165_v51 }
  0xee   : > { %9463 = vmatprep.mubr.msk.f32.mxu0 %vm295_vm1, %v11168_v52 }
  0xf1   : > { %9464 = vmatmul.mubr.msk.f32.gmra.mrb[14].mxu0 %vm295_vm1, %v11175_v53 }
  0xf2   : > { %9466 = vmatprep.mubr.msk.f32.mxu0 %vm295_vm1, %v11178_v54 }
  0xf5   : > { %9467 = vmatmul.mubr.msk.f32.gmra.mrb[16].mxu0 %vm295_vm1, %v11185_v55 }
  0xf6   : > { %9469 = vmatprep.mubr.msk.f32.mxu0 %vm295_vm1, %v11188_v56 }
  0xf9   : > { %9470 = vmatmul.mubr.msk.f32.gmra.mrb[18].mxu0 %vm295_vm1, %v11195_v57 }
  0xfa   : > { %9472 = vmatprep.mubr.msk.f32.mxu0 %vm295_vm1, %v11198_v58 }
  0xfd   : > { %9473 = vmatmul.mubr.msk.f32.gmra.mrb[20].mxu0 %vm295_vm1, %v11205_v59 }
  0xfe   : > { %9475 = vmatprep.mubr.msk.f32.mxu0 %vm295_vm1, %v11208_v60 }
 0x101   : > { %9476 = vmatmul.mubr.msk.f32.gmra.mrb[22].mxu0 %vm295_vm1, %v11215_v61 }
 0x102   : > { %9478 = vmatprep.mubr.msk.f32.mxu0 %vm295_vm1, %v11218_v62 }
 0x105   : > { %9479 = vmatmul.mubr.msk.f32.gmra.mrb[24].mxu0 %vm295_vm1, %v11225_v63 }
 0x106   : > { %9481 = vmatprep.mubr.msk.f32.mxu0 %vm295_vm1, %v11228_v0 }
 0x109   : > { %9482 = vmatmul.mubr.msk.f32.gmra.mrb[26].mxu0 %vm295_vm1, %v11235_v1 }
 0x10a   : > { %9484 = vmatprep.mubr.msk.f32.mxu0 %vm295_vm1, %v11238_v2 }
 0x10d   : > { %9485 = vmatmul.mubr.msk.f32.gmra.mrb[28].mxu0 %vm295_vm1, %v11245_v3 }
 0x10e   : > { %9487 = vmatprep.mubr.msk.f32.mxu0 %vm295_vm1, %v11477_v34 }
 0x111   : > { %9488 = vmatmul.mubr.msk.f32.gmra.mrb[30].mxu0 %vm295_vm1, %v11484_v37 }
 0x112   : > { %9492 = vmatprep.mubr.msk.f32.mxu0 %vm295_vm1, %v10927_v4  ;;  %v13128_v4 = vld [vmem:[#allocation8_spill] sm:$0xff] }
 0x115   : > { %9493 = vmatmul.mubr.msk.f32.vlgmr.msra.gmra.mrb[0].mxu0 %vm295_vm1, %v10940_v6  ;;  %v13129_v6 = vld [vmem:[#allocation9_spill] sm:$0xff] }
 0x116   : > { %9541 = vmatpush3.msk.msra.mxu0 %vm392_vm0, %v8064_v33  ;;  %9495 = vmatprep.mubr.msk.f32.mxu0 %vm295_vm1, %v10943_v7  ;;  %v11552_v33 = vld [vmem:[%s10922_s27 + $0x181] sm:$0xff] }
 0x117   : > { %9590 = vmatprep.subr.msk.mxu0 %vm392_vm0, %v8130_v39  ;;  %13130 = vst [vmem:[#allocation37_spill] sm:$0xff] %v11552_v33 }
 0x119   : > { %9496 = vmatmul.mubr.msk.f32.gmra.mrb[2].mxu0 %vm295_vm1, %v10952_v8 }
 0x11a   : > { %9498 = vmatprep.mubr.msk.f32.mxu0 %vm295_vm1, %v10955_v9 }
 0x11d   : > { %9499 = vmatmul.mubr.msk.f32.gmra.mrb[4].mxu0 %vm295_vm1, %v10962_v10 }
 0x11e   : > { %9501 = vmatprep.mubr.msk.f32.mxu0 %vm295_vm1, %v10965_v11 }
 0x121   : > { %9502 = vmatmul.mubr.msk.f32.gmra.mrb[6].mxu0 %vm295_vm1, %v10972_v12 }
 0x122   : > { %9504 = vmatprep.mubr.msk.f32.mxu0 %vm295_vm1, %v10975_v13 }
 0x125   : > { %9505 = vmatmul.mubr.msk.f32.gmra.mrb[8].mxu0 %vm295_vm1, %v10982_v14 }
 0x126   : > { %9507 = vmatprep.mubr.msk.f32.mxu0 %vm295_vm1, %v10985_v15 }
 0x129   : > { %9508 = vmatmul.mubr.msk.f32.gmra.mrb[10].mxu0 %vm295_vm1, %v10992_v16 }
 0x12a   : > { %9510 = vmatprep.mubr.msk.f32.mxu0 %vm295_vm1, %v10995_v17 }
 0x12d   : > { %9511 = vmatmul.mubr.msk.f32.gmra.mrb[12].mxu0 %vm295_vm1, %v11002_v18 }
 0x12e   : > { %9513 = vmatprep.mubr.msk.f32.mxu0 %vm295_vm1, %v11005_v19 }
 0x131   : > { %9514 = vmatmul.mubr.msk.f32.gmra.mrb[14].mxu0 %vm295_vm1, %v11012_v20 }
 0x132   : > { %9516 = vmatprep.mubr.msk.f32.mxu0 %vm295_vm1, %v11015_v21 }
 0x135   : > { %9517 = vmatmul.mubr.msk.f32.gmra.mrb[16].mxu0 %vm295_vm1, %v11022_v22 }
 0x136   : > { %9519 = vmatprep.mubr.msk.f32.mxu0 %vm295_vm1, %v11025_v23 }
 0x139   : > { %9520 = vmatmul.mubr.msk.f32.gmra.mrb[18].mxu0 %vm295_vm1, %v11032_v24 }
 0x13a   : > { %9522 = vmatprep.mubr.msk.f32.mxu0 %vm295_vm1, %v11035_v25 }
 0x13d   : > { %9523 = vmatmul.mubr.msk.f32.gmra.mrb[20].mxu0 %vm295_vm1, %v11042_v26 }
 0x13e   : > { %9525 = vmatprep.mubr.msk.f32.mxu0 %vm295_vm1, %v11045_v27  ;;  %v13131_v27 = vld [vmem:[#allocation10_spill] sm:$0xff] }
 0x141   : > { %9526 = vmatmul.mubr.msk.f32.gmra.mrb[22].mxu0 %vm295_vm1, %v11052_v28  ;;  %v13143_v28 = vld [vmem:[#allocation21_spill] sm:$0xff] }
 0x142   : > { %9528 = vmatprep.mubr.msk.f32.mxu0 %vm295_vm1, %v11055_v29  ;;  %v11559_v29 = vld [vmem:[%s10922_s27 + $0x189] sm:$0xff] }
 0x143   : > { %13132 = vst [vmem:[#allocation38_spill] sm:$0xff] %v11559_v29 }
 0x145   : > { %9529 = vmatmul.mubr.msk.f32.gmra.mrb[24].mxu0 %vm295_vm1, %v11062_v30  ;;  %v13139_v30 = vld [vmem:[#allocation17_spill] sm:$0xff] }
 0x146   : > { %9531 = vmatprep.mubr.msk.f32.mxu0 %vm295_vm1, %v11065_v31  ;;  %v13133_v31 = vld [vmem:[#allocation11_spill] sm:$0xff] }
 0x149   : > { %9532 = vmatmul.mubr.msk.f32.gmra.mrb[26].mxu0 %vm295_vm1, %v13128_v4  ;;  %v13134_v4 = vld [vmem:[#allocation12_spill] sm:$0xff] }
 0x14a   : > { %9534 = vmatprep.mubr.msk.f32.mxu0 %vm295_vm1, %v13129_v6  ;;  %v8196_v6 = vld [vmem:[%s12973_s1 + $0x1c] sm:$0xf] }
 0x14d   : > { %9535 = vmatmul.mubr.msk.f32.gmra.mrb[28].mxu0 %vm295_vm1, %v13131_v27  ;;  %v13135_v27 = vld [vmem:[#allocation13_spill] sm:$0xff] }
 0x14e   : > { %9537 = vmatprep.mubr.msk.f32.mxu0 %vm295_vm1, %v11552_v33  ;;  %v13136_v33 = vld [vmem:[#allocation14_spill] sm:$0xff] }
 0x151   : > { %9538 = vmatmul.mubr.msk.f32.gmra.mrb[30].mxu0 %vm295_vm1, %v11559_v29  ;;  %v13137_v29 = vld [vmem:[#allocation15_spill] sm:$0xff] }
 0x152   : > { %9542 = vmatprep.mubr.msk.f32.mxu0 %vm295_vm1, %v13133_v31  ;;  %v13138_v31 = vld [vmem:[#allocation16_spill] sm:$0xff] }
 0x155   : > { %9543 = vmatmul.mubr.msk.f32.vlgmr.msra.gmra.mrb[0].mxu0 %vm295_vm1, %v13134_v4  ;;  %v13140_v4 = vld [vmem:[#allocation18_spill] sm:$0xff] }
 0x156   : > { %9591 = vmatpush3.msk.msra.mxu0 %vm392_vm0, %v8130_v39  ;;  %9545 = vmatprep.mubr.msk.f32.mxu0 %vm295_vm1, %v13135_v27  ;;  %v13141_v39 = vld [vmem:[#allocation19_spill] sm:$0xff]  ;;  %v13142_v27 = vld [vmem:[#allocation20_spill] sm:$0xff] }
 0x157   : > { %9640 = vmatprep.subr.msk.mxu0 %vm392_vm0, %v8196_v6 }
 0x159   : > { %9546 = vmatmul.mubr.msk.f32.gmra.mrb[2].mxu0 %vm295_vm1, %v13136_v33  ;;  %v13144_v33 = vld [vmem:[#allocation22_spill] sm:$0xff] }
 0x15a   : > { %9548 = vmatprep.mubr.msk.f32.mxu0 %vm295_vm1, %v13137_v29  ;;  %v13145_v29 = vld [vmem:[#allocation23_spill] sm:$0xff] }
 0x15d   : > { %9549 = vmatmul.mubr.msk.f32.gmra.mrb[4].mxu0 %vm295_vm1, %v13138_v31  ;;  %v13146_v31 = vld [vmem:[#allocation24_spill] sm:$0xff] }
 0x15e   : > { %9551 = vmatprep.mubr.msk.f32.mxu0 %vm295_vm1, %v13139_v30  ;;  %v13147_v30 = vld [vmem:[#allocation25_spill] sm:$0xff] }
 0x161   : > { %9552 = vmatmul.mubr.msk.f32.gmra.mrb[6].mxu0 %vm295_vm1, %v13140_v4 }
 0x162   : > { %9554 = vmatprep.mubr.msk.f32.mxu0 %vm295_vm1, %v13141_v39  ;;  %v13148_v39 = vld [vmem:[#allocation26_spill] sm:$0xff] }
 0x165   : > { %9555 = vmatmul.mubr.msk.f32.gmra.mrb[8].mxu0 %vm295_vm1, %v13142_v27  ;;  %v13149_v27 = vld [vmem:[#allocation27_spill] sm:$0xff] }
 0x166   : > { %9557 = vmatprep.mubr.msk.f32.mxu0 %vm295_vm1, %v13143_v28  ;;  %v13150_v28 = vld [vmem:[#allocation28_spill] sm:$0xff] }
 0x169   : > { %9558 = vmatmul.mubr.msk.f32.gmra.mrb[10].mxu0 %vm295_vm1, %v13144_v33  ;;  %v13151_v33 = vld [vmem:[#allocation29_spill] sm:$0xff] }
 0x16a   : > { %9560 = vmatprep.mubr.msk.f32.mxu0 %vm295_vm1, %v13145_v29  ;;  %v13152_v29 = vld [vmem:[#allocation30_spill] sm:$0xff] }
 0x16d   : > { %9561 = vmatmul.mubr.msk.f32.gmra.mrb[12].mxu0 %vm295_vm1, %v13146_v31  ;;  %v13153_v31 = vld [vmem:[#allocation31_spill] sm:$0xff] }
 0x16e   : > { %9563 = vmatprep.mubr.msk.f32.mxu0 %vm295_vm1, %v13147_v30  ;;  %v13154_v30 = vld [vmem:[#allocation32_spill] sm:$0xff] }
 0x171   : > { %9564 = vmatmul.mubr.msk.f32.gmra.mrb[14].mxu0 %vm295_vm1, %v13148_v39  ;;  %v13155_v39 = vld [vmem:[#allocation33_spill] sm:$0xff] }
 0x172   : > { %9566 = vmatprep.mubr.msk.f32.mxu0 %vm295_vm1, %v13149_v27  ;;  %v13156_v27 = vld [vmem:[#allocation34_spill] sm:$0xff] }
 0x175   : > { %9567 = vmatmul.mubr.msk.f32.gmra.mrb[16].mxu0 %vm295_vm1, %v13150_v28 }
 0x176   : > { %9569 = vmatprep.mubr.msk.f32.mxu0 %vm295_vm1, %v13151_v33  ;;  %v13157_v33 = vld [vmem:[#allocation35_spill] sm:$0xff] }
 0x179   : > { %9570 = vmatmul.mubr.msk.f32.gmra.mrb[18].mxu0 %vm295_vm1, %v13152_v29 }
 0x17a   : > { %9572 = vmatprep.mubr.msk.f32.mxu0 %vm295_vm1, %v13153_v31 }
 0x17d   : > { %9573 = vmatmul.mubr.msk.f32.gmra.mrb[20].mxu0 %vm295_vm1, %v13154_v30  ;;  %v11627_v30 = vld [vmem:[%s10922_s27 + $0x182] sm:$0xff] }
 0x17e   : > { %9575 = vmatprep.mubr.msk.f32.mxu0 %vm295_vm1, %v13155_v39 }
 0x181   : > { %9576 = vmatmul.mubr.msk.f32.gmra.mrb[22].mxu0 %vm295_vm1, %v11378_v32 }
 0x182   : > { %9578 = vmatprep.mubr.msk.f32.mxu0 %vm295_vm1, %v13156_v27  ;;  %v11634_v27 = vld [vmem:[%s10922_s27 + $0x18a] sm:$0xff] }
 0x185   : > { %9579 = vmatmul.mubr.msk.f32.gmra.mrb[24].mxu0 %vm295_vm1, %v11388_v5 }
 0x186   : > { %9581 = vmatprep.mubr.msk.f32.mxu0 %vm295_vm1, %v13157_v33 }
 0x189   : > { %9582 = vmatmul.mubr.msk.f32.gmra.mrb[26].mxu0 %vm295_vm1, %v11398_v38 }
 0x18a   : > { %9584 = vmatprep.mubr.msk.f32.mxu0 %vm295_vm1, %v11401_v35  ;;  %v8262_v35 = vld [vmem:[%s12973_s1 + $0x20] sm:$0xf] }
 0x18d   : > { %9585 = vmatmul.mubr.msk.f32.gmra.mrb[28].mxu0 %vm295_vm1, %v11408_v36 }
 0x18e   : > { %9587 = vmatprep.mubr.msk.f32.mxu0 %vm295_vm1, %v11627_v30 }
 0x191   : > { %9588 = vmatmul.mubr.msk.f32.gmra.mrb[30].mxu0 %vm295_vm1, %v11634_v27 }
 0x192   : > { %9592 = vmatprep.mubr.msk.f32.mxu0 %vm295_vm1, %v11106_v40  ;;  %v8128_v40 = vld [vmem:[%s10922_s27 + $0x198] sm:$0xff] }
 0x195   : > { %9593 = vmatmul.mubr.msk.f32.vlgmr.msra.gmra.mrb[0].mxu0 %vm295_vm1, %v11115_v41  ;;  %v8129_v41 = vld [vmem:[%s10922_s27 + $0x1a0] sm:$0xff] }
 0x196   : > { %9641 = vmatpush3.msk.msra.mxu0 %vm392_vm0, %v8196_v6  ;;  %9595 = vmatprep.mubr.msk.f32.mxu0 %vm295_vm1, %v11118_v42  ;;  %v13176_v42 = vld [vmem:[#allocation22_spill] sm:$0xff] }
 0x197   : > { %9690 = vmatprep.subr.msk.mxu0 %vm392_vm0, %v8262_v35 }
 0x199   : > { %9596 = vmatmul.mubr.msk.f32.gmra.mrb[2].mxu0 %vm295_vm1, %v11125_v43  ;;  %v13177_v43 = vld [vmem:[#allocation23_spill] sm:$0xff] }
 0x19a   : > { %9598 = vmatprep.mubr.msk.f32.mxu0 %vm295_vm1, %v11128_v44  ;;  %v13178_v44 = vld [vmem:[#allocation24_spill] sm:$0xff] }
 0x19d   : > { %9599 = vmatmul.mubr.msk.f32.gmra.mrb[4].mxu0 %vm295_vm1, %v11135_v45  ;;  %v13179_v45 = vld [vmem:[#allocation25_spill] sm:$0xff] }
 0x19e   : > { %9601 = vmatprep.mubr.msk.f32.mxu0 %vm295_vm1, %v11138_v46  ;;  %v13180_v46 = vld [vmem:[#allocation26_spill] sm:$0xff] }
 0x1a1   : > { %9602 = vmatmul.mubr.msk.f32.gmra.mrb[6].mxu0 %vm295_vm1, %v11145_v47  ;;  %v13181_v47 = vld [vmem:[#allocation27_spill] sm:$0xff] }
 0x1a2   : > { %9604 = vmatprep.mubr.msk.f32.mxu0 %vm295_vm1, %v11148_v48  ;;  %v13182_v48 = vld [vmem:[#allocation29_spill] sm:$0xff] }
 0x1a5   : > { %9605 = vmatmul.mubr.msk.f32.gmra.mrb[8].mxu0 %vm295_vm1, %v11155_v49  ;;  %v13183_v49 = vld [vmem:[#allocation32_spill] sm:$0xff] }
 0x1a6   : > { %9607 = vmatprep.mubr.msk.f32.mxu0 %vm295_vm1, %v11158_v50  ;;  %v8261_v50 = vld [vmem:[%s10922_s27 + $0x1a2] sm:$0xff] }
 0x1a9   : > { %9608 = vmatmul.mubr.msk.f32.gmra.mrb[10].mxu0 %vm295_vm1, %v11165_v51  ;;  %v10868_v51 = vmov 0.0  }
 0x1aa   : > { %9610 = vmatprep.mubr.msk.f32.mxu0 %vm295_vm1, %v11168_v52  ;;  %3746 = vst.msk [vmem:[#allocation2] sm:$0xff] %vm3745_vm2, %v10868_v51  ;;  %3747 = vst.msk [vmem:[#allocation2 + $0x8] sm:$0xff] %vm3745_vm2, %v10868_v51 }
 0x1ab   : > { %3751 = vst.msk [vmem:[#allocation2 + $0x198] sm:$0xff] %vm3745_vm2, %v10868_v51  ;;  %3752 = vst.msk [vmem:[#allocation2 + $0x1a0] sm:$0xff] %vm3745_vm2, %v10868_v51 }
 0x1ac   : > { %3749 = vst.msk [vmem:[#allocation2 + $0x10] sm:$0x3] %vm3748_vm3, %v10868_v51  ;;  %3753 = vst.msk [vmem:[#allocation2 + $0x1a8] sm:$0x3] %vm3748_vm3, %v10868_v51 }
 0x1ad   : > { %9611 = vmatmul.mubr.msk.f32.gmra.mrb[12].mxu0 %vm295_vm1, %v11175_v53  ;;  %3755 = vst.msk [vmem:[#allocation2] sm:$0x1] %vm3754_vm4, %v10868_v51  ;;  %3756 = vst.msk [vmem:[#allocation2 + $0x18] sm:$0x1] %vm3754_vm4, %v10868_v51  ;;  %v11884_v53 = vld [vmem:[%s12974_s2] sm:$0xff] }
 0x1ae   : > { %9613 = vmatprep.mubr.msk.f32.mxu0 %vm295_vm1, %v11178_v54  ;;  %3757 = vst.msk [vmem:[#allocation2 + $0x30] sm:$0x1] %vm3754_vm4, %v10868_v51  ;;  %3758 = vst.msk [vmem:[#allocation2 + $0x48] sm:$0x1] %vm3754_vm4, %v10868_v51  ;;  %v11890_v54 = vld [vmem:[%s12976_s4] ss:$0 sm:$0xff] }
 0x1af   : > { %3759 = vst.msk [vmem:[#allocation2 + $0x60] sm:$0x1] %vm3754_vm4, %v10868_v51  ;;  %3760 = vst.msk [vmem:[#allocation2 + $0x78] sm:$0x1] %vm3754_vm4, %v10868_v51 }
 0x1b0   : > { %3761 = vst.msk [vmem:[#allocation2 + $0x90] sm:$0x1] %vm3754_vm4, %v10868_v51  ;;  %3762 = vst.msk [vmem:[#allocation2 + $0xa8] sm:$0x1] %vm3754_vm4, %v10868_v51 }
 0x1b1   : > { %9614 = vmatmul.mubr.msk.f32.gmra.mrb[14].mxu0 %vm295_vm1, %v11185_v55  ;;  %3763 = vst.msk [vmem:[#allocation2 + $0xc0] sm:$0x1] %vm3754_vm4, %v10868_v51  ;;  %3764 = vst.msk [vmem:[#allocation2 + $0xd8] sm:$0x1] %vm3754_vm4, %v10868_v51 }
 0x1b2   : > { %9616 = vmatprep.mubr.msk.f32.mxu0 %vm295_vm1, %v11188_v56  ;;  %3765 = vst.msk [vmem:[#allocation2 + $0xf0] sm:$0x1] %vm3754_vm4, %v10868_v51  ;;  %3766 = vst.msk [vmem:[#allocation2 + $0x108] sm:$0x1] %vm3754_vm4, %v10868_v51 }
 0x1b3   : > { %3767 = vst.msk [vmem:[#allocation2 + $0x120] sm:$0x1] %vm3754_vm4, %v10868_v51  ;;  %3768 = vst.msk [vmem:[#allocation2 + $0x138] sm:$0x1] %vm3754_vm4, %v10868_v51  ;;  %v3858_v52 = vld [vmem:[#allocation2 + $0x9] sm:$0xff] }
 0x1b4   : > { %3769 = vst.msk [vmem:[#allocation2 + $0x150] sm:$0x1] %vm3754_vm4, %v10868_v51  ;;  %3770 = vst.msk [vmem:[#allocation2 + $0x168] sm:$0x1] %vm3754_vm4, %v10868_v51 }
 0x1b5   : > { %9617 = vmatmul.mubr.msk.f32.gmra.mrb[16].mxu0 %vm295_vm1, %v11195_v57  ;;  %3771 = vst.msk [vmem:[#allocation2 + $0x180] sm:$0x1] %vm3754_vm4, %v10868_v51  ;;  %3772 = vst.msk [vmem:[#allocation2 + $0x198] sm:$0x1] %vm3754_vm4, %v10868_v51 }
 0x1b6   : > { %9619 = vmatprep.mubr.msk.f32.mxu0 %vm295_vm1, %v11198_v58  ;;  %3773 = vst.msk [vmem:[#allocation2 + $0x11] sm:$0x1] %vm3754_vm4, %v10868_v51  ;;  %3774 = vst.msk [vmem:[#allocation2 + $0x29] sm:$0x1] %vm3754_vm4, %v10868_v51 }
 0x1b7   : > { %3775 = vst.msk [vmem:[#allocation2 + $0x41] sm:$0x1] %vm3754_vm4, %v10868_v51  ;;  %3776 = vst.msk [vmem:[#allocation2 + $0x59] sm:$0x1] %vm3754_vm4, %v10868_v51 }
 0x1b8   : > { %3777 = vst.msk [vmem:[#allocation2 + $0x71] sm:$0x1] %vm3754_vm4, %v10868_v51  ;;  %3778 = vst.msk [vmem:[#allocation2 + $0x89] sm:$0x1] %vm3754_vm4, %v10868_v51 }
 0x1b9   : > { %9620 = vmatmul.mubr.msk.f32.gmra.mrb[18].mxu0 %vm295_vm1, %v11205_v59  ;;  %3779 = vst.msk [vmem:[#allocation2 + $0xa1] sm:$0x1] %vm3754_vm4, %v10868_v51  ;;  %3780 = vst.msk [vmem:[#allocation2 + $0xb9] sm:$0x1] %vm3754_vm4, %v10868_v51 }
 0x1ba   : > { %9622 = vmatprep.mubr.msk.f32.mxu0 %vm295_vm1, %v11208_v60  ;;  %3781 = vst.msk [vmem:[#allocation2 + $0xd1] sm:$0x1] %vm3754_vm4, %v10868_v51  ;;  %3782 = vst.msk [vmem:[#allocation2 + $0xe9] sm:$0x1] %vm3754_vm4, %v10868_v51 }
 0x1bb   : > { %3783 = vst.msk [vmem:[#allocation2 + $0x101] sm:$0x1] %vm3754_vm4, %v10868_v51  ;;  %3784 = vst.msk [vmem:[#allocation2 + $0x119] sm:$0x1] %vm3754_vm4, %v10868_v51 }
 0x1bc   : > { %3785 = vst.msk [vmem:[#allocation2 + $0x131] sm:$0x1] %vm3754_vm4, %v10868_v51  ;;  %3786 = vst.msk [vmem:[#allocation2 + $0x149] sm:$0x1] %vm3754_vm4, %v10868_v51 }
 0x1bd   : > { %9623 = vmatmul.mubr.msk.f32.gmra.mrb[20].mxu0 %vm295_vm1, %v11215_v61  ;;  %3787 = vst.msk [vmem:[#allocation2 + $0x161] sm:$0x1] %vm3754_vm4, %v10868_v51  ;;  %3788 = vst.msk [vmem:[#allocation2 + $0x179] sm:$0x1] %vm3754_vm4, %v10868_v51 }
 0x1be   : > { %9625 = vmatprep.mubr.msk.f32.mxu0 %vm295_vm1, %v11218_v62  ;;  %3789 = vst.msk [vmem:[#allocation2 + $0x191] sm:$0x1] %vm3754_vm4, %v10868_v51  ;;  %3790 = vst.msk [vmem:[#allocation2 + $0x1a9] sm:$0x1] %vm3754_vm4, %v10868_v51 }
 0x1c1   : > { %9626 = vmatmul.mubr.msk.f32.gmra.mrb[22].mxu0 %vm295_vm1, %v11225_v63 }
 0x1c2   : > { %9628 = vmatprep.mubr.msk.f32.mxu0 %vm295_vm1, %v11228_v0 }
 0x1c5   : > { %9629 = vmatmul.mubr.msk.f32.gmra.mrb[24].mxu0 %vm295_vm1, %v11235_v1 }
 0x1c6   : > { %9631 = vmatprep.mubr.msk.f32.mxu0 %vm295_vm1, %v11238_v2 }
 0x1c9   : > { %9632 = vmatmul.mubr.msk.f32.gmra.mrb[26].mxu0 %vm295_vm1, %v11245_v3 }
 0x1ca   : > { %9634 = vmatprep.mubr.msk.f32.mxu0 %vm295_vm1, %v11477_v34 }
 0x1cd   : > { %9635 = vmatmul.mubr.msk.f32.gmra.mrb[28].mxu0 %vm295_vm1, %v11484_v37 }
 0x1ce   : > { %9637 = vmatprep.mubr.msk.f32.mxu0 %vm295_vm1, %v8128_v40 }
 0x1d1   : > { %9638 = vmatmul.mubr.msk.f32.gmra.mrb[30].mxu0 %vm295_vm1, %v8129_v41 }
 0x1d2   : > { %9642 = vmatprep.mubr.msk.f32.mxu0 %vm295_vm1, %v10943_v7  ;;  %v13158_v7 = vld [vmem:[#allocation3_spill] sm:$0xff] }
 0x1d5   : > { %9643 = vmatmul.mubr.msk.f32.vlgmr.msra.gmra.mrb[0].mxu0 %vm295_vm1, %v10952_v8  ;;  %v13159_v8 = vld [vmem:[#allocation4_spill] sm:$0xff] }
 0x1d6   : > { %9691 = vmatpush3.msk.msra.mxu0 %vm392_vm0, %v8262_v35  ;;  %9645 = vmatprep.mubr.msk.f32.mxu0 %vm295_vm1, %v10955_v9  ;;  %v13160_v9 = vld [vmem:[#allocation5_spill] sm:$0xff] }
 0x1d9   : > { %9646 = vmatmul.mubr.msk.f32.gmra.mrb[2].mxu0 %vm295_vm1, %v10962_v10  ;;  %v13161_v10 = vld [vmem:[#allocation6_spill] sm:$0xff] }
 0x1da   : > { %9648 = vmatprep.mubr.msk.f32.mxu0 %vm295_vm1, %v10965_v11  ;;  %v13162_v11 = vld [vmem:[#allocation7_spill] sm:$0xff] }
 0x1dd   : > { %9649 = vmatmul.mubr.msk.f32.gmra.mrb[4].mxu0 %vm295_vm1, %v10972_v12  ;;  %v13163_v12 = vld [vmem:[#allocation8_spill] sm:$0xff] }
 0x1de   : > { %9651 = vmatprep.mubr.msk.f32.mxu0 %vm295_vm1, %v10975_v13  ;;  %v13164_v13 = vld [vmem:[#allocation9_spill] sm:$0xff] }
 0x1e1   : > { %9652 = vmatmul.mubr.msk.f32.gmra.mrb[6].mxu0 %vm295_vm1, %v10982_v14  ;;  %v13165_v14 = vld [vmem:[#allocation10_spill] sm:$0xff] }
 0x1e2   : > { %9654 = vmatprep.mubr.msk.f32.mxu0 %vm295_vm1, %v10985_v15  ;;  %v13166_v15 = vld [vmem:[#allocation37_spill] sm:$0xff] }
 0x1e5   : > { %9655 = vmatmul.mubr.msk.f32.gmra.mrb[8].mxu0 %vm295_vm1, %v10992_v16  ;;  %v8194_v16 = vld [vmem:[%s10922_s27 + $0x199] sm:$0xff] }
 0x1e6   : > { %9657 = vmatprep.mubr.msk.f32.mxu0 %vm295_vm1, %v10995_v17  ;;  %v13167_v17 = vld [vmem:[#allocation38_spill] sm:$0xff] }
 0x1e9   : > { %9658 = vmatmul.mubr.msk.f32.gmra.mrb[10].mxu0 %vm295_vm1, %v11002_v18  ;;  %v8195_v18 = vld [vmem:[%s10922_s27 + $0x1a1] sm:$0xff] }
 0x1ea   : > { %9660 = vmatprep.mubr.msk.f32.mxu0 %vm295_vm1, %v11005_v19  ;;  %v13168_v19 = vld [vmem:[#allocation13_spill] sm:$0xff] }
 0x1ed   : > { %9661 = vmatmul.mubr.msk.f32.gmra.mrb[12].mxu0 %vm295_vm1, %v11012_v20  ;;  %v13169_v20 = vld [vmem:[#allocation14_spill] sm:$0xff] }
 0x1ee   : > { %9663 = vmatprep.mubr.msk.f32.mxu0 %vm295_vm1, %v11015_v21  ;;  %v13170_v21 = vld [vmem:[#allocation15_spill] sm:$0xff] }
 0x1f1   : > { %9664 = vmatmul.mubr.msk.f32.gmra.mrb[14].mxu0 %vm295_vm1, %v11022_v22  ;;  %v13171_v22 = vld [vmem:[#allocation16_spill] sm:$0xff] }
 0x1f2   : > { %9666 = vmatprep.mubr.msk.f32.mxu0 %vm295_vm1, %v11025_v23  ;;  %v13172_v23 = vld [vmem:[#allocation17_spill] sm:$0xff] }
 0x1f5   : > { %9667 = vmatmul.mubr.msk.f32.gmra.mrb[16].mxu0 %vm295_vm1, %v11032_v24  ;;  %v13173_v24 = vld [vmem:[#allocation19_spill] sm:$0xff] }
 0x1f6   : > { %9669 = vmatprep.mubr.msk.f32.mxu0 %vm295_vm1, %v11035_v25  ;;  %v13174_v25 = vld [vmem:[#allocation20_spill] sm:$0xff] }
 0x1f9   : > { %9670 = vmatmul.mubr.msk.f32.gmra.mrb[18].mxu0 %vm295_vm1, %v11042_v26  ;;  %v13175_v26 = vld [vmem:[#allocation21_spill] sm:$0xff] }
 0x1fa   : > { %9672 = vmatprep.mubr.msk.f32.mxu0 %vm295_vm1, %v13158_v7 }
 0x1fd   : > { %9673 = vmatmul.mubr.msk.f32.gmra.mrb[20].mxu0 %vm295_vm1, %v13159_v8 }
 0x1fe   : > { %9675 = vmatprep.mubr.msk.f32.mxu0 %vm295_vm1, %v13160_v9 }
 0x201   : > { %9676 = vmatmul.mubr.msk.f32.gmra.mrb[22].mxu0 %vm295_vm1, %v13161_v10 }
 0x202   : > { %9678 = vmatprep.mubr.msk.f32.mxu0 %vm295_vm1, %v13162_v11 }
 0x205   : > { %9679 = vmatmul.mubr.msk.f32.gmra.mrb[24].mxu0 %vm295_vm1, %v13163_v12 }
 0x206   : > { %9681 = vmatprep.mubr.msk.f32.mxu0 %vm295_vm1, %v13164_v13 }
 0x209   : > { %9682 = vmatmul.mubr.msk.f32.gmra.mrb[26].mxu0 %vm295_vm1, %v13165_v14 }
 0x20a   : > { %9684 = vmatprep.mubr.msk.f32.mxu0 %vm295_vm1, %v13166_v15 }
 0x20d   : > { %9685 = vmatmul.mubr.msk.f32.gmra.mrb[28].mxu0 %vm295_vm1, %v13167_v17 }
 0x20e   : > { %9687 = vmatprep.mubr.msk.f32.mxu0 %vm295_vm1, %v8194_v16 }
 0x211   : > { %9688 = vmatmul.mubr.msk.f32.gmra.mrb[30].mxu0 %vm295_vm1, %v8195_v18 }
 0x212   : > { %9692 = vmatprep.mubr.msk.f32.mxu0 %vm295_vm1, %v13168_v19 }
 0x215   : > { %9693 = vmatmul.mubr.msk.f32.vlgmr.msra.gmra.mrb[0].mxu0 %vm295_vm1, %v13169_v20 }
 0x216   : > { %9695 = vmatprep.mubr.msk.f32.mxu0 %vm295_vm1, %v13170_v21 }
 0x219   : > { %9696 = vmatmul.mubr.msk.f32.gmra.mrb[2].mxu0 %vm295_vm1, %v13171_v22 }
 0x21a   : > { %9698 = vmatprep.mubr.msk.f32.mxu0 %vm295_vm1, %v13172_v23 }
 0x21d   : > { %9699 = vmatmul.mubr.msk.f32.gmra.mrb[4].mxu0 %vm295_vm1, %v13140_v4 }
 0x21e   : > { %9701 = vmatprep.mubr.msk.f32.mxu0 %vm295_vm1, %v13173_v24 }
 0x221   : > { %9702 = vmatmul.mubr.msk.f32.gmra.mrb[6].mxu0 %vm295_vm1, %v13174_v25 }
 0x222   : > { %9704 = vmatprep.mubr.msk.f32.mxu0 %vm295_vm1, %v13175_v26 }
 0x225   : > { %9705 = vmatmul.mubr.msk.f32.gmra.mrb[8].mxu0 %vm295_vm1, %v13176_v42 }
 0x226   : > { %9707 = vmatprep.mubr.msk.f32.mxu0 %vm295_vm1, %v13177_v43 }
 0x229   : > { %9708 = vmatmul.mubr.msk.f32.gmra.mrb[10].mxu0 %vm295_vm1, %v13178_v44 }
 0x22a   : > { %9710 = vmatprep.mubr.msk.f32.mxu0 %vm295_vm1, %v13179_v45 }
 0x22d   : > { %9711 = vmatmul.mubr.msk.f32.gmra.mrb[12].mxu0 %vm295_vm1, %v13180_v46 }
 0x22e   : > { %9713 = vmatprep.mubr.msk.f32.mxu0 %vm295_vm1, %v13181_v47 }
 0x231   : > { %9714 = vmatmul.mubr.msk.f32.gmra.mrb[14].mxu0 %vm295_vm1, %v13150_v28  ;;  %v13184_v28 = vld [vmem:[#allocation34_spill] sm:$0xff] }
 0x232   : > { %9716 = vmatprep.mubr.msk.f32.mxu0 %vm295_vm1, %v13182_v48 }
 0x235   : > { %9717 = vmatmul.mubr.msk.f32.gmra.mrb[16].mxu0 %vm295_vm1, %v13152_v29  ;;  %v13185_v29 = vld [vmem:[#allocation36_spill] sm:$0xff] }
 0x236   : > { %9719 = vmatprep.mubr.msk.f32.mxu0 %vm295_vm1, %v13153_v31 }
 0x239   : > { %9720 = vmatmul.mubr.msk.f32.gmra.mrb[18].mxu0 %vm295_vm1, %v13183_v49 }
 0x23a   : > { %9722 = vmatprep.mubr.msk.f32.mxu0 %vm295_vm1, %v13155_v39 }
 0x23d   : > { %9723 = vmatmul.mubr.msk.f32.gmra.mrb[20].mxu0 %vm295_vm1, %v11378_v32  ;;  %v8260_v32 = vld [vmem:[%s10922_s27 + $0x19a] sm:$0xff] }
 0x23e   : > { %9725 = vmatprep.mubr.msk.f32.mxu0 %vm295_vm1, %v13184_v28 }
 0x241   : > { %9726 = vmatmul.mubr.msk.f32.gmra.mrb[22].mxu0 %vm295_vm1, %v11388_v5 }
 0x242   : > { %9728 = vmatprep.mubr.msk.f32.mxu0 %vm295_vm1, %v13157_v33 }
 0x245   : > { %9729 = vmatmul.mubr.msk.f32.gmra.mrb[24].mxu0 %vm295_vm1, %v11398_v38 }
 0x246   : > { %9731 = vmatprep.mubr.msk.f32.mxu0 %vm295_vm1, %v13185_v29 }
 0x249   : > { %9732 = vmatmul.mubr.msk.f32.gmra.mrb[26].mxu0 %vm295_vm1, %v11408_v36 }
 0x24a   : > { %9734 = vmatprep.mubr.msk.f32.mxu0 %vm295_vm1, %v11627_v30  ;;  %v3857_v30 = vld [vmem:[#allocation2 + $0x1] sm:$0xff] }
 0x24d   : > { %9735 = vmatmul.mubr.msk.f32.gmra.mrb[28].mxu0 %vm295_vm1, %v11634_v27  ;;  %v8297_v27 = vld [vmem:[%s12974_s2 + $0x8] sm:$0xff] }
 0x24e   : > { %9737 = vmatprep.mubr.msk.f32.mxu0 %vm295_vm1, %v8260_v32  ;;  %9740 = vmatprep.subr.mxu0 %v8297_v27 }
 0x24f   : > { %10240 = vmatprep.subr.mxu1 %v8297_v27  ;;  %9741 = vmatpush3.msra.mxu0 %v8297_v27 }
 0x250   : > { %10241 = vmatpush3.msra.mxu1 %v8297_v27 }
 0x251   : > { %9738 = vmatmul.mubr.msk.f32.gmra.mrb[30].mxu0 %vm295_vm1, %v8261_v50  ;;  %9790 = vmatprep.subr.mxu1 %v11884_v53 }
 0x252   : > { %9742 = vmatprep.mubr.msk.f32.mxu0 %vm3745_vm2, %v3857_v30 }
 0x255   : > { %9743 = vmatmul.mubr.msk.f32.vlgmr.msra.gmra.mrb[32].mxu0 %vm3745_vm2, %v3858_v52 }
 0x2e8   : > { %v9694_v55 = vpop.f32.mrb[0].mxu0 }
 0x2e9   : > { %v3682_v56 = vadd.f32 %v9694_v55, %v11890_v54  ;;  %v3486_v57 = vpop.f32.mrb[1].mxu0 }
 0x2ea   : > { %v3681_v58 = vadd.f32 %v11890_v54, %v3486_v57 }
 0x2eb   : > { %v3714_v59 = vmax.f32 %v3682_v56, 0.0 }
 0x2ec   : > { %v3713_v60 = vmax.f32 %v3681_v58, 0.0  ;;  %v9697_v61 = vpop.f32.mrb[2].mxu0 }
 0x2ed   : > { %3793 = vst.msk [vmem:[#allocation2 + $0x21] sm:$0xff] %vm3745_vm2, %v3714_v59  ;;  %v3684_v62 = vadd.f32 %v9697_v61, %v11890_v54  ;;  %v3496_v63 = vpop.f32.mrb[3].mxu0 }
 0x2ee   : > { %3792 = vst.msk [vmem:[#allocation2 + $0x19] sm:$0xff] %vm3745_vm2, %v3713_v60  ;;  %v3683_v0 = vadd.f32 %v11890_v54, %v3496_v63 }
 0x2ef   : > { %v3716_v1 = vmax.f32 %v3684_v62, 0.0 }
 0x2f0   : > { %v3715_v2 = vmax.f32 %v3683_v0, 0.0  ;;  %v9700_v3 = vpop.f32.mrb[4].mxu0 }
 0x2f1   : > { %3795 = vst.msk [vmem:[#allocation2 + $0x39] sm:$0xff] %vm3745_vm2, %v3716_v1  ;;  %v3686_v36 = vadd.f32 %v9700_v3, %v11890_v54  ;;  %v3506_v5 = vpop.f32.mrb[5].mxu0 }
 0x2f2   : > { %3794 = vst.msk [vmem:[#allocation2 + $0x31] sm:$0xff] %vm3745_vm2, %v3715_v2  ;;  %v3685_v38 = vadd.f32 %v11890_v54, %v3506_v5 }
 0x2f3   : > { %v3718_v35 = vmax.f32 %v3686_v36, 0.0 }
 0x2f4   : > { %v3717_v34 = vmax.f32 %v3685_v38, 0.0  ;;  %v9703_v37 = vpop.f32.mrb[6].mxu0  ;;  %v11910_v39 = vld [vmem:[#allocation2 + $0x21] sm:$0xff] }
 0x2f5   : > { %3797 = vst.msk [vmem:[#allocation2 + $0x51] sm:$0xff] %vm3745_vm2, %v3718_v35  ;;  %v3688_v6 = vadd.f32 %v9703_v37, %v11890_v54  ;;  %v3516_v33 = vpop.f32.mrb[7].mxu0  ;;  %v11904_v31 = vld [vmem:[#allocation2 + $0x19] sm:$0xff]  ;;  %v11999_v37 = vld [vmem:[%s12974_s2 + $0x10] sm:$0xff] }
 0x2f6   : > { %3796 = vst.msk [vmem:[#allocation2 + $0x49] sm:$0xff] %vm3745_vm2, %v3717_v34  ;;  %v3687_v4 = vadd.f32 %v11890_v54, %v3516_v33  ;;  %9745 = vmatprep.mubr.msk.f32.mxu0 %vm3745_vm2, %v11904_v31 }
 0x2f7   : > { %v3720_v40 = vmax.f32 %v3688_v6, 0.0  ;;  %9746 = vmatmul.mubr.msk.f32.gmra.mrb[34].mxu0 %vm3745_vm2, %v11910_v39 }
 0x2f8   : > { %v3719_v41 = vmax.f32 %v3687_v4, 0.0  ;;  %v9706_v7 = vpop.f32.mrb[8].mxu0  ;;  %v11922_v12 = vld [vmem:[#allocation2 + $0x39] sm:$0xff] }
 0x2f9   : > { %3799 = vst.msk [vmem:[#allocation2 + $0x69] sm:$0xff] %vm3745_vm2, %v3720_v40  ;;  %v3690_v8 = vadd.f32 %v9706_v7, %v11890_v54  ;;  %v3526_v9 = vpop.f32.mrb[9].mxu0  ;;  %v11916_v10 = vld [vmem:[#allocation2 + $0x31] sm:$0xff] }
 0x2fa   : > { %3798 = vst.msk [vmem:[#allocation2 + $0x61] sm:$0xff] %vm3745_vm2, %v3719_v41  ;;  %v3689_v11 = vadd.f32 %v11890_v54, %v3526_v9  ;;  %9748 = vmatprep.mubr.msk.f32.mxu0 %vm3745_vm2, %v11916_v10 }
 0x2fb   : > { %v3722_v13 = vmax.f32 %v3690_v8, 0.0  ;;  %9749 = vmatmul.mubr.msk.f32.gmra.mrb[36].mxu0 %vm3745_vm2, %v11922_v12 }
 0x2fc   : > { %v3721_v14 = vmax.f32 %v3689_v11, 0.0  ;;  %v9709_v15 = vpop.f32.mrb[10].mxu0  ;;  %v11934_v20 = vld [vmem:[#allocation2 + $0x51] sm:$0xff] }
 0x2fd   : > { %3801 = vst.msk [vmem:[#allocation2 + $0x81] sm:$0xff] %vm3745_vm2, %v3722_v13  ;;  %v3692_v16 = vadd.f32 %v9709_v15, %v11890_v54  ;;  %v3536_v17 = vpop.f32.mrb[11].mxu0  ;;  %v11928_v18 = vld [vmem:[#allocation2 + $0x49] sm:$0xff] }
 0x2fe   : > { %3800 = vst.msk [vmem:[#allocation2 + $0x79] sm:$0xff] %vm3745_vm2, %v3721_v14  ;;  %v3691_v19 = vadd.f32 %v11890_v54, %v3536_v17  ;;  %9751 = vmatprep.mubr.msk.f32.mxu0 %vm3745_vm2, %v11928_v18 }
 0x2ff   : > { %v3724_v21 = vmax.f32 %v3692_v16, 0.0  ;;  %9752 = vmatmul.mubr.msk.f32.gmra.mrb[38].mxu0 %vm3745_vm2, %v11934_v20 }
 0x300   : > { %v3723_v22 = vmax.f32 %v3691_v19, 0.0  ;;  %v9712_v23 = vpop.f32.mrb[12].mxu0  ;;  %v11946_v43 = vld [vmem:[#allocation2 + $0x69] sm:$0xff] }
 0x301   : > { %3803 = vst.msk [vmem:[#allocation2 + $0x99] sm:$0xff] %vm3745_vm2, %v3724_v21  ;;  %v3694_v24 = vadd.f32 %v9712_v23, %v11890_v54  ;;  %v3546_v25 = vpop.f32.mrb[13].mxu0  ;;  %v11940_v26 = vld [vmem:[#allocation2 + $0x61] sm:$0xff] }
 0x302   : > { %3802 = vst.msk [vmem:[#allocation2 + $0x91] sm:$0xff] %vm3745_vm2, %v3723_v22  ;;  %v3693_v42 = vadd.f32 %v11890_v54, %v3546_v25  ;;  %9754 = vmatprep.mubr.msk.f32.mxu0 %vm3745_vm2, %v11940_v26 }
 0x303   : > { %v3726_v44 = vmax.f32 %v3694_v24, 0.0  ;;  %9755 = vmatmul.mubr.msk.f32.gmra.mrb[40].mxu0 %vm3745_vm2, %v11946_v43 }
 0x304   : > { %v3725_v45 = vmax.f32 %v3693_v42, 0.0  ;;  %v9715_v46 = vpop.f32.mrb[14].mxu0  ;;  %v11958_v29 = vld [vmem:[#allocation2 + $0x81] sm:$0xff] }
 0x305   : > { %3805 = vst.msk [vmem:[#allocation2 + $0xb1] sm:$0xff] %vm3745_vm2, %v3726_v44  ;;  %v3696_v47 = vadd.f32 %v9715_v46, %v11890_v54  ;;  %v3556_v48 = vpop.f32.mrb[15].mxu0  ;;  %v11952_v49 = vld [vmem:[#allocation2 + $0x79] sm:$0xff] }
 0x306   : > { %3804 = vst.msk [vmem:[#allocation2 + $0xa9] sm:$0xff] %vm3745_vm2, %v3725_v45  ;;  %v3695_v28 = vadd.f32 %v11890_v54, %v3556_v48  ;;  %9757 = vmatprep.mubr.msk.f32.mxu0 %vm3745_vm2, %v11952_v49 }
 0x307   : > { %v3728_v32 = vmax.f32 %v3696_v47, 0.0  ;;  %9758 = vmatmul.mubr.msk.f32.gmra.mrb[42].mxu0 %vm3745_vm2, %v11958_v29 }
 0x308   : > { %v3727_v50 = vmax.f32 %v3695_v28, 0.0  ;;  %v9718_v51 = vpop.f32.mrb[16].mxu0  ;;  %v11970_v56 = vld [vmem:[#allocation2 + $0x99] sm:$0xff] }
 0x309   : > { %3807 = vst.msk [vmem:[#allocation2 + $0xc9] sm:$0xff] %vm3745_vm2, %v3728_v32  ;;  %v3698_v27 = vadd.f32 %v9718_v51, %v11890_v54  ;;  %v3566_v30 = vpop.f32.mrb[17].mxu0  ;;  %v11964_v52 = vld [vmem:[#allocation2 + $0x91] sm:$0xff] }
 0x30a   : > { %3806 = vst.msk [vmem:[#allocation2 + $0xc1] sm:$0xff] %vm3745_vm2, %v3727_v50  ;;  %v3697_v55 = vadd.f32 %v11890_v54, %v3566_v30  ;;  %9760 = vmatprep.mubr.msk.f32.mxu0 %vm3745_vm2, %v11964_v52 }
 0x30b   : > { %v3730_v57 = vmax.f32 %v3698_v27, 0.0  ;;  %9761 = vmatmul.mubr.msk.f32.gmra.mrb[44].mxu0 %vm3745_vm2, %v11970_v56 }
 0x30c   : > { %v3729_v58 = vmax.f32 %v3697_v55, 0.0  ;;  %v9721_v59 = vpop.f32.mrb[18].mxu0  ;;  %v11982_v0 = vld [vmem:[#allocation2 + $0xb1] sm:$0xff] }
 0x30d   : > { %3809 = vst.msk [vmem:[#allocation2 + $0xe1] sm:$0xff] %vm3745_vm2, %v3730_v57  ;;  %v3700_v60 = vadd.f32 %v9721_v59, %v11890_v54  ;;  %v3576_v61 = vpop.f32.mrb[19].mxu0  ;;  %v11976_v62 = vld [vmem:[#allocation2 + $0xa9] sm:$0xff] }
 0x30e   : > { %3808 = vst.msk [vmem:[#allocation2 + $0xd9] sm:$0xff] %vm3745_vm2, %v3729_v58  ;;  %v3699_v63 = vadd.f32 %v11890_v54, %v3576_v61  ;;  %9763 = vmatprep.mubr.msk.f32.mxu0 %vm3745_vm2, %v11976_v62 }
 0x30f   : > { %v3732_v1 = vmax.f32 %v3700_v60, 0.0  ;;  %9764 = vmatmul.mubr.msk.f32.gmra.mrb[46].mxu0 %vm3745_vm2, %v11982_v0 }
 0x310   : > { %v3731_v2 = vmax.f32 %v3699_v63, 0.0  ;;  %v9724_v3 = vpop.f32.mrb[20].mxu0  ;;  %v11994_v34 = vld [vmem:[#allocation2 + $0xc9] sm:$0xff] }
 0x311   : > { %3811 = vst.msk [vmem:[#allocation2 + $0xf9] sm:$0xff] %vm3745_vm2, %v3732_v1  ;;  %v3702_v36 = vadd.f32 %v9724_v3, %v11890_v54  ;;  %v3586_v5 = vpop.f32.mrb[21].mxu0  ;;  %v11988_v38 = vld [vmem:[#allocation2 + $0xc1] sm:$0xff] }
 0x312   : > { %3810 = vst.msk [vmem:[#allocation2 + $0xf1] sm:$0xff] %vm3745_vm2, %v3731_v2  ;;  %v3701_v35 = vadd.f32 %v11890_v54, %v3586_v5  ;;  %9766 = vmatprep.mubr.msk.f32.mxu1 %vm3745_vm2, %v11988_v38  ;;  %v3824_v5 = vld [vmem:[#allocation2] sm:$0xff] }
 0x313   : > { %v3734_v6 = vmax.f32 %v3702_v36, 0.0  ;;  %9767 = vmatmul.mubr.msk.f32.vlgmr.msra.gmra.mrb[0].mxu1 %vm3745_vm2, %v11994_v34 }
 0x314   : > { %v3733_v33 = vmax.f32 %v3701_v35, 0.0  ;;  %9791 = vmatpush3.msra.mxu1 %v11884_v53  ;;  %v9727_v4 = vpop.f32.mrb[22].mxu0  ;;  %v12013_v9 = vld [vmem:[#allocation2 + $0xe1] sm:$0xff] }
 0x315   : > { %3813 = vst.msk [vmem:[#allocation2 + $0x111] sm:$0xff] %vm3745_vm2, %v3734_v6  ;;  %v3704_v40 = vadd.f32 %v9727_v4, %v11890_v54  ;;  %v3596_v41 = vpop.f32.mrb[23].mxu0  ;;  %v12006_v7 = vld [vmem:[#allocation2 + $0xd9] sm:$0xff]  ;;  %9840 = vmatprep.subr.mxu1 %v11999_v37  ;;  %v3825_v6 = vld [vmem:[#allocation2 + $0x8] sm:$0xff] }
 0x316   : > { %3812 = vst.msk [vmem:[#allocation2 + $0x109] sm:$0xff] %vm3745_vm2, %v3733_v33  ;;  %v3703_v8 = vadd.f32 %v11890_v54, %v3596_v41  ;;  %9769 = vmatprep.mubr.msk.f32.mxu1 %vm3745_vm2, %v12006_v7  ;;  %v12087_v33 = vld [vmem:[%s12974_s2 + $0x18] sm:$0xff]  ;;  %v12100_v41 = vld [vmem:[#allocation2 + $0x30] sm:$0xff] }
 0x317   : > { %v3736_v53 = vmax.f32 %v3704_v40, 0.0  ;;  %9770 = vmatmul.mubr.msk.f32.gmra.mrb[2].mxu1 %vm3745_vm2, %v12013_v9  ;;  %v12090_v4 = vld [vmem:[#allocation2 + $0x18] sm:$0xff]  ;;  %v12096_v40 = vld [vmem:[#allocation2 + $0x20] sm:$0xff] }
 0x318   : > { %v3735_v11 = vmax.f32 %v3703_v8, 0.0  ;;  %v9730_v13 = vpop.f32.mrb[24].mxu0  ;;  %v12025_v19 = vld [vmem:[#allocation2 + $0xf9] sm:$0xff] }
 0x319   : > { %3815 = vst.msk [vmem:[#allocation2 + $0x129] sm:$0xff] %vm3745_vm2, %v3736_v53  ;;  %v3706_v14 = vadd.f32 %v9730_v13, %v11890_v54  ;;  %v3606_v15 = vpop.f32.mrb[25].mxu0  ;;  %v12019_v16 = vld [vmem:[#allocation2 + $0xf1] sm:$0xff]  ;;  %v12120_v13 = vld [vmem:[#allocation2 + $0x68] sm:$0xff] }
 0x31a   : > { %3814 = vst.msk [vmem:[#allocation2 + $0x121] sm:$0xff] %vm3745_vm2, %v3735_v11  ;;  %v3705_v17 = vadd.f32 %v11890_v54, %v3606_v15  ;;  %9772 = vmatprep.mubr.msk.f32.mxu1 %vm3745_vm2, %v12019_v16  ;;  %v12104_v8 = vld [vmem:[#allocation2 + $0x38] sm:$0xff]  ;;  %v12112_v53 = vld [vmem:[#allocation2 + $0x50] sm:$0xff]  ;;  %v12116_v11 = vld [vmem:[#allocation2 + $0x60] sm:$0xff] }
 0x31b   : > { %v3738_v21 = vmax.f32 %v3706_v14, 0.0  ;;  %9773 = vmatmul.mubr.msk.f32.gmra.mrb[4].mxu1 %vm3745_vm2, %v12025_v19  ;;  %v12124_v14 = vld [vmem:[#allocation2 + $0x78] sm:$0xff]  ;;  %v12128_v15 = vld [vmem:[#allocation2 + $0x80] sm:$0xff] }
 0x31c   : > { %v3737_v22 = vmax.f32 %v3705_v17, 0.0  ;;  %v9733_v23 = vpop.f32.mrb[26].mxu0  ;;  %v12037_v45 = vld [vmem:[#allocation2 + $0x111] sm:$0xff]  ;;  %13188 = vst [vmem:[#allocation18_spill] sm:$0xff] %v12128_v15 }
 0x31d   : > { %3817 = vst.msk [vmem:[#allocation2 + $0x141] sm:$0xff] %vm3745_vm2, %v3738_v21  ;;  %v3708_v24 = vadd.f32 %v9733_v23, %v11890_v54  ;;  %v3616_v25 = vpop.f32.mrb[27].mxu0  ;;  %v12031_v42 = vld [vmem:[#allocation2 + $0x109] sm:$0xff]  ;;  %v12140_v23 = vld [vmem:[#allocation2 + $0x98] sm:$0xff] }
 0x31e   : > { %3816 = vst.msk [vmem:[#allocation2 + $0x139] sm:$0xff] %vm3745_vm2, %v3737_v22  ;;  %v3707_v44 = vadd.f32 %v11890_v54, %v3616_v25  ;;  %9775 = vmatprep.mubr.msk.f32.mxu1 %vm3745_vm2, %v12031_v42  ;;  %v12132_v17 = vld [vmem:[#allocation2 + $0x90] sm:$0xff] }
 0x31f   : > { %v3740_v46 = vmax.f32 %v3708_v24, 0.0  ;;  %9776 = vmatmul.mubr.msk.f32.gmra.mrb[6].mxu1 %vm3745_vm2, %v12037_v45  ;;  %v12144_v24 = vld [vmem:[#allocation2 + $0xa8] sm:$0xff]  ;;  %v12148_v25 = vld [vmem:[#allocation2 + $0xb0] sm:$0xff] }
 0x320   : > { %v3739_v47 = vmax.f32 %v3707_v44, 0.0  ;;  %v9736_v48 = vpop.f32.mrb[28].mxu0  ;;  %v12049_v27 = vld [vmem:[#allocation2 + $0x129] sm:$0xff]  ;;  %13191 = vst [vmem:[#allocation31_spill] sm:$0xff] %v12144_v24  ;;  %v12152_v44 = vld [vmem:[#allocation2 + $0xc0] sm:$0xff] }
 0x321   : > { %3819 = vst.msk [vmem:[#allocation2 + $0x159] sm:$0xff] %vm3745_vm2, %v3740_v46  ;;  %v3710_v28 = vadd.f32 %v9736_v48, %v11890_v54  ;;  %v3626_v32 = vpop.f32.mrb[29].mxu0  ;;  %v12043_v50 = vld [vmem:[#allocation2 + $0x121] sm:$0xff] }
 0x322   : > { %3818 = vst.msk [vmem:[#allocation2 + $0x151] sm:$0xff] %vm3745_vm2, %v3739_v47  ;;  %v3709_v51 = vadd.f32 %v11890_v54, %v3626_v32  ;;  %9778 = vmatprep.mubr.msk.f32.mxu1 %vm3745_vm2, %v12043_v50  ;;  %v12156_v46 = vld [vmem:[#allocation2 + $0xc8] sm:$0xff]  ;;  %v12160_v47 = vld [vmem:[#allocation2 + $0xd8] sm:$0xff]  ;;  %v12164_v48 = vld [vmem:[#allocation2 + $0xe0] sm:$0xff] }
 0x323   : > { %v3742_v30 = vmax.f32 %v3710_v28, 0.0  ;;  %9779 = vmatmul.mubr.msk.f32.gmra.mrb[8].mxu1 %vm3745_vm2, %v12049_v27  ;;  %v12168_v28 = vld [vmem:[#allocation2 + $0xf0] sm:$0xff]  ;;  %v12172_v32 = vld [vmem:[#allocation2 + $0xf8] sm:$0xff] }
 0x324   : > { %v3741_v55 = vmax.f32 %v3709_v51, 0.0  ;;  %v9739_v57 = vpop.f32.mrb[30].mxu0  ;;  %v12061_v63 = vld [vmem:[#allocation2 + $0x141] sm:$0xff] }
 0x325   : > { %3821 = vst.msk [vmem:[#allocation2 + $0x171] sm:$0xff] %vm3745_vm2, %v3742_v30  ;;  %v3712_v58 = vadd.f32 %v9739_v57, %v11890_v54  ;;  %v3636_v59 = vpop.f32.mrb[31].mxu0  ;;  %v12055_v60 = vld [vmem:[#allocation2 + $0x139] sm:$0xff]  ;;  %v12176_v51 = vld [vmem:[#allocation2 + $0x108] sm:$0xff]  ;;  %v12180_v30 = vld [vmem:[#allocation2 + $0x110] sm:$0xff] }
 0x326   : > { %3820 = vst.msk [vmem:[#allocation2 + $0x169] sm:$0xff] %vm3745_vm2, %v3741_v55  ;;  %v3711_v61 = vadd.f32 %v11890_v54, %v3636_v59  ;;  %9781 = vmatprep.mubr.msk.f32.mxu1 %vm3745_vm2, %v12055_v60  ;;  %v12184_v55 = vld [vmem:[#allocation2 + $0x120] sm:$0xff]  ;;  %v12188_v57 = vld [vmem:[#allocation2 + $0x128] sm:$0xff] }
 0x327   : > { %v3744_v1 = vmax.f32 %v3712_v58, 0.0  ;;  %9782 = vmatmul.mubr.msk.f32.gmra.mrb[10].mxu1 %vm3745_vm2, %v12061_v63  ;;  %v12192_v58 = vld [vmem:[#allocation2 + $0x138] sm:$0xff]  ;;  %v12196_v59 = vld [vmem:[#allocation2 + $0x140] sm:$0xff] }
 0x328   : > { %v3743_v2 = vmax.f32 %v3711_v61, 0.0  ;;  %v12071_v54 = vld [vmem:[#allocation2 + $0x159] sm:$0xff]  ;;  %v12134_v21 = vpop.f32.mrb[32].mxu0 }
 0x329   : > { %3823 = vst.msk [vmem:[#allocation2 + $0x189] sm:$0xff] %vm3745_vm2, %v3744_v1  ;;  %v12066_v3 = vld [vmem:[#allocation2 + $0x151] sm:$0xff]  ;;  %13189 = vst [vmem:[#allocation28_spill] sm:$0xff] %v12134_v21  ;;  %v12138_v22 = vpop.f32.mrb[33].mxu0  ;;  %v12220_v21 = vld [vmem:[%s12974_s2 + $0x20] sm:$0xff] }
 0x32a   : > { %3822 = vst.msk [vmem:[#allocation2 + $0x181] sm:$0xff] %vm3745_vm2, %v3743_v2  ;;  %9784 = vmatprep.mubr.msk.f32.mxu1 %vm3745_vm2, %v12066_v3  ;;  %13190 = vst [vmem:[#allocation30_spill] sm:$0xff] %v12138_v22  ;;  %v12200_v61 = vld [vmem:[#allocation2 + $0x150] sm:$0xff]  ;;  %v12204_v1 = vld [vmem:[#allocation2 + $0x158] sm:$0xff] }
 0x32b   : > { %9785 = vmatmul.mubr.msk.f32.gmra.mrb[12].mxu1 %vm3745_vm2, %v12071_v54  ;;  %v4534_v22 = vld [vmem:[#allocation2 + $0xa] sm:$0xff] }
 0x32c   : > { %v12079_v35 = vld [vmem:[#allocation2 + $0x171] sm:$0xff] }
 0x32d   : > { %v12075_v36 = vld [vmem:[#allocation2 + $0x169] sm:$0xff]  ;;  %13187 = vst [vmem:[#allocation12_spill] sm:$0xff] %v12079_v35 }
 0x32e   : > { %13186 = vst [vmem:[#allocation11_spill] sm:$0xff] %v12075_v36  ;;  %9787 = vmatprep.mubr.msk.f32.mxu1 %vm3745_vm2, %v12075_v36  ;;  %v12208_v2 = vld [vmem:[#allocation2 + $0x168] sm:$0xff] }
 0x32f   : > { %9788 = vmatmul.mubr.msk.f32.gmra.mrb[14].mxu1 %vm3745_vm2, %v12079_v35  ;;  %v12223_v35 = vld [vmem:[#allocation2 + $0x1a] sm:$0xff]  ;;  %v12229_v36 = vld [vmem:[#allocation2 + $0x22] sm:$0xff] }
 0x330   : > { %9792 = vmatprep.mubr.msk.f32.mxu1 %vm3745_vm2, %v3824_v5  ;;  %v4533_v5 = vld [vmem:[#allocation2 + $0x2] sm:$0xff]  ;;  %13192 = vst [vmem:[#allocation33_spill] sm:$0xff] %v12223_v35  ;;  %13193 = vst [vmem:[#allocation35_spill] sm:$0xff] %v12229_v36 }
 0x333   : > { %9793 = vmatmul.mubr.msk.f32.vlgmr.msra.gmra.mrb[16].mxu1 %vm3745_vm2, %v3825_v6  ;;  %v12212_v6 = vld [vmem:[#allocation2 + $0x170] sm:$0xff] }
 0x334   : > { %9841 = vmatpush3.msra.mxu1 %v11999_v37  ;;  %9795 = vmatprep.mubr.msk.f32.mxu1 %vm3745_vm2, %v12090_v4  ;;  %v12108_v37 = vld [vmem:[#allocation2 + $0x48] sm:$0xff] }
 0x335   : > { %9890 = vmatprep.subr.mxu1 %v12087_v33 }
 0x337   : > { %9796 = vmatmul.mubr.msk.f32.gmra.mrb[18].mxu1 %vm3745_vm2, %v12096_v40 }
 0x338   : > { %9798 = vmatprep.mubr.msk.f32.mxu1 %vm3745_vm2, %v12100_v41 }
 0x33b   : > { %9799 = vmatmul.mubr.msk.f32.gmra.mrb[20].mxu1 %vm3745_vm2, %v12104_v8 }
 0x33c   : > { %9801 = vmatprep.mubr.msk.f32.mxu1 %vm3745_vm2, %v12108_v37 }
 0x33f   : > { %9802 = vmatmul.mubr.msk.f32.gmra.mrb[22].mxu1 %vm3745_vm2, %v12112_v53 }
 0x340   : > { %9804 = vmatprep.mubr.msk.f32.mxu1 %vm3745_vm2, %v12116_v11 }
 0x343   : > { %9805 = vmatmul.mubr.msk.f32.gmra.mrb[24].mxu1 %vm3745_vm2, %v12120_v13 }
 0x344   : > { %9807 = vmatprep.mubr.msk.f32.mxu1 %vm3745_vm2, %v12124_v14 }
 0x347   : > { %9808 = vmatmul.mubr.msk.f32.gmra.mrb[26].mxu1 %vm3745_vm2, %v12128_v15 }
 0x348   : > { %9810 = vmatprep.mubr.msk.f32.mxu1 %vm3745_vm2, %v12132_v17 }
 0x34b   : > { %9811 = vmatmul.mubr.msk.f32.gmra.mrb[28].mxu1 %vm3745_vm2, %v12140_v23 }
 0x34c   : > { %9813 = vmatprep.mubr.msk.f32.mxu1 %vm3745_vm2, %v12144_v24 }
 0x34f   : > { %9814 = vmatmul.mubr.msk.f32.gmra.mrb[30].mxu1 %vm3745_vm2, %v12148_v25 }
 0x350   : > { %9816 = vmatprep.mubr.msk.f32.mxu1 %vm3745_vm2, %v12152_v44 }
 0x353   : > { %9817 = vmatmul.mubr.msk.f32.gmra.mrb[0].mxu1 %vm3745_vm2, %v12156_v46 }
 0x354   : > { %9819 = vmatprep.mubr.msk.f32.mxu1 %vm3745_vm2, %v12160_v47 }
 0x357   : > { %9820 = vmatmul.mubr.msk.f32.gmra.mrb[2].mxu1 %vm3745_vm2, %v12164_v48 }
 0x358   : > { %9822 = vmatprep.mubr.msk.f32.mxu1 %vm3745_vm2, %v12168_v28 }
 0x35b   : > { %9823 = vmatmul.mubr.msk.f32.gmra.mrb[4].mxu1 %vm3745_vm2, %v12172_v32 }
 0x35c   : > { %9825 = vmatprep.mubr.msk.f32.mxu1 %vm3745_vm2, %v12176_v51 }
 0x35f   : > { %9826 = vmatmul.mubr.msk.f32.gmra.mrb[6].mxu1 %vm3745_vm2, %v12180_v30 }
 0x360   : > { %9828 = vmatprep.mubr.msk.f32.mxu1 %vm3745_vm2, %v12184_v55 }
 0x363   : > { %9829 = vmatmul.mubr.msk.f32.gmra.mrb[8].mxu1 %vm3745_vm2, %v12188_v57 }
 0x364   : > { %9831 = vmatprep.mubr.msk.f32.mxu1 %vm3745_vm2, %v12192_v58 }
 0x367   : > { %9832 = vmatmul.mubr.msk.f32.gmra.mrb[10].mxu1 %vm3745_vm2, %v12196_v59 }
 0x368   : > { %9834 = vmatprep.mubr.msk.f32.mxu1 %vm3745_vm2, %v12200_v61 }
 0x36b   : > { %9835 = vmatmul.mubr.msk.f32.gmra.mrb[12].mxu1 %vm3745_vm2, %v12204_v1 }
 0x36c   : > { %9837 = vmatprep.mubr.msk.f32.mxu1 %vm3745_vm2, %v12208_v2 }
 0x36f   : > { %9838 = vmatmul.mubr.msk.f32.gmra.mrb[14].mxu1 %vm3745_vm2, %v12212_v6 }
 0x370   : > { %9842 = vmatprep.mubr.msk.f32.mxu1 %vm3745_vm2, %v4533_v5  ;;  %v12233_v5 = vld [vmem:[#allocation2 + $0x32] sm:$0xff] }
 0x371   : > { %13194 = vst [vmem:[#allocation3_spill] sm:$0xff] %v12233_v5 }
 0x373   : > { %9843 = vmatmul.mubr.msk.f32.vlgmr.msra.gmra.mrb[16].mxu1 %vm3745_vm2, %v4534_v22  ;;  %v12237_v22 = vld [vmem:[#allocation2 + $0x3a] sm:$0xff] }
 0x374   : > { %9891 = vmatpush3.msra.mxu1 %v12087_v33  ;;  %9845 = vmatprep.mubr.msk.f32.mxu1 %vm3745_vm2, %v12223_v35  ;;  %13195 = vst [vmem:[#allocation4_spill] sm:$0xff] %v12237_v22  ;;  %v12241_v33 = vld [vmem:[#allocation2 + $0x4a] sm:$0xff]  ;;  %v12245_v35 = vld [vmem:[#allocation2 + $0x52] sm:$0xff] }
 0x375   : > { %9940 = vmatprep.subr.mxu1 %v12220_v21  ;;  %13196 = vst [vmem:[#allocation5_spill] sm:$0xff] %v12241_v33  ;;  %13197 = vst [vmem:[#allocation6_spill] sm:$0xff] %v12245_v35 }
 0x377   : > { %9846 = vmatmul.mubr.msk.f32.gmra.mrb[18].mxu1 %vm3745_vm2, %v12229_v36  ;;  %v12249_v36 = vld [vmem:[#allocation2 + $0x62] sm:$0xff] }
 0x378   : > { %9848 = vmatprep.mubr.msk.f32.mxu1 %vm3745_vm2, %v12233_v5  ;;  %13198 = vst [vmem:[#allocation7_spill] sm:$0xff] %v12249_v36  ;;  %v12253_v5 = vld [vmem:[#allocation2 + $0x6a] sm:$0xff] }
 0x379   : > { %13199 = vst [vmem:[#allocation8_spill] sm:$0xff] %v12253_v5 }
 0x37b   : > { %9849 = vmatmul.mubr.msk.f32.gmra.mrb[20].mxu1 %vm3745_vm2, %v12237_v22  ;;  %v12257_v22 = vld [vmem:[#allocation2 + $0x7a] sm:$0xff] }
 0x37c   : > { %9851 = vmatprep.mubr.msk.f32.mxu1 %vm3745_vm2, %v12241_v33  ;;  %13200 = vst [vmem:[#allocation9_spill] sm:$0xff] %v12257_v22  ;;  %v12261_v33 = vld [vmem:[#allocation2 + $0x82] sm:$0xff] }
 0x37d   : > { %13201 = vst [vmem:[#allocation10_spill] sm:$0xff] %v12261_v33 }
 0x37f   : > { %9852 = vmatmul.mubr.msk.f32.gmra.mrb[22].mxu1 %vm3745_vm2, %v12245_v35  ;;  %v12265_v35 = vld [vmem:[#allocation2 + $0x92] sm:$0xff] }
 0x380   : > { %9854 = vmatprep.mubr.msk.f32.mxu1 %vm3745_vm2, %v12249_v36  ;;  %13202 = vst [vmem:[#allocation37_spill] sm:$0xff] %v12265_v35  ;;  %v12269_v36 = vld [vmem:[#allocation2 + $0x9a] sm:$0xff] }
 0x381   : > { %13203 = vst [vmem:[#allocation38_spill] sm:$0xff] %v12269_v36 }
 0x383   : > { %9855 = vmatmul.mubr.msk.f32.gmra.mrb[24].mxu1 %vm3745_vm2, %v12253_v5  ;;  %v12273_v5 = vld [vmem:[#allocation2 + $0xaa] sm:$0xff] }
 0x384   : > { %9857 = vmatprep.mubr.msk.f32.mxu1 %vm3745_vm2, %v12257_v22  ;;  %13204 = vst [vmem:[#allocation13_spill] sm:$0xff] %v12273_v5  ;;  %v12277_v22 = vld [vmem:[#allocation2 + $0xb2] sm:$0xff] }
 0x385   : > { %13205 = vst [vmem:[#allocation14_spill] sm:$0xff] %v12277_v22 }
 0x387   : > { %9858 = vmatmul.mubr.msk.f32.gmra.mrb[26].mxu1 %vm3745_vm2, %v12261_v33  ;;  %v12281_v33 = vld [vmem:[#allocation2 + $0xc2] sm:$0xff] }
 0x388   : > { %9860 = vmatprep.mubr.msk.f32.mxu1 %vm3745_vm2, %v12265_v35  ;;  %13206 = vst [vmem:[#allocation15_spill] sm:$0xff] %v12281_v33  ;;  %v12285_v35 = vld [vmem:[#allocation2 + $0xca] sm:$0xff] }
 0x389   : > { %13207 = vst [vmem:[#allocation16_spill] sm:$0xff] %v12285_v35 }
 0x38b   : > { %9861 = vmatmul.mubr.msk.f32.gmra.mrb[28].mxu1 %vm3745_vm2, %v12269_v36  ;;  %v12289_v36 = vld [vmem:[#allocation2 + $0xda] sm:$0xff] }
 0x38c   : > { %9863 = vmatprep.mubr.msk.f32.mxu1 %vm3745_vm2, %v12273_v5  ;;  %13208 = vst [vmem:[#allocation17_spill] sm:$0xff] %v12289_v36  ;;  %v12293_v5 = vld [vmem:[#allocation2 + $0xe2] sm:$0xff] }
 0x38d   : > { %13209 = vst [vmem:[#allocation19_spill] sm:$0xff] %v12293_v5 }
 0x38f   : > { %9864 = vmatmul.mubr.msk.f32.gmra.mrb[30].mxu1 %vm3745_vm2, %v12277_v22  ;;  %v12297_v22 = vld [vmem:[#allocation2 + $0xf2] sm:$0xff] }
 0x390   : > { %9866 = vmatprep.mubr.msk.f32.mxu1 %vm3745_vm2, %v12281_v33  ;;  %13210 = vst [vmem:[#allocation20_spill] sm:$0xff] %v12297_v22  ;;  %v12301_v33 = vld [vmem:[#allocation2 + $0xfa] sm:$0xff] }
 0x391   : > { %13211 = vst [vmem:[#allocation21_spill] sm:$0xff] %v12301_v33 }
 0x393   : > { %9867 = vmatmul.mubr.msk.f32.gmra.mrb[0].mxu1 %vm3745_vm2, %v12285_v35  ;;  %v12305_v35 = vld [vmem:[#allocation2 + $0x10a] sm:$0xff] }
 0x394   : > { %9869 = vmatprep.mubr.msk.f32.mxu1 %vm3745_vm2, %v12289_v36  ;;  %13212 = vst [vmem:[#allocation22_spill] sm:$0xff] %v12305_v35  ;;  %v12309_v36 = vld [vmem:[#allocation2 + $0x112] sm:$0xff] }
 0x395   : > { %13213 = vst [vmem:[#allocation23_spill] sm:$0xff] %v12309_v36 }
 0x397   : > { %9870 = vmatmul.mubr.msk.f32.gmra.mrb[2].mxu1 %vm3745_vm2, %v12293_v5  ;;  %v12313_v5 = vld [vmem:[#allocation2 + $0x122] sm:$0xff] }
 0x398   : > { %9872 = vmatprep.mubr.msk.f32.mxu1 %vm3745_vm2, %v12297_v22  ;;  %13214 = vst [vmem:[#allocation24_spill] sm:$0xff] %v12313_v5  ;;  %v12317_v22 = vld [vmem:[#allocation2 + $0x12a] sm:$0xff] }
 0x399   : > { %13215 = vst [vmem:[#allocation25_spill] sm:$0xff] %v12317_v22 }
 0x39b   : > { %9873 = vmatmul.mubr.msk.f32.gmra.mrb[4].mxu1 %vm3745_vm2, %v12301_v33  ;;  %v12321_v33 = vld [vmem:[#allocation2 + $0x13a] sm:$0xff] }
 0x39c   : > { %9875 = vmatprep.mubr.msk.f32.mxu1 %vm3745_vm2, %v12305_v35  ;;  %13216 = vst [vmem:[#allocation26_spill] sm:$0xff] %v12321_v33  ;;  %v12325_v35 = vld [vmem:[#allocation2 + $0x142] sm:$0xff] }
 0x39f   : > { %9876 = vmatmul.mubr.msk.f32.gmra.mrb[6].mxu1 %vm3745_vm2, %v12309_v36  ;;  %v12329_v36 = vld [vmem:[#allocation2 + $0x152] sm:$0xff] }
 0x3a0   : > { %9878 = vmatprep.mubr.msk.f32.mxu1 %vm3745_vm2, %v12313_v5  ;;  %13217 = vst [vmem:[#allocation27_spill] sm:$0xff] %v12329_v36  ;;  %v12333_v5 = vld [vmem:[#allocation2 + $0x15a] sm:$0xff] }
 0x3a3   : > { %9879 = vmatmul.mubr.msk.f32.gmra.mrb[8].mxu1 %vm3745_vm2, %v12317_v22  ;;  %v12337_v22 = vld [vmem:[#allocation2 + $0x16a] sm:$0xff] }
 0x3a4   : > { %9881 = vmatprep.mubr.msk.f32.mxu1 %vm3745_vm2, %v12321_v33  ;;  %v12341_v33 = vld [vmem:[#allocation2 + $0x172] sm:$0xff] }
 0x3a7   : > { %9882 = vmatmul.mubr.msk.f32.gmra.mrb[10].mxu1 %vm3745_vm2, %v12325_v35 }
 0x3a8   : > { %9884 = vmatprep.mubr.msk.f32.mxu1 %vm3745_vm2, %v12329_v36  ;;  %v8461_v36 = vld [vmem:[%s12974_s2 + $0x28] sm:$0xff] }
 0x3ab   : > { %9885 = vmatmul.mubr.msk.f32.gmra.mrb[12].mxu1 %vm3745_vm2, %v12333_v5 }
 0x3ac   : > { %9887 = vmatprep.mubr.msk.f32.mxu1 %vm3745_vm2, %v12337_v22 }
 0x3af   : > { %9888 = vmatmul.mubr.msk.f32.gmra.mrb[14].mxu1 %vm3745_vm2, %v12341_v33 }
 0x3b0   : > { %9892 = vmatprep.mubr.msk.f32.mxu1 %vm3745_vm2, %v12090_v4 }
 0x3b3   : > { %9893 = vmatmul.mubr.msk.f32.vlgmr.msra.gmra.mrb[16].mxu1 %vm3745_vm2, %v12096_v40 }
 0x3b4   : > { %9941 = vmatpush3.msra.mxu1 %v12220_v21  ;;  %9895 = vmatprep.mubr.msk.f32.mxu1 %vm3745_vm2, %v12100_v41 }
 0x3b5   : > { %9990 = vmatprep.subr.mxu1 %v8461_v36 }
 0x3b7   : > { %9896 = vmatmul.mubr.msk.f32.gmra.mrb[18].mxu1 %vm3745_vm2, %v12104_v8 }
 0x3b8   : > { %9898 = vmatprep.mubr.msk.f32.mxu1 %vm3745_vm2, %v12108_v37 }
 0x3bb   : > { %9899 = vmatmul.mubr.msk.f32.gmra.mrb[20].mxu1 %vm3745_vm2, %v12112_v53 }
 0x3bc   : > { %9901 = vmatprep.mubr.msk.f32.mxu1 %vm3745_vm2, %v12116_v11 }
 0x3bf   : > { %9902 = vmatmul.mubr.msk.f32.gmra.mrb[22].mxu1 %vm3745_vm2, %v12120_v13 }
 0x3c0   : > { %9904 = vmatprep.mubr.msk.f32.mxu1 %vm3745_vm2, %v12124_v14 }
 0x3c3   : > { %9905 = vmatmul.mubr.msk.f32.gmra.mrb[24].mxu1 %vm3745_vm2, %v12128_v15 }
 0x3c4   : > { %9907 = vmatprep.mubr.msk.f32.mxu1 %vm3745_vm2, %v12132_v17 }
 0x3c7   : > { %9908 = vmatmul.mubr.msk.f32.gmra.mrb[26].mxu1 %vm3745_vm2, %v12140_v23 }
 0x3c8   : > { %9910 = vmatprep.mubr.msk.f32.mxu1 %vm3745_vm2, %v12144_v24 }
 0x3ca   : > { %v12375_v4 = vpop.f32.mrb[34].mxu0 }
 0x3cb   : > { %13218 = vst [vmem:[#allocation29_spill] sm:$0xff] %v12375_v4  ;;  %v12377_v40 = vpop.f32.mrb[35].mxu0  ;;  %9911 = vmatmul.mubr.msk.f32.gmra.mrb[28].mxu1 %vm3745_vm2, %v12148_v25 }
 0x3cc   : > { %13219 = vst [vmem:[#allocation32_spill] sm:$0xff] %v12377_v40  ;;  %9913 = vmatprep.mubr.msk.f32.mxu1 %vm3745_vm2, %v12152_v44 }
 0x3ce   : > { %v12383_v21 = vpop.f32.mrb[36].mxu0 }
 0x3cf   : > { %13220 = vst [vmem:[#allocation34_spill] sm:$0xff] %v12383_v21  ;;  %v12385_v15 = vpop.f32.mrb[37].mxu0  ;;  %9914 = vmatmul.mubr.msk.f32.gmra.mrb[30].mxu1 %vm3745_vm2, %v12156_v46 }
 0x3d0   : > { %13221 = vst [vmem:[#allocation36_spill] sm:$0xff] %v12385_v15  ;;  %9916 = vmatprep.mubr.msk.f32.mxu1 %vm3745_vm2, %v12160_v47 }
 0x3d2   : > { %v12391_v24 = vpop.f32.mrb[38].mxu0 }
 0x3d3   : > { %13222 = vst [vmem:[#allocation39_spill] sm:$0xff] %v12391_v24  ;;  %v12393_v4 = vpop.f32.mrb[39].mxu0  ;;  %9917 = vmatmul.mubr.msk.f32.gmra.mrb[0].mxu1 %vm3745_vm2, %v12164_v48 }
 0x3d4   : > { %13223 = vst [vmem:[#allocation40_spill] sm:$0xff] %v12393_v4  ;;  %9919 = vmatprep.mubr.msk.f32.mxu1 %vm3745_vm2, %v12168_v28 }
 0x3d6   : > { %v12399_v40 = vpop.f32.mrb[40].mxu0 }
 0x3d7   : > { %13224 = vst [vmem:[#allocation41_spill] sm:$0xff] %v12399_v40  ;;  %v12401_v21 = vpop.f32.mrb[41].mxu0  ;;  %9920 = vmatmul.mubr.msk.f32.gmra.mrb[2].mxu1 %vm3745_vm2, %v12172_v32 }
 0x3d8   : > { %13225 = vst [vmem:[#allocation42_spill] sm:$0xff] %v12401_v21  ;;  %9922 = vmatprep.mubr.msk.f32.mxu1 %vm3745_vm2, %v12176_v51 }
 0x3da   : > { %v12407_v15 = vpop.f32.mrb[42].mxu0 }
 0x3db   : > { %13226 = vst [vmem:[#allocation43_spill] sm:$0xff] %v12407_v15  ;;  %v12409_v24 = vpop.f32.mrb[43].mxu0  ;;  %9923 = vmatmul.mubr.msk.f32.gmra.mrb[4].mxu1 %vm3745_vm2, %v12180_v30 }
 0x3dc   : > { %9925 = vmatprep.mubr.msk.f32.mxu1 %vm3745_vm2, %v12184_v55 }
 0x3de   : > { %v12415_v4 = vpop.f32.mrb[44].mxu0 }
 0x3df   : > { %v12417_v40 = vpop.f32.mrb[45].mxu0  ;;  %9926 = vmatmul.mubr.msk.f32.gmra.mrb[6].mxu1 %vm3745_vm2, %v12188_v57 }
 0x3e0   : > { %13227 = vst [vmem:[#allocation44_spill] sm:$0xff] %v12417_v40  ;;  %9928 = vmatprep.mubr.msk.f32.mxu1 %vm3745_vm2, %v12192_v58  ;;  %v12437_v40 = vld [vmem:[#allocation2 + $0x180] sm:$0xff] }
 0x3e2   : > { %v12423_v21 = vpop.f32.mrb[46].mxu0 }
 0x3e3   : > { %13228 = vst [vmem:[#allocation45_spill] sm:$0xff] %v12423_v21  ;;  %v12425_v15 = vpop.f32.mrb[47].mxu0  ;;  %9929 = vmatmul.mubr.msk.f32.gmra.mrb[8].mxu1 %vm3745_vm2, %v12196_v59  ;;  %v8494_v21 = vld [vmem:[%s12974_s2 + $0x30] sm:$0xff] }
 0x3e4   : > { %13229 = vst [vmem:[#allocation46_spill] sm:$0xff] %v12425_v15  ;;  %9931 = vmatprep.mubr.msk.f32.mxu1 %vm3745_vm2, %v12200_v61  ;;  %v12441_v15 = vld [vmem:[#allocation2 + $0x188] sm:$0xff] }
 0x3e7   : > { %9932 = vmatmul.mubr.msk.f32.gmra.mrb[10].mxu1 %vm3745_vm2, %v12204_v1 }
 0x3e8   : > { %9934 = vmatprep.mubr.msk.f32.mxu1 %vm3745_vm2, %v12208_v2 }
 0x3eb   : > { %9935 = vmatmul.mubr.msk.f32.gmra.mrb[12].mxu1 %vm3745_vm2, %v12212_v6 }
 0x3ec   : > { %9937 = vmatprep.mubr.msk.f32.mxu1 %vm3745_vm2, %v12437_v40 }
 0x3ef   : > { %9938 = vmatmul.mubr.msk.f32.gmra.mrb[14].mxu1 %vm3745_vm2, %v12441_v15 }
 0x3f0   : > { %9942 = vmatprep.mubr.msk.f32.mxu1 %vm3745_vm2, %v11904_v31  ;;  %v13230_v31 = vld [vmem:[#allocation11_spill] sm:$0xff] }
 0x3f3   : > { %9943 = vmatmul.mubr.msk.f32.vlgmr.msra.gmra.mrb[16].mxu1 %vm3745_vm2, %v11910_v39  ;;  %v13231_v39 = vld [vmem:[#allocation12_spill] sm:$0xff] }
 0x3f4   : > { %9991 = vmatpush3.msra.mxu1 %v8461_v36  ;;  %9945 = vmatprep.mubr.msk.f32.mxu1 %vm3745_vm2, %v11916_v10  ;;  %v12508_v10 = vld [vmem:[#allocation2 + $0x181] sm:$0xff] }
 0x3f5   : > { %10040 = vmatprep.subr.mxu1 %v8494_v21  ;;  %v13255_v36 = vld [vmem:[#allocation25_spill] sm:$0xff] }
 0x3f7   : > { %9946 = vmatmul.mubr.msk.f32.gmra.mrb[18].mxu1 %vm3745_vm2, %v11922_v12  ;;  %v12512_v12 = vld [vmem:[#allocation2 + $0x189] sm:$0xff] }
 0x3f8   : > { %9948 = vmatprep.mubr.msk.f32.mxu1 %vm3745_vm2, %v11928_v18  ;;  %v13232_v18 = vld [vmem:[#allocation33_spill] sm:$0xff] }
 0x3fb   : > { %9949 = vmatmul.mubr.msk.f32.gmra.mrb[20].mxu1 %vm3745_vm2, %v11934_v20  ;;  %v8527_v20 = vld [vmem:[%s12974_s2 + $0x38] sm:$0xff] }
 0x3fc   : > { %9951 = vmatprep.mubr.msk.f32.mxu1 %vm3745_vm2, %v11940_v26  ;;  %v13233_v26 = vld [vmem:[#allocation35_spill] sm:$0xff] }
 0x3ff   : > { %9952 = vmatmul.mubr.msk.f32.gmra.mrb[22].mxu1 %vm3745_vm2, %v11946_v43  ;;  %v13234_v43 = vld [vmem:[#allocation3_spill] sm:$0xff] }
 0x400   : > { %9954 = vmatprep.mubr.msk.f32.mxu1 %vm3745_vm2, %v11952_v49  ;;  %v13235_v49 = vld [vmem:[#allocation4_spill] sm:$0xff] }
 0x403   : > { %9955 = vmatmul.mubr.msk.f32.gmra.mrb[24].mxu1 %vm3745_vm2, %v11958_v29  ;;  %v13236_v29 = vld [vmem:[#allocation5_spill] sm:$0xff] }
 0x404   : > { %9957 = vmatprep.mubr.msk.f32.mxu1 %vm3745_vm2, %v11964_v52  ;;  %v13237_v52 = vld [vmem:[#allocation6_spill] sm:$0xff] }
 0x407   : > { %9958 = vmatmul.mubr.msk.f32.gmra.mrb[26].mxu1 %vm3745_vm2, %v11970_v56  ;;  %v13238_v56 = vld [vmem:[#allocation7_spill] sm:$0xff] }
 0x408   : > { %9960 = vmatprep.mubr.msk.f32.mxu1 %vm3745_vm2, %v11976_v62  ;;  %v13239_v62 = vld [vmem:[#allocation8_spill] sm:$0xff] }
 0x40b   : > { %9961 = vmatmul.mubr.msk.f32.gmra.mrb[28].mxu1 %vm3745_vm2, %v11982_v0  ;;  %v13240_v0 = vld [vmem:[#allocation9_spill] sm:$0xff] }
 0x40c   : > { %9963 = vmatprep.mubr.msk.f32.mxu1 %vm3745_vm2, %v11988_v38  ;;  %v13241_v38 = vld [vmem:[#allocation10_spill] sm:$0xff] }
 0x40f   : > { %9964 = vmatmul.mubr.msk.f32.gmra.mrb[30].mxu1 %vm3745_vm2, %v11994_v34  ;;  %v13242_v34 = vld [vmem:[#allocation37_spill] sm:$0xff] }
 0x410   : > { %9966 = vmatprep.mubr.msk.f32.mxu1 %vm3745_vm2, %v12006_v7  ;;  %v13243_v7 = vld [vmem:[#allocation38_spill] sm:$0xff] }
 0x413   : > { %9967 = vmatmul.mubr.msk.f32.gmra.mrb[0].mxu1 %vm3745_vm2, %v12013_v9  ;;  %v13244_v9 = vld [vmem:[#allocation13_spill] sm:$0xff] }
 0x414   : > { %9969 = vmatprep.mubr.msk.f32.mxu1 %vm3745_vm2, %v12019_v16  ;;  %v13245_v16 = vld [vmem:[#allocation14_spill] sm:$0xff] }
 0x417   : > { %9970 = vmatmul.mubr.msk.f32.gmra.mrb[2].mxu1 %vm3745_vm2, %v12025_v19  ;;  %v13246_v19 = vld [vmem:[#allocation15_spill] sm:$0xff] }
 0x418   : > { %9972 = vmatprep.mubr.msk.f32.mxu1 %vm3745_vm2, %v12031_v42  ;;  %v13247_v42 = vld [vmem:[#allocation16_spill] sm:$0xff] }
 0x41b   : > { %9973 = vmatmul.mubr.msk.f32.gmra.mrb[4].mxu1 %vm3745_vm2, %v12037_v45  ;;  %v13248_v45 = vld [vmem:[#allocation17_spill] sm:$0xff] }
 0x41c   : > { %9975 = vmatprep.mubr.msk.f32.mxu1 %vm3745_vm2, %v12043_v50  ;;  %v13249_v50 = vld [vmem:[#allocation19_spill] sm:$0xff] }
 0x41f   : > { %9976 = vmatmul.mubr.msk.f32.gmra.mrb[6].mxu1 %vm3745_vm2, %v12049_v27  ;;  %v13250_v27 = vld [vmem:[#allocation20_spill] sm:$0xff] }
 0x420   : > { %9978 = vmatprep.mubr.msk.f32.mxu1 %vm3745_vm2, %v12055_v60  ;;  %v13251_v60 = vld [vmem:[#allocation21_spill] sm:$0xff] }
 0x423   : > { %9979 = vmatmul.mubr.msk.f32.gmra.mrb[8].mxu1 %vm3745_vm2, %v12061_v63  ;;  %v13252_v63 = vld [vmem:[#allocation22_spill] sm:$0xff] }
 0x424   : > { %9981 = vmatprep.mubr.msk.f32.mxu1 %vm3745_vm2, %v12066_v3  ;;  %v13253_v3 = vld [vmem:[#allocation23_spill] sm:$0xff] }
 0x427   : > { %9982 = vmatmul.mubr.msk.f32.gmra.mrb[10].mxu1 %vm3745_vm2, %v12071_v54  ;;  %v13254_v54 = vld [vmem:[#allocation24_spill] sm:$0xff] }
 0x428   : > { %9984 = vmatprep.mubr.msk.f32.mxu1 %vm3745_vm2, %v13230_v31  ;;  %v13257_v31 = vld [vmem:[#allocation27_spill] sm:$0xff] }
 0x42b   : > { %9985 = vmatmul.mubr.msk.f32.gmra.mrb[12].mxu1 %vm3745_vm2, %v13231_v39  ;;  %v12579_v39 = vld [vmem:[#allocation2 + $0x182] sm:$0xff] }
 0x42c   : > { %9987 = vmatprep.mubr.msk.f32.mxu1 %vm3745_vm2, %v12508_v10 }
 0x42f   : > { %9988 = vmatmul.mubr.msk.f32.gmra.mrb[14].mxu1 %vm3745_vm2, %v12512_v12 }
 0x430   : > { %9992 = vmatprep.mubr.msk.f32.mxu1 %vm3745_vm2, %v13232_v18  ;;  %v12583_v18 = vld [vmem:[#allocation2 + $0x18a] sm:$0xff] }
 0x433   : > { %9993 = vmatmul.mubr.msk.f32.vlgmr.msra.gmra.mrb[16].mxu1 %vm3745_vm2, %v13233_v26  ;;  %v8560_v26 = vld [vmem:[%s12974_s2 + $0x40] sm:$0xff] }
 0x434   : > { %10041 = vmatpush3.msra.mxu1 %v8494_v21  ;;  %9995 = vmatprep.mubr.msk.f32.mxu1 %vm3745_vm2, %v13234_v43  ;;  %v13256_v21 = vld [vmem:[#allocation26_spill] sm:$0xff] }
 0x435   : > { %10090 = vmatprep.subr.mxu1 %v8527_v20 }
 0x437   : > { %9996 = vmatmul.mubr.msk.f32.gmra.mrb[18].mxu1 %vm3745_vm2, %v13235_v49 }
 0x438   : > { %9998 = vmatprep.mubr.msk.f32.mxu1 %vm3745_vm2, %v13236_v29 }
 0x43b   : > { %9999 = vmatmul.mubr.msk.f32.gmra.mrb[20].mxu1 %vm3745_vm2, %v13237_v52 }
 0x43c   : > { %10001 = vmatprep.mubr.msk.f32.mxu1 %vm3745_vm2, %v13238_v56 }
 0x43f   : > { %10002 = vmatmul.mubr.msk.f32.gmra.mrb[22].mxu1 %vm3745_vm2, %v13239_v62 }
 0x440   : > { %10004 = vmatprep.mubr.msk.f32.mxu1 %vm3745_vm2, %v13240_v0 }
 0x443   : > { %10005 = vmatmul.mubr.msk.f32.gmra.mrb[24].mxu1 %vm3745_vm2, %v13241_v38 }
 0x444   : > { %10007 = vmatprep.mubr.msk.f32.mxu1 %vm3745_vm2, %v13242_v34 }
 0x447   : > { %10008 = vmatmul.mubr.msk.f32.gmra.mrb[26].mxu1 %vm3745_vm2, %v13243_v7 }
 0x448   : > { %10010 = vmatprep.mubr.msk.f32.mxu1 %vm3745_vm2, %v13244_v9 }
 0x44b   : > { %10011 = vmatmul.mubr.msk.f32.gmra.mrb[28].mxu1 %vm3745_vm2, %v13245_v16 }
 0x44c   : > { %10013 = vmatprep.mubr.msk.f32.mxu1 %vm3745_vm2, %v13246_v19 }
 0x44f   : > { %10014 = vmatmul.mubr.msk.f32.gmra.mrb[30].mxu1 %vm3745_vm2, %v13247_v42 }
 0x450   : > { %10016 = vmatprep.mubr.msk.f32.mxu1 %vm3745_vm2, %v13248_v45 }
 0x453   : > { %10017 = vmatmul.mubr.msk.f32.gmra.mrb[0].mxu1 %vm3745_vm2, %v13249_v50 }
 0x454   : > { %10019 = vmatprep.mubr.msk.f32.mxu1 %vm3745_vm2, %v13250_v27 }
 0x457   : > { %10020 = vmatmul.mubr.msk.f32.gmra.mrb[2].mxu1 %vm3745_vm2, %v13251_v60 }
 0x458   : > { %10022 = vmatprep.mubr.msk.f32.mxu1 %vm3745_vm2, %v13252_v63 }
 0x45b   : > { %10023 = vmatmul.mubr.msk.f32.gmra.mrb[4].mxu1 %vm3745_vm2, %v13253_v3 }
 0x45c   : > { %10025 = vmatprep.mubr.msk.f32.mxu1 %vm3745_vm2, %v13254_v54 }
 0x45f   : > { %10026 = vmatmul.mubr.msk.f32.gmra.mrb[6].mxu1 %vm3745_vm2, %v13255_v36 }
 0x460   : > { %10028 = vmatprep.mubr.msk.f32.mxu1 %vm3745_vm2, %v13256_v21 }
 0x463   : > { %10029 = vmatmul.mubr.msk.f32.gmra.mrb[8].mxu1 %vm3745_vm2, %v12325_v35 }
 0x464   : > { %10031 = vmatprep.mubr.msk.f32.mxu1 %vm3745_vm2, %v13257_v31 }
 0x467   : > { %10032 = vmatmul.mubr.msk.f32.gmra.mrb[10].mxu1 %vm3745_vm2, %v12333_v5 }
 0x468   : > { %10034 = vmatprep.mubr.msk.f32.mxu1 %vm3745_vm2, %v12337_v22 }
 0x46b   : > { %10035 = vmatmul.mubr.msk.f32.gmra.mrb[12].mxu1 %vm3745_vm2, %v12341_v33 }
 0x46c   : > { %10037 = vmatprep.mubr.msk.f32.mxu1 %vm3745_vm2, %v12579_v39 }
 0x46f   : > { %10038 = vmatmul.mubr.msk.f32.gmra.mrb[14].mxu1 %vm3745_vm2, %v12583_v18 }
 0x470   : > { %10042 = vmatprep.mubr.msk.f32.mxu1 %vm3745_vm2, %v12100_v41  ;;  %v13258_v41 = vld [vmem:[#allocation18_spill] sm:$0xff] }
 0x473   : > { %10043 = vmatmul.mubr.msk.f32.vlgmr.msra.gmra.mrb[16].mxu1 %vm3745_vm2, %v12104_v8  ;;  %v13259_v8 = vld [vmem:[#allocation31_spill] sm:$0xff] }
 0x474   : > { %10091 = vmatpush3.msra.mxu1 %v8527_v20  ;;  %10045 = vmatprep.mubr.msk.f32.mxu1 %vm3745_vm2, %v12108_v37  ;;  %v6112_v37 = vld [vmem:[#allocation2 + $0x198] sm:$0xff]  ;;  %v6492_v20 = vld [vmem:[#allocation2 + $0x141] sm:$0xff] }
 0x475   : > { %10140 = vmatprep.subr.mxu1 %v8560_v26 }
 0x477   : > { %10046 = vmatmul.mubr.msk.f32.gmra.mrb[18].mxu1 %vm3745_vm2, %v12112_v53  ;;  %v6113_v53 = vld [vmem:[#allocation2 + $0x1a0] sm:$0xff] }
 0x478   : > { %10048 = vmatprep.mubr.msk.f32.mxu1 %vm3745_vm2, %v12116_v11  ;;  %v6469_v11 = vld [vmem:[#allocation2 + $0x31] sm:$0xff] }
 0x47b   : > { %10049 = vmatmul.mubr.msk.f32.gmra.mrb[20].mxu1 %vm3745_vm2, %v12120_v13  ;;  %v6470_v13 = vld [vmem:[#allocation2 + $0x39] sm:$0xff] }
 0x47c   : > { %10051 = vmatprep.mubr.msk.f32.mxu1 %vm3745_vm2, %v12124_v14  ;;  %v12656_v14 = vld [vmem:[%s12975_s3] sm:$0xf] }
 0x47f   : > { %10052 = vmatmul.mubr.msk.f32.gmra.mrb[22].mxu1 %vm3745_vm2, %v13258_v41  ;;  %v6494_v41 = vld [vmem:[#allocation2 + $0x159] sm:$0xff] }
 0x480   : > { %10054 = vmatprep.mubr.msk.f32.mxu1 %vm3745_vm2, %v12132_v17  ;;  %v6471_v17 = vld [vmem:[#allocation2 + $0x49] sm:$0xff] }
 0x483   : > { %10055 = vmatmul.mubr.msk.f32.gmra.mrb[24].mxu1 %vm3745_vm2, %v12140_v23  ;;  %v6473_v23 = vld [vmem:[#allocation2 + $0x61] sm:$0xff] }
 0x484   : > { %10057 = vmatprep.mubr.msk.f32.mxu1 %vm3745_vm2, %v13259_v8  ;;  %v6495_v8 = vld [vmem:[#allocation2 + $0x169] sm:$0xff] }
 0x487   : > { %10058 = vmatmul.mubr.msk.f32.gmra.mrb[26].mxu1 %vm3745_vm2, %v12148_v25  ;;  %v6474_v25 = vld [vmem:[#allocation2 + $0x69] sm:$0xff] }
 0x488   : > { %10060 = vmatprep.mubr.msk.f32.mxu1 %vm3745_vm2, %v12152_v44  ;;  %v6475_v44 = vld [vmem:[#allocation2 + $0x79] sm:$0xff] }
 0x48b   : > { %10061 = vmatmul.mubr.msk.f32.gmra.mrb[28].mxu1 %vm3745_vm2, %v12156_v46  ;;  %v6476_v46 = vld [vmem:[#allocation2 + $0x81] sm:$0xff] }
 0x48c   : > { %10063 = vmatprep.mubr.msk.f32.mxu1 %vm3745_vm2, %v12160_v47  ;;  %v6477_v47 = vld [vmem:[#allocation2 + $0x91] sm:$0xff] }
 0x48f   : > { %10064 = vmatmul.mubr.msk.f32.gmra.mrb[30].mxu1 %vm3745_vm2, %v12164_v48  ;;  %v6478_v48 = vld [vmem:[#allocation2 + $0x99] sm:$0xff] }
 0x490   : > { %10066 = vmatprep.mubr.msk.f32.mxu1 %vm3745_vm2, %v12168_v28  ;;  %v6479_v28 = vld [vmem:[#allocation2 + $0xa9] sm:$0xff] }
 0x493   : > { %10067 = vmatmul.mubr.msk.f32.gmra.mrb[0].mxu1 %vm3745_vm2, %v12172_v32  ;;  %v6480_v32 = vld [vmem:[#allocation2 + $0xb1] sm:$0xff] }
 0x494   : > { %10069 = vmatprep.mubr.msk.f32.mxu1 %vm3745_vm2, %v12176_v51  ;;  %v6481_v51 = vld [vmem:[#allocation2 + $0xc1] sm:$0xff] }
 0x497   : > { %10070 = vmatmul.mubr.msk.f32.gmra.mrb[2].mxu1 %vm3745_vm2, %v12180_v30  ;;  %v6482_v30 = vld [vmem:[#allocation2 + $0xc9] sm:$0xff] }
 0x498   : > { %10072 = vmatprep.mubr.msk.f32.mxu1 %vm3745_vm2, %v12184_v55  ;;  %v6483_v55 = vld [vmem:[#allocation2 + $0xd9] sm:$0xff] }
 0x49b   : > { %10073 = vmatmul.mubr.msk.f32.gmra.mrb[4].mxu1 %vm3745_vm2, %v12188_v57  ;;  %v6484_v57 = vld [vmem:[#allocation2 + $0xe1] sm:$0xff] }
 0x49c   : > { %10075 = vmatprep.mubr.msk.f32.mxu1 %vm3745_vm2, %v12192_v58  ;;  %v6485_v58 = vld [vmem:[#allocation2 + $0xf1] sm:$0xff] }
 0x49f   : > { %10076 = vmatmul.mubr.msk.f32.gmra.mrb[6].mxu1 %vm3745_vm2, %v12196_v59  ;;  %v6486_v59 = vld [vmem:[#allocation2 + $0xf9] sm:$0xff] }
 0x4a0   : > { %10078 = vmatprep.mubr.msk.f32.mxu1 %vm3745_vm2, %v12200_v61  ;;  %v6487_v61 = vld [vmem:[#allocation2 + $0x109] sm:$0xff] }
 0x4a3   : > { %10079 = vmatmul.mubr.msk.f32.gmra.mrb[8].mxu1 %vm3745_vm2, %v12204_v1  ;;  %v6488_v1 = vld [vmem:[#allocation2 + $0x111] sm:$0xff] }
 0x4a4   : > { %10081 = vmatprep.mubr.msk.f32.mxu1 %vm3745_vm2, %v12208_v2  ;;  %v6489_v2 = vld [vmem:[#allocation2 + $0x121] sm:$0xff] }
 0x4a7   : > { %10082 = vmatmul.mubr.msk.f32.gmra.mrb[10].mxu1 %vm3745_vm2, %v12212_v6  ;;  %v6490_v6 = vld [vmem:[#allocation2 + $0x129] sm:$0xff] }
 0x4a8   : > { %10084 = vmatprep.mubr.msk.f32.mxu1 %vm3745_vm2, %v12437_v40  ;;  %v6491_v40 = vld [vmem:[#allocation2 + $0x139] sm:$0xff] }
 0x4ab   : > { %10085 = vmatmul.mubr.msk.f32.gmra.mrb[12].mxu1 %vm3745_vm2, %v12441_v15  ;;  %v6472_v15 = vld [vmem:[#allocation2 + $0x51] sm:$0xff] }
 0x4ac   : > { %10087 = vmatprep.mubr.msk.f32.mxu1 %vm3745_vm2, %v6112_v37  ;;  %v6496_v37 = vld [vmem:[#allocation2 + $0x171] sm:$0xff] }
 0x4af   : > { %10088 = vmatmul.mubr.msk.f32.gmra.mrb[14].mxu1 %vm3745_vm2, %v6113_v53  ;;  %v6499_v53 = vld [vmem:[#allocation2 + $0x199] sm:$0xff] }
 0x4b0   : > { %10092 = vmatprep.mubr.msk.f32.mxu1 %vm3745_vm2, %v6469_v11  ;;  %v6500_v11 = vld [vmem:[#allocation2 + $0x1a1] sm:$0xff] }
 0x4b3   : > { %10093 = vmatmul.mubr.msk.f32.vlgmr.msra.gmra.mrb[16].mxu1 %vm3745_vm2, %v6470_v13  ;;  %v8624_v13 = vld [vmem:[%s10922_s27 + $0x181] sm:$0xff] }
 0x4b4   : > { %10141 = vmatpush3.msra.mxu1 %v8560_v26  ;;  %10095 = vmatprep.mubr.msk.f32.mxu1 %vm3745_vm2, %v6471_v17  ;;  %v6493_v26 = vld [vmem:[#allocation2 + $0x151] sm:$0xff]  ;;  %v12824_v17 = vld [vmem:[%s12976_s4 + $0x1] ss:$0 sm:$0xff] }
 0x4b5   : > { %10190 = vmatprep.subr.msk.mxu1 %vm392_vm0, %v12656_v14 }
 0x4b7   : > { %10096 = vmatmul.mubr.msk.f32.gmra.mrb[18].mxu1 %vm3745_vm2, %v6472_v15  ;;  %v13260_v15 = vld [vmem:[#allocation28_spill] sm:$0xff] }
 0x4b8   : > { %10098 = vmatprep.mubr.msk.f32.mxu1 %vm3745_vm2, %v6473_v23  ;;  %v10242_v23 = vadd.f32 %v13260_v15, %v12824_v17 }
 0x4bb   : > { %10099 = vmatmul.mubr.msk.f32.gmra.mrb[20].mxu1 %vm3745_vm2, %v6474_v25  ;;  %v13261_v25 = vld [vmem:[#allocation30_spill] sm:$0xff] }
 0x4bc   : > { %10101 = vmatprep.mubr.msk.f32.mxu1 %vm3745_vm2, %v6475_v44  ;;  %v10245_v44 = vadd.f32 %v12824_v17, %v13261_v25 }
 0x4bf   : > { %10102 = vmatmul.mubr.msk.f32.gmra.mrb[22].mxu1 %vm3745_vm2, %v6476_v46  ;;  %v13262_v46 = vld [vmem:[#allocation29_spill] sm:$0xff] }
 0x4c0   : > { %10104 = vmatprep.mubr.msk.f32.mxu1 %vm3745_vm2, %v6477_v47  ;;  %v10248_v47 = vadd.f32 %v13262_v46, %v12824_v17 }
 0x4c3   : > { %10105 = vmatmul.mubr.msk.f32.gmra.mrb[24].mxu1 %vm3745_vm2, %v6478_v48  ;;  %v13263_v48 = vld [vmem:[#allocation32_spill] sm:$0xff] }
 0x4c4   : > { %10107 = vmatprep.mubr.msk.f32.mxu1 %vm3745_vm2, %v6479_v28  ;;  %v10251_v28 = vadd.f32 %v12824_v17, %v13263_v48 }
 0x4c7   : > { %10108 = vmatmul.mubr.msk.f32.gmra.mrb[26].mxu1 %vm3745_vm2, %v6480_v32 }
 0x4c8   : > { %10110 = vmatprep.mubr.msk.f32.mxu1 %vm3745_vm2, %v6481_v51  ;;  %v12837_v51 = vld [vmem:[%s12976_s4 + $0x2] ss:$0 sm:$0xff] }
 0x4cb   : > { %10111 = vmatmul.mubr.msk.f32.gmra.mrb[28].mxu1 %vm3745_vm2, %v6482_v30 }
 0x4cc   : > { %10113 = vmatprep.mubr.msk.f32.mxu1 %vm3745_vm2, %v6483_v55 }
 0x4cf   : > { %10114 = vmatmul.mubr.msk.f32.gmra.mrb[30].mxu1 %vm3745_vm2, %v6484_v57 }
 0x4d0   : > { %10116 = vmatprep.mubr.msk.f32.mxu1 %vm3745_vm2, %v6485_v58  ;;  %v13264_v58 = vld [vmem:[#allocation34_spill] sm:$0xff] }
 0x4d3   : > { %10117 = vmatmul.mubr.msk.f32.gmra.mrb[0].mxu1 %vm3745_vm2, %v6486_v59  ;;  %v10254_v59 = vadd.f32 %v13264_v58, %v12824_v17 }
 0x4d4   : > { %10119 = vmatprep.mubr.msk.f32.mxu1 %vm3745_vm2, %v6487_v61 }
 0x4d7   : > { %10120 = vmatmul.mubr.msk.f32.gmra.mrb[2].mxu1 %vm3745_vm2, %v6488_v1  ;;  %v10249_v1 = vadd.f32 %v10248_v47, %v12837_v51 }
 0x4d8   : > { %10122 = vmatprep.mubr.msk.f32.mxu1 %vm3745_vm2, %v6489_v2  ;;  %v13265_v2 = vld [vmem:[#allocation36_spill] sm:$0xff] }
 0x4db   : > { %10123 = vmatmul.mubr.msk.f32.gmra.mrb[4].mxu1 %vm3745_vm2, %v6490_v6  ;;  %v10257_v6 = vadd.f32 %v12824_v17, %v13265_v2 }
 0x4dc   : > { %10125 = vmatprep.mubr.msk.f32.mxu1 %vm3745_vm2, %v6491_v40 }
 0x4df   : > { %10126 = vmatmul.mubr.msk.f32.gmra.mrb[6].mxu1 %vm3745_vm2, %v6492_v20 }
 0x4e0   : > { %10128 = vmatprep.mubr.msk.f32.mxu1 %vm3745_vm2, %v6493_v26  ;;  %v10252_v26 = vadd.f32 %v10251_v28, %v12837_v51 }
 0x4e3   : > { %10129 = vmatmul.mubr.msk.f32.gmra.mrb[8].mxu1 %vm3745_vm2, %v6494_v41 }
 0x4e4   : > { %10131 = vmatprep.mubr.msk.f32.mxu1 %vm3745_vm2, %v6495_v8 }
 0x4e7   : > { %10132 = vmatmul.mubr.msk.f32.gmra.mrb[10].mxu1 %vm3745_vm2, %v6496_v37 }
 0x4e8   : > { %10134 = vmatprep.mubr.msk.f32.mxu1 %vm3745_vm2, %v12508_v10  ;;  %v6886_v10 = vld [vmem:[#allocation2 + $0x19a] sm:$0xff] }
 0x4eb   : > { %10135 = vmatmul.mubr.msk.f32.gmra.mrb[12].mxu1 %vm3745_vm2, %v12512_v12  ;;  %v8597_v12 = vld [vmem:[%s10922_s27 + $0x39] sm:$0xff] }
 0x4ec   : > { %10137 = vmatprep.mubr.msk.f32.mxu1 %vm3745_vm2, %v6499_v53 }
 0x4ef   : > { %10138 = vmatmul.mubr.msk.f32.gmra.mrb[14].mxu1 %vm3745_vm2, %v6500_v11 }
 0x4f0   : > { %10142 = vmatprep.mubr.msk.f32.mxu1 %vm3745_vm2, %v13234_v43  ;;  %v8598_v43 = vld [vmem:[%s10922_s27 + $0x49] sm:$0xff] }
 0x4f3   : > { %10143 = vmatmul.mubr.msk.f32.vlgmr.msra.gmra.mrb[16].mxu1 %vm3745_vm2, %v13235_v49  ;;  %v8599_v49 = vld [vmem:[%s10922_s27 + $0x51] sm:$0xff] }
 0x4f4   : > { %10191 = vmatpush3.msk.msra.mxu1 %vm392_vm0, %v12656_v14  ;;  %10145 = vmatprep.mubr.msk.f32.mxu1 %vm3745_vm2, %v13236_v29  ;;  %v8600_v29 = vld [vmem:[%s10922_s27 + $0x61] sm:$0xff]  ;;  %v8625_v14 = vld [vmem:[%s10922_s27 + $0x189] sm:$0xff] }
 0x4f7   : > { %10146 = vmatmul.mubr.msk.f32.gmra.mrb[18].mxu1 %vm3745_vm2, %v13237_v52  ;;  %v8601_v52 = vld [vmem:[%s10922_s27 + $0x69] sm:$0xff] }
 0x4f8   : > { %10148 = vmatprep.mubr.msk.f32.mxu1 %vm3745_vm2, %v13238_v56  ;;  %v8602_v56 = vld [vmem:[%s10922_s27 + $0x79] sm:$0xff] }
 0x4fb   : > { %10149 = vmatmul.mubr.msk.f32.gmra.mrb[20].mxu1 %vm3745_vm2, %v13239_v62  ;;  %v8603_v62 = vld [vmem:[%s10922_s27 + $0x81] sm:$0xff] }
 0x4fc   : > { %10151 = vmatprep.mubr.msk.f32.mxu1 %vm3745_vm2, %v13240_v0  ;;  %v8604_v0 = vld [vmem:[%s10922_s27 + $0x91] sm:$0xff] }
 0x4ff   : > { %10152 = vmatmul.mubr.msk.f32.gmra.mrb[22].mxu1 %vm3745_vm2, %v13241_v38  ;;  %v8605_v38 = vld [vmem:[%s10922_s27 + $0x99] sm:$0xff] }
 0x500   : > { %10154 = vmatprep.mubr.msk.f32.mxu1 %vm3745_vm2, %v13242_v34  ;;  %v8606_v34 = vld [vmem:[%s10922_s27 + $0xa9] sm:$0xff] }
 0x503   : > { %10155 = vmatmul.mubr.msk.f32.gmra.mrb[24].mxu1 %vm3745_vm2, %v13243_v7  ;;  %v8607_v7 = vld [vmem:[%s10922_s27 + $0xb1] sm:$0xff] }
 0x504   : > { %10157 = vmatprep.mubr.msk.f32.mxu1 %vm3745_vm2, %v13244_v9  ;;  %v8608_v9 = vld [vmem:[%s10922_s27 + $0xc1] sm:$0xff] }
 0x507   : > { %10158 = vmatmul.mubr.msk.f32.gmra.mrb[26].mxu1 %vm3745_vm2, %v13245_v16  ;;  %v8609_v16 = vld [vmem:[%s10922_s27 + $0xc9] sm:$0xff] }
 0x508   : > { %10160 = vmatprep.mubr.msk.f32.mxu1 %vm3745_vm2, %v13246_v19  ;;  %v8610_v19 = vld [vmem:[%s10922_s27 + $0xd9] sm:$0xff] }
 0x50b   : > { %10161 = vmatmul.mubr.msk.f32.gmra.mrb[28].mxu1 %vm3745_vm2, %v13247_v42  ;;  %v8611_v42 = vld [vmem:[%s10922_s27 + $0xe1] sm:$0xff] }
 0x50c   : > { %10163 = vmatprep.mubr.msk.f32.mxu1 %vm3745_vm2, %v13248_v45  ;;  %v8612_v45 = vld [vmem:[%s10922_s27 + $0xf1] sm:$0xff] }
 0x50f   : > { %10164 = vmatmul.mubr.msk.f32.gmra.mrb[30].mxu1 %vm3745_vm2, %v13249_v50  ;;  %v8613_v50 = vld [vmem:[%s10922_s27 + $0xf9] sm:$0xff] }
 0x510   : > { %10166 = vmatprep.mubr.msk.f32.mxu1 %vm3745_vm2, %v13250_v27  ;;  %v8614_v27 = vld [vmem:[%s10922_s27 + $0x109] sm:$0xff] }
 0x513   : > { %10167 = vmatmul.mubr.msk.f32.gmra.mrb[0].mxu1 %vm3745_vm2, %v13251_v60  ;;  %v8615_v60 = vld [vmem:[%s10922_s27 + $0x111] sm:$0xff] }
 0x514   : > { %10169 = vmatprep.mubr.msk.f32.mxu1 %vm3745_vm2, %v13252_v63  ;;  %v8616_v63 = vld [vmem:[%s10922_s27 + $0x121] sm:$0xff] }
 0x517   : > { %10170 = vmatmul.mubr.msk.f32.gmra.mrb[2].mxu1 %vm3745_vm2, %v13253_v3  ;;  %v8617_v3 = vld [vmem:[%s10922_s27 + $0x129] sm:$0xff] }
 0x518   : > { %10172 = vmatprep.mubr.msk.f32.mxu1 %vm3745_vm2, %v13254_v54  ;;  %v8618_v54 = vld [vmem:[%s10922_s27 + $0x139] sm:$0xff] }
 0x51b   : > { %10173 = vmatmul.mubr.msk.f32.gmra.mrb[4].mxu1 %vm3745_vm2, %v13255_v36  ;;  %v8619_v36 = vld [vmem:[%s10922_s27 + $0x141] sm:$0xff] }
 0x51c   : > { %10175 = vmatprep.mubr.msk.f32.mxu1 %vm3745_vm2, %v13256_v21  ;;  %v8620_v21 = vld [vmem:[%s10922_s27 + $0x151] sm:$0xff] }
 0x51f   : > { %10176 = vmatmul.mubr.msk.f32.gmra.mrb[6].mxu1 %vm3745_vm2, %v12325_v35  ;;  %v6887_v35 = vld [vmem:[#allocation2 + $0x1a2] sm:$0xff] }
 0x520   : > { %10178 = vmatprep.mubr.msk.f32.mxu1 %vm3745_vm2, %v13257_v31  ;;  %v8621_v31 = vld [vmem:[%s10922_s27 + $0x159] sm:$0xff] }
 0x523   : > { %10179 = vmatmul.mubr.msk.f32.gmra.mrb[8].mxu1 %vm3745_vm2, %v12333_v5  ;;  %v8594_v5 = vld [vmem:[%s10922_s27 + $0x19] sm:$0xff] }
 0x524   : > { %10181 = vmatprep.mubr.msk.f32.mxu1 %vm3745_vm2, %v12337_v22  ;;  %v8595_v22 = vld [vmem:[%s10922_s27 + $0x21] sm:$0xff] }
 0x527   : > { %10182 = vmatmul.mubr.msk.f32.gmra.mrb[10].mxu1 %vm3745_vm2, %v12341_v33  ;;  %v8596_v33 = vld [vmem:[%s10922_s27 + $0x31] sm:$0xff] }
 0x528   : > { %10184 = vmatprep.mubr.msk.f32.mxu1 %vm3745_vm2, %v12579_v39  ;;  %v8622_v39 = vld [vmem:[%s10922_s27 + $0x169] sm:$0xff] }
 0x52b   : > { %10185 = vmatmul.mubr.msk.f32.gmra.mrb[12].mxu1 %vm3745_vm2, %v12583_v18  ;;  %v8623_v18 = vld [vmem:[%s10922_s27 + $0x171] sm:$0xff] }
 0x52c   : > { %10187 = vmatprep.mubr.msk.f32.mxu1 %vm3745_vm2, %v6886_v10  ;;  %v13266_v10 = vld [vmem:[#allocation39_spill] sm:$0xff] }
 0x52f   : > { %10188 = vmatmul.mubr.msk.f32.gmra.mrb[14].mxu1 %vm3745_vm2, %v6887_v35  ;;  %v10260_v35 = vadd.f32 %v13266_v10, %v12824_v17 }
 0x530   : > { %10192 = vmatprep.mubr.msk.f32.mxu1 %vm295_vm1, %v8594_v5 }
 0x533   : > { %10193 = vmatmul.mubr.msk.f32.vlgmr.msra.gmra.mrb[16].mxu1 %vm295_vm1, %v8595_v22  ;;  %v10255_v22 = vadd.f32 %v10254_v59, %v12837_v51 }
 0x534   : > { %10195 = vmatprep.mubr.msk.f32.mxu1 %vm295_vm1, %v8596_v33  ;;  %v13267_v33 = vld [vmem:[#allocation40_spill] sm:$0xff] }
 0x537   : > { %10196 = vmatmul.mubr.msk.f32.gmra.mrb[18].mxu1 %vm295_vm1, %v8597_v12  ;;  %v10263_v12 = vadd.f32 %v12824_v17, %v13267_v33 }
 0x538   : > { %10198 = vmatprep.mubr.msk.f32.mxu1 %vm295_vm1, %v8598_v43 }
 0x53b   : > { %10199 = vmatmul.mubr.msk.f32.gmra.mrb[20].mxu1 %vm295_vm1, %v8599_v49 }
 0x53c   : > { %10201 = vmatprep.mubr.msk.f32.mxu1 %vm295_vm1, %v8600_v29  ;;  %v10258_v29 = vadd.f32 %v10257_v6, %v12837_v51 }
 0x53f   : > { %10202 = vmatmul.mubr.msk.f32.gmra.mrb[22].mxu1 %vm295_vm1, %v8601_v52 }
 0x540   : > { %10204 = vmatprep.mubr.msk.f32.mxu1 %vm295_vm1, %v8602_v56 }
 0x543   : > { %10205 = vmatmul.mubr.msk.f32.gmra.mrb[24].mxu1 %vm295_vm1, %v8603_v62 }
 0x544   : > { %10207 = vmatprep.mubr.msk.f32.mxu1 %vm295_vm1, %v8604_v0  ;;  %v13268_v0 = vld [vmem:[#allocation41_spill] sm:$0xff] }
 0x547   : > { %10208 = vmatmul.mubr.msk.f32.gmra.mrb[26].mxu1 %vm295_vm1, %v8605_v38  ;;  %v10266_v38 = vadd.f32 %v13268_v0, %v12824_v17 }
 0x548   : > { %10210 = vmatprep.mubr.msk.f32.mxu1 %vm295_vm1, %v8606_v34 }
 0x54b   : > { %10211 = vmatmul.mubr.msk.f32.gmra.mrb[28].mxu1 %vm295_vm1, %v8607_v7  ;;  %v10261_v7 = vadd.f32 %v10260_v35, %v12837_v51 }
 0x54c   : > { %10213 = vmatprep.mubr.msk.f32.mxu1 %vm295_vm1, %v8608_v9  ;;  %v13269_v9 = vld [vmem:[#allocation42_spill] sm:$0xff] }
 0x54f   : > { %10214 = vmatmul.mubr.msk.f32.gmra.mrb[30].mxu1 %vm295_vm1, %v8609_v16  ;;  %v10269_v16 = vadd.f32 %v12824_v17, %v13269_v9 }
 0x550   : > { %10216 = vmatprep.mubr.msk.f32.mxu1 %vm295_vm1, %v8610_v19 }
 0x553   : > { %10217 = vmatmul.mubr.msk.f32.gmra.mrb[0].mxu1 %vm295_vm1, %v8611_v42 }
 0x554   : > { %10219 = vmatprep.mubr.msk.f32.mxu1 %vm295_vm1, %v8612_v45  ;;  %v10264_v45 = vadd.f32 %v10263_v12, %v12837_v51 }
 0x557   : > { %10220 = vmatmul.mubr.msk.f32.gmra.mrb[2].mxu1 %vm295_vm1, %v8613_v50 }
 0x558   : > { %10222 = vmatprep.mubr.msk.f32.mxu1 %vm295_vm1, %v8614_v27 }
 0x55b   : > { %10223 = vmatmul.mubr.msk.f32.gmra.mrb[4].mxu1 %vm295_vm1, %v8615_v60 }
 0x55c   : > { %10225 = vmatprep.mubr.msk.f32.mxu1 %vm295_vm1, %v8616_v63  ;;  %v13270_v63 = vld [vmem:[#allocation43_spill] sm:$0xff] }
 0x55f   : > { %10226 = vmatmul.mubr.msk.f32.gmra.mrb[6].mxu1 %vm295_vm1, %v8617_v3  ;;  %v10272_v3 = vadd.f32 %v13270_v63, %v12824_v17 }
 0x560   : > { %10228 = vmatprep.mubr.msk.f32.mxu1 %vm295_vm1, %v8618_v54 }
 0x563   : > { %10229 = vmatmul.mubr.msk.f32.gmra.mrb[8].mxu1 %vm295_vm1, %v8619_v36  ;;  %v10267_v36 = vadd.f32 %v10266_v38, %v12837_v51 }
 0x564   : > { %10231 = vmatprep.mubr.msk.f32.mxu1 %vm295_vm1, %v8620_v21  ;;  %v10275_v21 = vadd.f32 %v12824_v17, %v12409_v24  ;;  %v13271_v24 = vld [vmem:[#allocation44_spill] sm:$0xff] }
 0x565   : > { %v10281_v46 = vadd.f32 %v12824_v17, %v13271_v24 }
 0x566   : > { %v10276_v28 = vadd.f32 %v10275_v21, %v12837_v51 }
 0x567   : > { %10232 = vmatmul.mubr.msk.f32.gmra.mrb[10].mxu1 %vm295_vm1, %v8621_v31 }
 0x568   : > { %10234 = vmatprep.mubr.msk.f32.mxu1 %vm295_vm1, %v8622_v39 }
 0x56b   : > { %10235 = vmatmul.mubr.msk.f32.gmra.mrb[12].mxu1 %vm295_vm1, %v8623_v18  ;;  %v10270_v18 = vadd.f32 %v10269_v16, %v12837_v51 }
 0x56c   : > { %10237 = vmatprep.mubr.msk.f32.mxu1 %vm295_vm1, %v8624_v13 }
 0x56f   : > { %10238 = vmatmul.mubr.msk.f32.gmra.mrb[14].mxu1 %vm295_vm1, %v8625_v14 }
 0x606   : > { %v10194_v32 = vpop.f32.mrb[16].mxu1 }
 0x607   : > { %v10243_v30 = vadd.f32 %v10242_v23, %v10194_v32  ;;  %v7481_v55 = vpop.f32.mrb[17].mxu1  ;;  %v10278_v23 = vadd.f32 %v12415_v4, %v12824_v17  ;;  %v13272_v4 = vld [vmem:[#allocation45_spill] sm:$0xff] }
 0x608   : > { %v10246_v57 = vadd.f32 %v10245_v44, %v7481_v55  ;;  %v10273_v44 = vadd.f32 %v10272_v3, %v12837_v51 }
 0x609   : > { %v10244_v61 = vadd.f32 %v10243_v30, %v12837_v51  ;;  %v10279_v59 = vadd.f32 %v10278_v23, %v12837_v51 }
 0x60a   : > { %v10247_v40 = vadd.f32 %v10246_v57, %v12837_v51  ;;  %v10197_v20 = vpop.f32.mrb[18].mxu1  ;;  %v10284_v57 = vadd.f32 %v13272_v4, %v12824_v17 }
 0x60b   : > { %v7673_v41 = vmax.f32 %v10244_v61, 0.0  ;;  %v10250_v8 = vadd.f32 %v10249_v1, %v10197_v20  ;;  %v7491_v37 = vpop.f32.mrb[19].mxu1  ;;  %v13273_v61 = vld [vmem:[#allocation46_spill] sm:$0xff] }
 0x60c   : > { %v7672_v53 = vmax.f32 %v10247_v40, 0.0  ;;  %v10253_v11 = vadd.f32 %v10252_v26, %v7491_v37  ;;  %v10287_v1 = vadd.f32 %v12824_v17, %v13273_v61  ;;  %v10282_v40 = vadd.f32 %v10281_v46, %v12837_v51 }
 0x60d   : > { %7705 = vst.msk [vmem:[%s12849_s25 + $0x8] sm:$0xff] %vm3745_vm2, %v7673_v41  ;;  %v7675_v5 = vmax.f32 %v10250_v8, 0.0  ;;  %v10285_v37 = vadd.f32 %v10284_v57, %v12837_v51 }
 0x60e   : > { %7704 = vst.msk [vmem:[%s12849_s25] sm:$0xff] %vm3745_vm2, %v7672_v53  ;;  %v7674_v43 = vmax.f32 %v10253_v11, 0.0  ;;  %v10200_v49 = vpop.f32.mrb[20].mxu1  ;;  %v10288_v10 = vadd.f32 %v10287_v1, %v12837_v51 }
 0x60f   : > { %7707 = vst.msk [vmem:[%s12849_s25 + $0x18] sm:$0xff] %vm3745_vm2, %v7675_v5  ;;  %v10256_v52 = vadd.f32 %v10255_v22, %v10200_v49  ;;  %v7501_v56 = vpop.f32.mrb[21].mxu1  ;;  %v12913_v22 = vadd.f32 %v12837_v51, %v12824_v17 }
 0x610   : > { %7706 = vst.msk [vmem:[%s12849_s25 + $0x10] sm:$0xff] %vm3745_vm2, %v7674_v43  ;;  %v10259_v62 = vadd.f32 %v10258_v29, %v7501_v56 }
 0x611   : > { %v7677_v34 = vmax.f32 %v10256_v52, 0.0 }
 0x612   : > { %v7676_v19 = vmax.f32 %v10259_v62, 0.0  ;;  %v10203_v42 = vpop.f32.mrb[22].mxu1 }
 0x613   : > { %7709 = vst.msk [vmem:[%s12849_s25 + $0x28] sm:$0xff] %vm3745_vm2, %v7677_v34  ;;  %v10262_v50 = vadd.f32 %v10261_v7, %v10203_v42  ;;  %v7511_v27 = vpop.f32.mrb[23].mxu1 }
 0x614   : > { %7708 = vst.msk [vmem:[%s12849_s25 + $0x20] sm:$0xff] %vm3745_vm2, %v7676_v19  ;;  %v10265_v60 = vadd.f32 %v10264_v45, %v7511_v27 }
 0x615   : > { %v7679_v54 = vmax.f32 %v10262_v50, 0.0 }
 0x616   : > { %v7678_v31 = vmax.f32 %v10265_v60, 0.0  ;;  %v10206_v39 = vpop.f32.mrb[24].mxu1 }
 0x617   : > { %7711 = vst.msk [vmem:[%s12849_s25 + $0x38] sm:$0xff] %vm3745_vm2, %v7679_v54  ;;  %v10268_v13 = vadd.f32 %v10267_v36, %v10206_v39  ;;  %v7521_v14 = vpop.f32.mrb[25].mxu1 }
 0x618   : > { %7710 = vst.msk [vmem:[%s12849_s25 + $0x30] sm:$0xff] %vm3745_vm2, %v7678_v31  ;;  %v10271_v15 = vadd.f32 %v10270_v18, %v7521_v14 }
 0x619   : > { %v7681_v25 = vmax.f32 %v10268_v13, 0.0 }
 0x61a   : > { %v7680_v47 = vmax.f32 %v10271_v15, 0.0  ;;  %v10209_v48 = vpop.f32.mrb[26].mxu1 }
 0x61b   : > { %7713 = vst.msk [vmem:[%s12849_s25 + $0x48] sm:$0xff] %vm3745_vm2, %v7681_v25  ;;  %v10274_v32 = vadd.f32 %v10273_v44, %v10209_v48  ;;  %v7531_v30 = vpop.f32.mrb[27].mxu1 }
 0x61c   : > { %7712 = vst.msk [vmem:[%s12849_s25 + $0x40] sm:$0xff] %vm3745_vm2, %v7680_v47  ;;  %v10277_v55 = vadd.f32 %v10276_v28, %v7531_v30 }
 0x61d   : > { %v7683_v58 = vmax.f32 %v10274_v32, 0.0 }
 0x61e   : > { %v7682_v2 = vmax.f32 %v10277_v55, 0.0  ;;  %v10212_v6 = vpop.f32.mrb[28].mxu1 }
 0x61f   : > { %7715 = vst.msk [vmem:[%s12849_s25 + $0x58] sm:$0xff] %vm3745_vm2, %v7683_v58  ;;  %v10280_v20 = vadd.f32 %v10279_v59, %v10212_v6  ;;  %v7541_v26 = vpop.f32.mrb[29].mxu1 }
 0x620   : > { %7714 = vst.msk [vmem:[%s12849_s25 + $0x50] sm:$0xff] %vm3745_vm2, %v7682_v2  ;;  %v10283_v41 = vadd.f32 %v10282_v40, %v7541_v26 }
 0x621   : > { %v7685_v8 = vmax.f32 %v10280_v20, 0.0 }
 0x622   : > { %v7684_v53 = vmax.f32 %v10283_v41, 0.0  ;;  %v10215_v11 = vpop.f32.mrb[30].mxu1 }
 0x623   : > { %7717 = vst.msk [vmem:[%s12849_s25 + $0x68] sm:$0xff] %vm3745_vm2, %v7685_v8  ;;  %v10286_v35 = vadd.f32 %v10285_v37, %v10215_v11  ;;  %v7551_v5 = vpop.f32.mrb[31].mxu1 }
 0x624   : > { %7716 = vst.msk [vmem:[%s12849_s25 + $0x60] sm:$0xff] %vm3745_vm2, %v7684_v53  ;;  %v10289_v33 = vadd.f32 %v10288_v10, %v7551_v5 }
 0x625   : > { %v7687_v12 = vmax.f32 %v10286_v35, 0.0 }
 0x626   : > { %v7686_v43 = vmax.f32 %v10289_v33, 0.0  ;;  %v10218_v49 = vpop.f32.mrb[0].mxu1 }
 0x627   : > { %7719 = vst.msk [vmem:[%s12849_s25 + $0x78] sm:$0xff] %vm3745_vm2, %v7687_v12  ;;  %v10291_v29 = vadd.f32 %v12913_v22, %v10218_v49  ;;  %v7561_v52 = vpop.f32.mrb[1].mxu1 }
 0x628   : > { %7718 = vst.msk [vmem:[%s12849_s25 + $0x70] sm:$0xff] %vm3745_vm2, %v7686_v43  ;;  %v10293_v56 = vadd.f32 %v12913_v22, %v7561_v52 }
 0x629   : > { %v7689_v17 = vmax.f32 %v10291_v29, 0.0 }
 0x62a   : > { %v7688_v51 = vmax.f32 %v10293_v56, 0.0  ;;  %v10221_v62 = vpop.f32.mrb[2].mxu1 }
 0x62b   : > { %7721 = vst.msk [vmem:[%s12849_s25 + $0x88] sm:$0xff] %vm3745_vm2, %v7689_v17  ;;  %v10295_v0 = vadd.f32 %v12913_v22, %v10221_v62  ;;  %v7571_v38 = vpop.f32.mrb[3].mxu1 }
 0x62c   : > { %7720 = vst.msk [vmem:[%s12849_s25 + $0x80] sm:$0xff] %vm3745_vm2, %v7688_v51  ;;  %v10297_v34 = vadd.f32 %v12913_v22, %v7571_v38 }
 0x62d   : > { %v7691_v7 = vmax.f32 %v10295_v0, 0.0 }
 0x62e   : > { %v7690_v9 = vmax.f32 %v10297_v34, 0.0  ;;  %v10224_v16 = vpop.f32.mrb[4].mxu1 }
 0x62f   : > { %7723 = vst.msk [vmem:[%s12849_s25 + $0x98] sm:$0xff] %vm3745_vm2, %v7691_v7  ;;  %v10299_v19 = vadd.f32 %v12913_v22, %v10224_v16  ;;  %v7581_v42 = vpop.f32.mrb[5].mxu1 }
 0x630   : > { %7722 = vst.msk [vmem:[%s12849_s25 + $0x90] sm:$0xff] %vm3745_vm2, %v7690_v9  ;;  %v10301_v45 = vadd.f32 %v12913_v22, %v7581_v42 }
 0x631   : > { %v7693_v50 = vmax.f32 %v10299_v19, 0.0 }
 0x632   : > { %v7692_v27 = vmax.f32 %v10301_v45, 0.0  ;;  %v10227_v60 = vpop.f32.mrb[6].mxu1 }
 0x633   : > { %7725 = vst.msk [vmem:[%s12849_s25 + $0xa8] sm:$0xff] %vm3745_vm2, %v7693_v50  ;;  %v10303_v63 = vadd.f32 %v12913_v22, %v10227_v60  ;;  %v7591_v3 = vpop.f32.mrb[7].mxu1 }
 0x634   : > { %7724 = vst.msk [vmem:[%s12849_s25 + $0xa0] sm:$0xff] %vm3745_vm2, %v7692_v27  ;;  %v10305_v54 = vadd.f32 %v12913_v22, %v7591_v3 }
 0x635   : > { %v7695_v36 = vmax.f32 %v10303_v63, 0.0 }
 0x636   : > { %v7694_v21 = vmax.f32 %v10305_v54, 0.0  ;;  %v10230_v31 = vpop.f32.mrb[8].mxu1 }
 0x637   : > { %7727 = vst.msk [vmem:[%s12849_s25 + $0xb8] sm:$0xff] %vm3745_vm2, %v7695_v36  ;;  %v10307_v39 = vadd.f32 %v12913_v22, %v10230_v31  ;;  %v7601_v18 = vpop.f32.mrb[9].mxu1 }
 0x638   : > { %7726 = vst.msk [vmem:[%s12849_s25 + $0xb0] sm:$0xff] %vm3745_vm2, %v7694_v21  ;;  %v10309_v13 = vadd.f32 %v12913_v22, %v7601_v18 }
 0x639   : > { %v7697_v14 = vmax.f32 %v10307_v39, 0.0 }
 0x63a   : > { %v7696_v15 = vmax.f32 %v10309_v13, 0.0  ;;  %v10233_v23 = vpop.f32.mrb[10].mxu1 }
 0x63b   : > { %7729 = vst.msk [vmem:[%s12849_s25 + $0xc8] sm:$0xff] %vm3745_vm2, %v7697_v14  ;;  %v10311_v25 = vadd.f32 %v12913_v22, %v10233_v23  ;;  %v7611_v44 = vpop.f32.mrb[11].mxu1 }
 0x63c   : > { %7728 = vst.msk [vmem:[%s12849_s25 + $0xc0] sm:$0xff] %vm3745_vm2, %v7696_v15  ;;  %v10313_v24 = vadd.f32 %v12913_v22, %v7611_v44 }
 0x63d   : > { %v7699_v46 = vmax.f32 %v10311_v25, 0.0 }
 0x63e   : > { %v7698_v47 = vmax.f32 %v10313_v24, 0.0  ;;  %v10236_v48 = vpop.f32.mrb[12].mxu1 }
 0x63f   : > { %7731 = vst.msk [vmem:[%s12849_s25 + $0xd8] sm:$0xff] %vm3745_vm2, %v7699_v46  ;;  %v10315_v28 = vadd.f32 %v12913_v22, %v10236_v48  ;;  %v7621_v32 = vpop.f32.mrb[13].mxu1 }
 0x640   : > { %7730 = vst.msk [vmem:[%s12849_s25 + $0xd0] sm:$0xff] %vm3745_vm2, %v7698_v47  ;;  %v10317_v30 = vadd.f32 %v12913_v22, %v7621_v32 }
 0x641   : > { %v7701_v55 = vmax.f32 %v10315_v28, 0.0 }
 0x642   : > { %v7700_v4 = vmax.f32 %v10317_v30, 0.0  ;;  %v10239_v57 = vpop.f32.mrb[14].mxu1 }
 0x643   : > { %7733 = vst.msk [vmem:[%s12849_s25 + $0xe8] sm:$0xff] %vm3745_vm2, %v7701_v55  ;;  %v10319_v58 = vadd.f32 %v12913_v22, %v10239_v57  ;;  %v7631_v59 = vpop.f32.mrb[15].mxu1 }
 0x644   : > { %7732 = vst.msk [vmem:[%s12849_s25 + $0xe0] sm:$0xff] %vm3745_vm2, %v7700_v4  ;;  %v10321_v61 = vadd.f32 %v12913_v22, %v7631_v59 }
 0x645   : > { %v7703_v1 = vmax.f32 %v10319_v58, 0.0 }
 0x646   : > { %v7702_v2 = vmax.f32 %v10321_v61, 0.0 }
 0x647   : > { %7735 = vst.msk [vmem:[%s12849_s25 + $0xf8] sm:$0xff] %vm3745_vm2, %v7703_v1 }
 0x648   : > { %7734 = vst.msk [vmem:[%s12849_s25 + $0xf0] sm:$0xff] %vm3745_vm2, %v7702_v2 }
 0x649 PF: > { %s15_s18 = sadd.s32 1, %s10866_s18  }
 0x64a   : > { %p12_p4 = scmp.ge.s32.totalorder %s15_s18, 4  }
 0x64c   :  { %14 = sbr.rel (!%p12_p4) target bundleno = 1 (0x1), region = 91 }

</bundles_post_ra>
